<compile_context>
chip_gen: v7x
topology: tpu7x:2x2x1
jax: 0.10.0
libtpu: 0.0.40
codegen_flags: <defaults>
</compile_context>

<pallas_src>
import random

import jax
import jax.numpy as jnp
from jax import lax
from jax.experimental import pallas as pl
from jax.experimental.pallas import tpu as pltpu

_VM = pl.BlockSpec(memory_space=pltpu.MemorySpace.VMEM)
_SM = pl.BlockSpec(memory_space=pltpu.MemorySpace.SMEM)


# ---------------------------------------------------------------------------
# Fully fused forward kernel
# ---------------------------------------------------------------------------
def make_fused_kernel(T, B, E, Henc, L, Hdec):
    H = Henc
    Hd = Hdec

    def kernel(*refs):
        it = iter(refs)
        # ---- inputs ----
        tf_ref = next(it)                     # (T,) int32, SMEM
        x_ref = next(it)                      # (T, B, E)
        enc_layers = [tuple(next(it) for _ in range(5)) for _ in range(L)]
        pre_w_ref = next(it)                  # (2LH, Hdec)
        pre_b_ref = next(it)                  # (1, Hdec)
        emb_ref = next(it)                    # (2K, Hdec)  [h codebook ; c codebook]
        dec_w_ref = next(it)                  # (E+Hd, 4Hd) [Wih ; Whh], g-scaled
        dec_b_ref = next(it)                  # (1, 4Hd)
        fcw_ref = next(it)                    # (Hd, E)
        fcb_ref = next(it)                    # (1, E)
        # ---- outputs ----
        out_ref = next(it)                    # (T, B, E)
        zeh_ref = next(it)                    # (B, Hdec)
        zec_ref = next(it)
        zqh_ref = next(it)
        zqc_ref = next(it)
        # ---- scratch ----
        zx_ref = next(it)                     # (T, 2B, 4H) stacked hoisted gates
        yf_ref = next(it)                     # (T, B, H) layer fwd outputs
        yb_ref = next(it)                     # (T, B, H) layer bwd outputs

        # Row selector for the wide recurrent matmul result: fwd rows take the
        # first 4H columns, bwd rows the last 4H.  Built once, hoisted.
        fwd_rows = lax.broadcasted_iota(jnp.int32, (2 * B, 4 * H), 0) < B

        # ------------------ Encoder: stacked bidirectional LSTM ------------------
        hn_parts = []
        cn_parts = []
        for l in range(L):
            (wih_f_ref, wih_b_ref, b_f_ref, b_b_ref, whh_fb_ref) = enc_layers[l]

            # Hoisted input-to-hidden transform for the whole sequence: two
            # (T*B, in) @ (in, 4H) MXU matmuls per layer, off the serial chain.
            if l == 0:
                inp = x_ref[...].reshape(T * B, E)
            else:
                inp = jnp.concatenate([yf_ref[...], yb_ref[...]],
                                      axis=2).reshape(T * B, 2 * H)
            zxf = (jnp.dot(inp, wih_f_ref[...],
                           preferred_element_type=jnp.float32) + b_f_ref[...])
            zxb = (jnp.dot(inp, wih_b_ref[...],
                           preferred_element_type=jnp.float32) + b_b_ref[...])

            # Stacked (T, 2B, 4H) gate layout: rows :B = fwd gates at t,
            # rows B: = bwd gates at T-1-t (time reversal done here, off the
            # serial chain, with static-index stores only).
            for t in range(T):
                zx_ref[t, :B] = zxf[t * B:(t + 1) * B]
                zx_ref[t, B:] = zxb[(T - 1 - t) * B:(T - t) * B]

            whh_fb = whh_fb_ref[...]          # (H, 8H) = [Whh_f | Whh_b]
            store_out = l < L - 1

            # Merged fwd/bwd recurrence: stacked (2B, H) state; each step does
            # one aligned (8,128) gate load, one matmul, one sigmoid.
            def step(t, carry):
                h, c = carry                  # (2B, H): rows [:B]=fwd, [B:]=bwd
                zz = jnp.dot(h, whh_fb, preferred_element_type=jnp.float32)
                z = zx_ref[t] + jnp.where(fwd_rows,
                                          zz[:, :4 * H], zz[:, 4 * H:])
                sg = jax.nn.sigmoid(z)                       # single EUP pass
                i_g = sg[:, 0 * H:1 * H]
                f_g = sg[:, 1 * H:2 * H]
                g_g = 2.0 * sg[:, 2 * H:3 * H] - 1.0         # == tanh(orig g)
                o_g = sg[:, 3 * H:4 * H]
                c_new = f_g * c + i_g * g_g
                h_new = o_g * jnp.tanh(c_new)
                if store_out:                                # feeds next layer
                    yf_ref[t] = h_new[:B]
                    yb_ref[T - 1 - t] = h_new[B:]
                return (h_new, c_new)

            h0 = jnp.zeros((2 * B, H), jnp.float32)
            c0 = jnp.zeros((2 * B, H), jnp.float32)
            h_fin, c_fin = lax.fori_loop(0, T, step, (h0, c0), unroll=True)
            hn_parts += [h_fin[:B], h_fin[B:]]               # PyTorch order: fwd, bwd
            cn_parts += [c_fin[:B], c_fin[B:]]

        # h_n / c_n directly in the permuted (B, 2*L*H) layout
        z_h = jnp.concatenate(hn_parts, axis=1)              # (B, 2LH)
        z_c = jnp.concatenate(cn_parts, axis=1)

        # --------------- pre_quantizer_fc: h & c paths fused (2B rows) -----------
        z_stack = jnp.concatenate([z_h, z_c], axis=0)        # (2B, 2LH)
        z_e = (jnp.dot(z_stack, pre_w_ref[...],
                       preferred_element_type=jnp.float32) + pre_b_ref[...])

        # --------------- fused VQ nearest-codebook lookup (forward value) --------
        emb = emb_ref[...]                                   # (2K, Hd)
        K2 = emb.shape[0]
        K = K2 // 2
        z2 = jnp.sum(z_e * z_e, axis=1, keepdims=True)       # (2B, 1)
        e2 = jnp.sum(emb * emb, axis=1)[None, :]             # (1, 2K)
        cross = jnp.einsum("bd,kd->bk", z_e, emb,
                           preferred_element_type=jnp.float32)       # (2B, 2K)
        dist = z2 - 2.0 * cross + e2
        rowq = lax.broadcasted_iota(jnp.int32, (2 * B, K2), 0)
        colq = lax.broadcasted_iota(jnp.int32, (2 * B, K2), 1)
        valid = jnp.logical_or(jnp.logical_and(rowq < B, colq < K),
                               jnp.logical_and(rowq >= B, colq >= K))
        dist = jnp.where(valid, dist, jnp.float32(1e30))
        idx = jnp.argmin(dist, axis=1)
        onehot = (idx[:, None] == colq).astype(jnp.float32)
        z_q = jnp.dot(onehot, emb, preferred_element_type=jnp.float32)  # (2B, Hd)

        zeh_ref[...] = z_e[:B]
        zec_ref[...] = z_e[B:]
        zqh_ref[...] = z_q[:B]
        zqc_ref[...] = z_q[B:]

        # --------------- Decoder unroll with teacher forcing ---------------------
        dec_w = dec_w_ref[...]               # (E+Hd, 4Hd)
        db = dec_b_ref[...]
        fcw = fcw_ref[...]
        fcb = fcb_ref[...]

        x0 = x_ref[0]
        out_ref[0] = x0
        xh0 = jnp.concatenate([x0, z_q[:B]], axis=1)         # (B, E+Hd)

        def dec_step(t, carry):
            xh, c = carry                    # xh = [dec_in | h]  (B, E+Hd)
            z = jnp.dot(xh, dec_w, preferred_element_type=jnp.float32) + db
            sg = jax.nn.sigmoid(z)
            i_g = sg[:, 0 * Hd:1 * Hd]
            f_g = sg[:, 1 * Hd:2 * Hd]
            g_g = 2.0 * sg[:, 2 * Hd:3 * Hd] - 1.0
            o_g = sg[:, 3 * Hd:4 * Hd]
            c_new = f_g * c + i_g * g_g
            h_new = o_g * jnp.tanh(c_new)
            out = jnp.dot(h_new, fcw, preferred_element_type=jnp.float32) + fcb
            out_ref[t] = out
            use_teacher = tf_ref[t] > 0      # host-drawn decision at step t
            dec_next = jnp.where(use_teacher, x_ref[t], out)
            xh_new = jnp.concatenate([dec_next, h_new], axis=1)
            return (xh_new, c_new)

        lax.fori_loop(1, T, dec_step, (xh0, z_q[B:]), unroll=True)

    return kernel


# ---------------------------------------------------------------------------
# Wrapper: one pallas_call for the whole forward pass
# ---------------------------------------------------------------------------
@jax.jit
def model_forward(params, x, tf_mask):
    T, B, E = x.shape
    enc = params["encoder"]
    L = len(enc)
    Henc = enc[0]["whh_fb"].shape[0]
    Hdec = params["dec_w"].shape[1] // 4

    kernel = make_fused_kernel(T, B, E, Henc, L, Hdec)

    inputs = [tf_mask, x]
    for layer in enc:
        inputs += [layer["wih_f"], layer["wih_b"],
                   layer["b_f"], layer["b_b"], layer["whh_fb"]]
    inputs += [params["pre_w"], params["pre_b"], params["emb"],
               params["dec_w"], params["dec_b"],
               params["fcw"], params["fcb"]]

    out_shape = (
        jax.ShapeDtypeStruct((T, B, E), jnp.float32),      # decoder outputs
        jax.ShapeDtypeStruct((B, Hdec), jnp.float32),      # z_e_h
        jax.ShapeDtypeStruct((B, Hdec), jnp.float32),      # z_e_c
        jax.ShapeDtypeStruct((B, Hdec), jnp.float32),      # z_q_h
        jax.ShapeDtypeStruct((B, Hdec), jnp.float32),      # z_q_c
    )
    scratch = [
        pltpu.VMEM((T, 2 * B, 4 * Henc), jnp.float32),  # stacked hoisted gates
        pltpu.VMEM((T, B, Henc), jnp.float32),          # layer output, fwd
        pltpu.VMEM((T, B, Henc), jnp.float32),          # layer output, bwd
    ]
    return pl.pallas_call(
        kernel,
        out_shape=out_shape,
        in_specs=[_SM] + [_VM] * (len(inputs) - 1),
        out_specs=tuple([_VM] * 5),
        scratch_shapes=scratch,
        compiler_params=pltpu.CompilerParams(
            vmem_limit_bytes=32 * 1024 * 1024),
    )(*inputs)


# ---------------------------------------------------------------------------
# Parameter init (synthetic, PyTorch-shaped) + host-side kernel prep
# ---------------------------------------------------------------------------
def init_params(key, E, Henc, L, K, Hdec):
    keys = iter(jax.random.split(key, 64))

    def nrm(shape, scale=0.1):
        return scale * jax.random.normal(next(keys), shape, dtype=jnp.float32)

    encoder = []
    for l in range(L):
        in_dim = E if l == 0 else 2 * Henc
        layer = {}
        for d in ("f", "b"):
            layer[f"wih_{d}"] = nrm((4 * Henc, in_dim))    # PyTorch weight_ih
            layer[f"whh_{d}"] = nrm((4 * Henc, Henc))      # PyTorch weight_hh
            layer[f"bih_{d}"] = nrm((4 * Henc,))
            layer[f"bhh_{d}"] = nrm((4 * Henc,))
        encoder.append(layer)

    dec = {"wih": nrm((4 * Hdec, E)), "whh": nrm((4 * Hdec, Hdec)),
           "bih": nrm((4 * Hdec,)), "bhh": nrm((4 * Hdec,)),
           "fcw": nrm((E, Hdec)), "fcb": nrm((E,))}

    return dict(
        encoder=encoder,
        pre_w=nrm((Hdec, 2 * L * Henc)),
        pre_b=nrm((Hdec,)),
        h_emb=nrm((K, Hdec), scale=1.0),
        c_emb=nrm((K, Hdec), scale=1.0),
        dec=dec,
    )


def _scale_g(w, H):
    # Pre-scale the g-gate block (PyTorch gate order i,f,g,o -> columns 2H:3H)
    # by 2 so that tanh(g) == 2*sigmoid(2g) - 1 inside the kernel.
    return w.at[..., 2 * H:3 * H].multiply(2.0)


def prepare_params(raw):
    """Host-side transform of PyTorch-shaped weights into kernel layout."""
    enc_prepped = []
    for layer in raw["encoder"]:
        H = layer["whh_f"].shape[1]
        prep = {}
        for d in ("f", "b"):
            prep[f"wih_{d}"] = _scale_g(layer[f"wih_{d}"].T, H)   # (in, 4H)
            prep[f"b_{d}"] = _scale_g(
                (layer[f"bih_{d}"] + layer[f"bhh_{d}"]).reshape(1, -1), H)
        whh_f = _scale_g(layer["whh_f"].T, H)                      # (H, 4H)
        whh_b = _scale_g(layer["whh_b"].T, H)
        prep["whh_fb"] = jnp.concatenate([whh_f, whh_b], axis=1)   # (H, 8H)
        enc_prepped.append(prep)

    d = raw["dec"]
    Hd = d["whh"].shape[1]
    dec_w = _scale_g(jnp.concatenate([d["wih"].T, d["whh"].T], axis=0), Hd)
    dec_b = _scale_g((d["bih"] + d["bhh"]).reshape(1, -1), Hd)

    return dict(
        encoder=enc_prepped,
        pre_w=raw["pre_w"].T,                                      # (2LH, Hd)
        pre_b=raw["pre_b"].reshape(1, -1),
        emb=jnp.concatenate([raw["h_emb"], raw["c_emb"]], axis=0),  # (2K, Hd)
        dec_w=dec_w,
        dec_b=dec_b,
        fcw=d["fcw"].T,                                            # (Hd, E)
        fcb=d["fcb"].reshape(1, -1),
    )


# ---------------------------------------------------------------------------
if __name__ == "__main__":
    seq_len = 8
    batch = 4
    word_emb_dim = 16
    encoder_hidden_dim = 32
    encoder_num_layers = 2
    quantizer_num_embeddings = 16
    decoder_hidden_dim = 32
    teacher_force_p = 0.5

    key = jax.random.PRNGKey(0)
    kx, kp = jax.random.split(key)
    x = jax.random.normal(kx, (seq_len, batch, word_emb_dim), dtype=jnp.float32)

    raw_params = init_params(kp, word_emb_dim, encoder_hidden_dim,
                             encoder_num_layers, quantizer_num_embeddings,
                             decoder_hidden_dim)
    params = prepare_params(raw_params)

    # Teacher-forcing decisions drawn on host (mirrors `random.random() < tf`).
    random.seed(0)
    tf_draws = [0] + [1 if random.random() < teacher_force_p else 0
                      for _ in range(1, seq_len)]
    tf_mask = jnp.array(tf_draws, dtype=jnp.int32)

    outputs, z_e_h, z_e_c, z_q_h, z_q_c = model_forward(params, x, tf_mask)
    jax.block_until_ready((outputs, z_e_h, z_e_c, z_q_h, z_q_c))

    assert outputs.shape == (seq_len, batch, word_emb_dim)
    assert z_e_h.shape == (batch, decoder_hidden_dim)
    assert z_e_c.shape == (batch, decoder_hidden_dim)
    assert z_q_h.shape == (batch, decoder_hidden_dim)
    assert z_q_c.shape == (batch, decoder_hidden_dim)
    assert bool(jnp.all(jnp.isfinite(outputs)))
    assert bool(jnp.all(jnp.isfinite(z_q_h))) and bool(jnp.all(jnp.isfinite(z_q_c)))
    print("KERNEL_OK")
</pallas_src>

<mosaic_0001>
module attributes {stable_mosaic.version = 11 : i64} {
  func.func @kernel(%arg0: memref<8xi32, #tpu.memory_space<smem>>, %arg1: memref<8x4x16xf32, #tpu.memory_space<vmem>>, %arg2: memref<16x128xf32, #tpu.memory_space<vmem>>, %arg3: memref<16x128xf32, #tpu.memory_space<vmem>>, %arg4: memref<1x128xf32, #tpu.memory_space<vmem>>, %arg5: memref<1x128xf32, #tpu.memory_space<vmem>>, %arg6: memref<32x256xf32, #tpu.memory_space<vmem>>, %arg7: memref<64x128xf32, #tpu.memory_space<vmem>>, %arg8: memref<64x128xf32, #tpu.memory_space<vmem>>, %arg9: memref<1x128xf32, #tpu.memory_space<vmem>>, %arg10: memref<1x128xf32, #tpu.memory_space<vmem>>, %arg11: memref<32x256xf32, #tpu.memory_space<vmem>>, %arg12: memref<128x32xf32, #tpu.memory_space<vmem>>, %arg13: memref<1x32xf32, #tpu.memory_space<vmem>>, %arg14: memref<32x32xf32, #tpu.memory_space<vmem>>, %arg15: memref<48x128xf32, #tpu.memory_space<vmem>>, %arg16: memref<1x128xf32, #tpu.memory_space<vmem>>, %arg17: memref<32x16xf32, #tpu.memory_space<vmem>>, %arg18: memref<1x16xf32, #tpu.memory_space<vmem>>, %arg19: memref<8x4x16xf32, #tpu.memory_space<vmem>>, %arg20: memref<4x32xf32, #tpu.memory_space<vmem>>, %arg21: memref<4x32xf32, #tpu.memory_space<vmem>>, %arg22: memref<4x32xf32, #tpu.memory_space<vmem>>, %arg23: memref<4x32xf32, #tpu.memory_space<vmem>>, %arg24: memref<8x8x128xf32, #tpu.memory_space<vmem>>, %arg25: memref<8x4x32xf32, #tpu.memory_space<vmem>>, %arg26: memref<8x4x32xf32, #tpu.memory_space<vmem>>) attributes {dimension_semantics = [], scalar_prefetch = 0 : i64, scratch_operands = 3 : i64, tpu.core_type = #tpu.core_type<tc>} {
    %0 = tpu.iota {dimensions = array<i32: 0>} : vector<8x128xi32>
    %c4_i32 = arith.constant 4 : i32
    %1 = vector.broadcast %c4_i32 : i32 to vector<8x128xi32>
    %2 = arith.cmpi slt, %0, %1 : vector<8x128xi32>
    %c0 = arith.constant 0 : index
    %c0_0 = arith.constant 0 : index
    %c0_1 = arith.constant 0 : index
    %3 = vector.load %arg1[%c0, %c0_0, %c0_1] : memref<8x4x16xf32, #tpu.memory_space<vmem>>, vector<8x4x16xf32>
    %4 = vector.shape_cast %3 : vector<8x4x16xf32> to vector<32x16xf32>
    %c0_2 = arith.constant 0 : index
    %c0_3 = arith.constant 0 : index
    %5 = vector.load %arg2[%c0_2, %c0_3] : memref<16x128xf32, #tpu.memory_space<vmem>>, vector<16x128xf32>
    %cst = arith.constant dense<0.000000e+00> : vector<32x128xf32>
    %6 = tpu.matmul %4, %5, %cst {dimension_numbers = #tpu.dot_dimension_numbers<[1], [0], [0], [1], [0, 0, 1, 1], [], []>} : vector<32x16xf32>, vector<16x128xf32>, vector<32x128xf32> -> vector<32x128xf32>
    %c0_4 = arith.constant 0 : index
    %c0_5 = arith.constant 0 : index
    %7 = vector.load %arg4[%c0_4, %c0_5] : memref<1x128xf32, #tpu.memory_space<vmem>>, vector<1x128xf32>
    %8 = vector.broadcast %7 : vector<1x128xf32> to vector<32x128xf32>
    %9 = arith.addf %6, %8 : vector<32x128xf32>
    %c0_6 = arith.constant 0 : index
    %c0_7 = arith.constant 0 : index
    %10 = vector.load %arg3[%c0_6, %c0_7] : memref<16x128xf32, #tpu.memory_space<vmem>>, vector<16x128xf32>
    %cst_8 = arith.constant dense<0.000000e+00> : vector<32x128xf32>
    %11 = tpu.matmul %4, %10, %cst_8 {dimension_numbers = #tpu.dot_dimension_numbers<[1], [0], [0], [1], [0, 0, 1, 1], [], []>} : vector<32x16xf32>, vector<16x128xf32>, vector<32x128xf32> -> vector<32x128xf32>
    %c0_9 = arith.constant 0 : index
    %c0_10 = arith.constant 0 : index
    %12 = vector.load %arg5[%c0_9, %c0_10] : memref<1x128xf32, #tpu.memory_space<vmem>>, vector<1x128xf32>
    %13 = vector.broadcast %12 : vector<1x128xf32> to vector<32x128xf32>
    %14 = arith.addf %11, %13 : vector<32x128xf32>
    %15 = vector.extract_strided_slice %9 {offsets = [0, 0], sizes = [4, 128], strides = [1, 1]} : vector<32x128xf32> to vector<4x128xf32>
    %c0_11 = arith.constant 0 : index
    %c0_12 = arith.constant 0 : index
    %c0_13 = arith.constant 0 : index
    %16 = vector.load %arg24[%c0_11, %c0_12, %c0_13] : memref<8x8x128xf32, #tpu.memory_space<vmem>>, vector<1x4x128xf32>
    %17 = vector.shape_cast %16 : vector<1x4x128xf32> to vector<4x128xf32>
    %18 = vector.shape_cast %15 : vector<4x128xf32> to vector<1x4x128xf32>
    tpu.vector_store %arg24[%c0_11, %c0_12, %c0_13], %18 {strides = array<i32>} : memref<8x8x128xf32, #tpu.memory_space<vmem>>, vector<1x4x128xf32>,
    %19 = vector.extract_strided_slice %14 {offsets = [28, 0], sizes = [4, 128], strides = [1, 1]} : vector<32x128xf32> to vector<4x128xf32>
    %c0_14 = arith.constant 0 : index
    %c4 = arith.constant 4 : index
    %c0_15 = arith.constant 0 : index
    %20 = vector.load %arg24[%c0_14, %c4, %c0_15] : memref<8x8x128xf32, #tpu.memory_space<vmem>>, vector<1x4x128xf32>
    %21 = vector.shape_cast %20 : vector<1x4x128xf32> to vector<4x128xf32>
    %22 = vector.shape_cast %19 : vector<4x128xf32> to vector<1x4x128xf32>
    tpu.vector_store %arg24[%c0_14, %c4, %c0_15], %22 {strides = array<i32>} : memref<8x8x128xf32, #tpu.memory_space<vmem>>, vector<1x4x128xf32>,
    %23 = vector.extract_strided_slice %9 {offsets = [4, 0], sizes = [4, 128], strides = [1, 1]} : vector<32x128xf32> to vector<4x128xf32>
    %c1 = arith.constant 1 : index
    %c0_16 = arith.constant 0 : index
    %c0_17 = arith.constant 0 : index
    %24 = vector.load %arg24[%c1, %c0_16, %c0_17] : memref<8x8x128xf32, #tpu.memory_space<vmem>>, vector<1x4x128xf32>
    %25 = vector.shape_cast %24 : vector<1x4x128xf32> to vector<4x128xf32>
    %26 = vector.shape_cast %23 : vector<4x128xf32> to vector<1x4x128xf32>
    tpu.vector_store %arg24[%c1, %c0_16, %c0_17], %26 {strides = array<i32>} : memref<8x8x128xf32, #tpu.memory_space<vmem>>, vector<1x4x128xf32>,
    %27 = vector.extract_strided_slice %14 {offsets = [24, 0], sizes = [4, 128], strides = [1, 1]} : vector<32x128xf32> to vector<4x128xf32>
    %c1_18 = arith.constant 1 : index
    %c4_19 = arith.constant 4 : index
    %c0_20 = arith.constant 0 : index
    %28 = vector.load %arg24[%c1_18, %c4_19, %c0_20] : memref<8x8x128xf32, #tpu.memory_space<vmem>>, vector<1x4x128xf32>
    %29 = vector.shape_cast %28 : vector<1x4x128xf32> to vector<4x128xf32>
    %30 = vector.shape_cast %27 : vector<4x128xf32> to vector<1x4x128xf32>
    tpu.vector_store %arg24[%c1_18, %c4_19, %c0_20], %30 {strides = array<i32>} : memref<8x8x128xf32, #tpu.memory_space<vmem>>, vector<1x4x128xf32>,
    %31 = vector.extract_strided_slice %9 {offsets = [8, 0], sizes = [4, 128], strides = [1, 1]} : vector<32x128xf32> to vector<4x128xf32>
    %c2 = arith.constant 2 : index
    %c0_21 = arith.constant 0 : index
    %c0_22 = arith.constant 0 : index
    %32 = vector.load %arg24[%c2, %c0_21, %c0_22] : memref<8x8x128xf32, #tpu.memory_space<vmem>>, vector<1x4x128xf32>
    %33 = vector.shape_cast %32 : vector<1x4x128xf32> to vector<4x128xf32>
    %34 = vector.shape_cast %31 : vector<4x128xf32> to vector<1x4x128xf32>
    tpu.vector_store %arg24[%c2, %c0_21, %c0_22], %34 {strides = array<i32>} : memref<8x8x128xf32, #tpu.memory_space<vmem>>, vector<1x4x128xf32>,
    %35 = vector.extract_strided_slice %14 {offsets = [20, 0], sizes = [4, 128], strides = [1, 1]} : vector<32x128xf32> to vector<4x128xf32>
    %c2_23 = arith.constant 2 : index
    %c4_24 = arith.constant 4 : index
    %c0_25 = arith.constant 0 : index
    %36 = vector.load %arg24[%c2_23, %c4_24, %c0_25] : memref<8x8x128xf32, #tpu.memory_space<vmem>>, vector<1x4x128xf32>
    %37 = vector.shape_cast %36 : vector<1x4x128xf32> to vector<4x128xf32>
    %38 = vector.shape_cast %35 : vector<4x128xf32> to vector<1x4x128xf32>
    tpu.vector_store %arg24[%c2_23, %c4_24, %c0_25], %38 {strides = array<i32>} : memref<8x8x128xf32, #tpu.memory_space<vmem>>, vector<1x4x128xf32>,
    %39 = vector.extract_strided_slice %9 {offsets = [12, 0], sizes = [4, 128], strides = [1, 1]} : vector<32x128xf32> to vector<4x128xf32>
    %c3 = arith.constant 3 : index
    %c0_26 = arith.constant 0 : index
    %c0_27 = arith.constant 0 : index
    %40 = vector.load %arg24[%c3, %c0_26, %c0_27] : memref<8x8x128xf32, #tpu.memory_space<vmem>>, vector<1x4x128xf32>
    %41 = vector.shape_cast %40 : vector<1x4x128xf32> to vector<4x128xf32>
    %42 = vector.shape_cast %39 : vector<4x128xf32> to vector<1x4x128xf32>
    tpu.vector_store %arg24[%c3, %c0_26, %c0_27], %42 {strides = array<i32>} : memref<8x8x128xf32, #tpu.memory_space<vmem>>, vector<1x4x128xf32>,
    %43 = vector.extract_strided_slice %14 {offsets = [16, 0], sizes = [4, 128], strides = [1, 1]} : vector<32x128xf32> to vector<4x128xf32>
    %c3_28 = arith.constant 3 : index
    %c4_29 = arith.constant 4 : index
    %c0_30 = arith.constant 0 : index
    %44 = vector.load %arg24[%c3_28, %c4_29, %c0_30] : memref<8x8x128xf32, #tpu.memory_space<vmem>>, vector<1x4x128xf32>
    %45 = vector.shape_cast %44 : vector<1x4x128xf32> to vector<4x128xf32>
    %46 = vector.shape_cast %43 : vector<4x128xf32> to vector<1x4x128xf32>
    tpu.vector_store %arg24[%c3_28, %c4_29, %c0_30], %46 {strides = array<i32>} : memref<8x8x128xf32, #tpu.memory_space<vmem>>, vector<1x4x128xf32>,
    %47 = vector.extract_strided_slice %9 {offsets = [16, 0], sizes = [4, 128], strides = [1, 1]} : vector<32x128xf32> to vector<4x128xf32>
    %c4_31 = arith.constant 4 : index
    %c0_32 = arith.constant 0 : index
    %c0_33 = arith.constant 0 : index
    %48 = vector.load %arg24[%c4_31, %c0_32, %c0_33] : memref<8x8x128xf32, #tpu.memory_space<vmem>>, vector<1x4x128xf32>
    %49 = vector.shape_cast %48 : vector<1x4x128xf32> to vector<4x128xf32>
    %50 = vector.shape_cast %47 : vector<4x128xf32> to vector<1x4x128xf32>
    tpu.vector_store %arg24[%c4_31, %c0_32, %c0_33], %50 {strides = array<i32>} : memref<8x8x128xf32, #tpu.memory_space<vmem>>, vector<1x4x128xf32>,
    %51 = vector.extract_strided_slice %14 {offsets = [12, 0], sizes = [4, 128], strides = [1, 1]} : vector<32x128xf32> to vector<4x128xf32>
    %c4_34 = arith.constant 4 : index
    %c4_35 = arith.constant 4 : index
    %c0_36 = arith.constant 0 : index
    %52 = vector.load %arg24[%c4_34, %c4_35, %c0_36] : memref<8x8x128xf32, #tpu.memory_space<vmem>>, vector<1x4x128xf32>
    %53 = vector.shape_cast %52 : vector<1x4x128xf32> to vector<4x128xf32>
    %54 = vector.shape_cast %51 : vector<4x128xf32> to vector<1x4x128xf32>
    tpu.vector_store %arg24[%c4_34, %c4_35, %c0_36], %54 {strides = array<i32>} : memref<8x8x128xf32, #tpu.memory_space<vmem>>, vector<1x4x128xf32>,
    %55 = vector.extract_strided_slice %9 {offsets = [20, 0], sizes = [4, 128], strides = [1, 1]} : vector<32x128xf32> to vector<4x128xf32>
    %c5 = arith.constant 5 : index
    %c0_37 = arith.constant 0 : index
    %c0_38 = arith.constant 0 : index
    %56 = vector.load %arg24[%c5, %c0_37, %c0_38] : memref<8x8x128xf32, #tpu.memory_space<vmem>>, vector<1x4x128xf32>
    %57 = vector.shape_cast %56 : vector<1x4x128xf32> to vector<4x128xf32>
    %58 = vector.shape_cast %55 : vector<4x128xf32> to vector<1x4x128xf32>
    tpu.vector_store %arg24[%c5, %c0_37, %c0_38], %58 {strides = array<i32>} : memref<8x8x128xf32, #tpu.memory_space<vmem>>, vector<1x4x128xf32>,
    %59 = vector.extract_strided_slice %14 {offsets = [8, 0], sizes = [4, 128], strides = [1, 1]} : vector<32x128xf32> to vector<4x128xf32>
    %c5_39 = arith.constant 5 : index
    %c4_40 = arith.constant 4 : index
    %c0_41 = arith.constant 0 : index
    %60 = vector.load %arg24[%c5_39, %c4_40, %c0_41] : memref<8x8x128xf32, #tpu.memory_space<vmem>>, vector<1x4x128xf32>
    %61 = vector.shape_cast %60 : vector<1x4x128xf32> to vector<4x128xf32>
    %62 = vector.shape_cast %59 : vector<4x128xf32> to vector<1x4x128xf32>
    tpu.vector_store %arg24[%c5_39, %c4_40, %c0_41], %62 {strides = array<i32>} : memref<8x8x128xf32, #tpu.memory_space<vmem>>, vector<1x4x128xf32>,
    %63 = vector.extract_strided_slice %9 {offsets = [24, 0], sizes = [4, 128], strides = [1, 1]} : vector<32x128xf32> to vector<4x128xf32>
    %c6 = arith.constant 6 : index
    %c0_42 = arith.constant 0 : index
    %c0_43 = arith.constant 0 : index
    %64 = vector.load %arg24[%c6, %c0_42, %c0_43] : memref<8x8x128xf32, #tpu.memory_space<vmem>>, vector<1x4x128xf32>
    %65 = vector.shape_cast %64 : vector<1x4x128xf32> to vector<4x128xf32>
    %66 = vector.shape_cast %63 : vector<4x128xf32> to vector<1x4x128xf32>
    tpu.vector_store %arg24[%c6, %c0_42, %c0_43], %66 {strides = array<i32>} : memref<8x8x128xf32, #tpu.memory_space<vmem>>, vector<1x4x128xf32>,
    %67 = vector.extract_strided_slice %14 {offsets = [4, 0], sizes = [4, 128], strides = [1, 1]} : vector<32x128xf32> to vector<4x128xf32>
    %c6_44 = arith.constant 6 : index
    %c4_45 = arith.constant 4 : index
    %c0_46 = arith.constant 0 : index
    %68 = vector.load %arg24[%c6_44, %c4_45, %c0_46] : memref<8x8x128xf32, #tpu.memory_space<vmem>>, vector<1x4x128xf32>
    %69 = vector.shape_cast %68 : vector<1x4x128xf32> to vector<4x128xf32>
    %70 = vector.shape_cast %67 : vector<4x128xf32> to vector<1x4x128xf32>
    tpu.vector_store %arg24[%c6_44, %c4_45, %c0_46], %70 {strides = array<i32>} : memref<8x8x128xf32, #tpu.memory_space<vmem>>, vector<1x4x128xf32>,
    %71 = vector.extract_strided_slice %9 {offsets = [28, 0], sizes = [4, 128], strides = [1, 1]} : vector<32x128xf32> to vector<4x128xf32>
    %c7 = arith.constant 7 : index
    %c0_47 = arith.constant 0 : index
    %c0_48 = arith.constant 0 : index
    %72 = vector.load %arg24[%c7, %c0_47, %c0_48] : memref<8x8x128xf32, #tpu.memory_space<vmem>>, vector<1x4x128xf32>
    %73 = vector.shape_cast %72 : vector<1x4x128xf32> to vector<4x128xf32>
    %74 = vector.shape_cast %71 : vector<4x128xf32> to vector<1x4x128xf32>
    tpu.vector_store %arg24[%c7, %c0_47, %c0_48], %74 {strides = array<i32>} : memref<8x8x128xf32, #tpu.memory_space<vmem>>, vector<1x4x128xf32>,
    %75 = vector.extract_strided_slice %14 {offsets = [0, 0], sizes = [4, 128], strides = [1, 1]} : vector<32x128xf32> to vector<4x128xf32>
    %c7_49 = arith.constant 7 : index
    %c4_50 = arith.constant 4 : index
    %c0_51 = arith.constant 0 : index
    %76 = vector.load %arg24[%c7_49, %c4_50, %c0_51] : memref<8x8x128xf32, #tpu.memory_space<vmem>>, vector<1x4x128xf32>
    %77 = vector.shape_cast %76 : vector<1x4x128xf32> to vector<4x128xf32>
    %78 = vector.shape_cast %75 : vector<4x128xf32> to vector<1x4x128xf32>
    tpu.vector_store %arg24[%c7_49, %c4_50, %c0_51], %78 {strides = array<i32>} : memref<8x8x128xf32, #tpu.memory_space<vmem>>, vector<1x4x128xf32>,
    %c0_52 = arith.constant 0 : index
    %c0_53 = arith.constant 0 : index
    %79 = vector.load %arg6[%c0_52, %c0_53] : memref<32x256xf32, #tpu.memory_space<vmem>>, vector<32x256xf32>
    %cst_54 = arith.constant 0.000000e+00 : f32
    %80 = vector.broadcast %cst_54 : f32 to vector<8x32xf32>
    %cst_55 = arith.constant 0.000000e+00 : f32
    %81 = vector.broadcast %cst_55 : f32 to vector<8x32xf32>
    %c0_i32 = arith.constant 0 : i32
    %cst_56 = arith.constant dense<0.000000e+00> : vector<8x256xf32>
    %82 = tpu.matmul %80, %79, %cst_56 {dimension_numbers = #tpu.dot_dimension_numbers<[1], [0], [0], [1], [0, 0, 1, 1], [], []>} : vector<8x32xf32>, vector<32x256xf32>, vector<8x256xf32> -> vector<8x256xf32>
    %83 = arith.index_cast %c0_i32 : i32 to index
    %c0_57 = arith.constant 0 : index
    %c0_58 = arith.constant 0 : index
    %84 = vector.load %arg24[%83, %c0_57, %c0_58] : memref<8x8x128xf32, #tpu.memory_space<vmem>>, vector<1x8x128xf32>
    %85 = vector.shape_cast %84 : vector<1x8x128xf32> to vector<8x128xf32>
    %86 = vector.extract_strided_slice %82 {offsets = [0, 0], sizes = [8, 128], strides = [1, 1]} : vector<8x256xf32> to vector<8x128xf32>
    %87 = vector.extract_strided_slice %82 {offsets = [0, 128], sizes = [8, 128], strides = [1, 1]} : vector<8x256xf32> to vector<8x128xf32>
    %88 = arith.select %2, %86, %87 : vector<8x128xi1>, vector<8x128xf32>
    %89 = arith.addf %85, %88 : vector<8x128xf32>
    %90 = arith.negf %89 : vector<8x128xf32>
    %91 = math.exp %90 : vector<8x128xf32>
    %cst_59 = arith.constant 1.000000e+00 : f32
    %92 = vector.broadcast %cst_59 : f32 to vector<8x128xf32>
    %93 = arith.addf %92, %91 : vector<8x128xf32>
    %94 = arith.divf %92, %93 : vector<8x128xf32>
    %95 = vector.extract_strided_slice %94 {offsets = [0, 0], sizes = [8, 32], strides = [1, 1]} : vector<8x128xf32> to vector<8x32xf32>
    %96 = vector.extract_strided_slice %94 {offsets = [0, 32], sizes = [8, 32], strides = [1, 1]} : vector<8x128xf32> to vector<8x32xf32>
    %97 = vector.extract_strided_slice %94 {offsets = [0, 64], sizes = [8, 32], strides = [1, 1]} : vector<8x128xf32> to vector<8x32xf32>
    %cst_60 = arith.constant 2.000000e+00 : f32
    %98 = vector.broadcast %cst_60 : f32 to vector<8x32xf32>
    %99 = arith.mulf %98, %97 : vector<8x32xf32>
    %cst_61 = arith.constant 1.000000e+00 : f32
    %100 = vector.broadcast %cst_61 : f32 to vector<8x32xf32>
    %101 = arith.subf %99, %100 : vector<8x32xf32>
    %102 = vector.extract_strided_slice %94 {offsets = [0, 96], sizes = [8, 32], strides = [1, 1]} : vector<8x128xf32> to vector<8x32xf32>
    %103 = arith.mulf %96, %81 : vector<8x32xf32>
    %104 = arith.mulf %95, %101 : vector<8x32xf32>
    %105 = arith.addf %103, %104 : vector<8x32xf32>
    %106 = math.tanh %105 : vector<8x32xf32>
    %107 = arith.mulf %102, %106 : vector<8x32xf32>
    %108 = vector.extract_strided_slice %107 {offsets = [0, 0], sizes = [4, 32], strides = [1, 1]} : vector<8x32xf32> to vector<4x32xf32>
    %109 = arith.index_cast %c0_i32 : i32 to index
    %c0_62 = arith.constant 0 : index
    %c0_63 = arith.constant 0 : index
    %110 = vector.load %arg25[%109, %c0_62, %c0_63] : memref<8x4x32xf32, #tpu.memory_space<vmem>>, vector<1x4x32xf32>
    %111 = vector.shape_cast %110 : vector<1x4x32xf32> to vector<4x32xf32>
    %112 = vector.shape_cast %108 : vector<4x32xf32> to vector<1x4x32xf32>
    tpu.vector_store %arg25[%109, %c0_62, %c0_63], %112 {strides = array<i32>} : memref<8x4x32xf32, #tpu.memory_space<vmem>>, vector<1x4x32xf32>,
    %113 = vector.extract_strided_slice %107 {offsets = [4, 0], sizes = [4, 32], strides = [1, 1]} : vector<8x32xf32> to vector<4x32xf32>
    %c7_i32 = arith.constant 7 : i32
    %114 = arith.subi %c7_i32, %c0_i32 : i32
    %115 = arith.index_cast %114 : i32 to index
    %c0_64 = arith.constant 0 : index
    %c0_65 = arith.constant 0 : index
    %116 = vector.load %arg26[%115, %c0_64, %c0_65] : memref<8x4x32xf32, #tpu.memory_space<vmem>>, vector<1x4x32xf32>
    %117 = vector.shape_cast %116 : vector<1x4x32xf32> to vector<4x32xf32>
    %118 = vector.shape_cast %113 : vector<4x32xf32> to vector<1x4x32xf32>
    tpu.vector_store %arg26[%115, %c0_64, %c0_65], %118 {strides = array<i32>} : memref<8x4x32xf32, #tpu.memory_space<vmem>>, vector<1x4x32xf32>,
    %c1_i32 = arith.constant 1 : i32
    %cst_66 = arith.constant dense<0.000000e+00> : vector<8x256xf32>
    %119 = tpu.matmul %107, %79, %cst_66 {dimension_numbers = #tpu.dot_dimension_numbers<[1], [0], [0], [1], [0, 0, 1, 1], [], []>} : vector<8x32xf32>, vector<32x256xf32>, vector<8x256xf32> -> vector<8x256xf32>
    %120 = arith.index_cast %c1_i32 : i32 to index
    %c0_67 = arith.constant 0 : index
    %c0_68 = arith.constant 0 : index
    %121 = vector.load %arg24[%120, %c0_67, %c0_68] : memref<8x8x128xf32, #tpu.memory_space<vmem>>, vector<1x8x128xf32>
    %122 = vector.shape_cast %121 : vector<1x8x128xf32> to vector<8x128xf32>
    %123 = vector.extract_strided_slice %119 {offsets = [0, 0], sizes = [8, 128], strides = [1, 1]} : vector<8x256xf32> to vector<8x128xf32>
    %124 = vector.extract_strided_slice %119 {offsets = [0, 128], sizes = [8, 128], strides = [1, 1]} : vector<8x256xf32> to vector<8x128xf32>
    %125 = arith.select %2, %123, %124 : vector<8x128xi1>, vector<8x128xf32>
    %126 = arith.addf %122, %125 : vector<8x128xf32>
    %127 = arith.negf %126 : vector<8x128xf32>
    %128 = math.exp %127 : vector<8x128xf32>
    %cst_69 = arith.constant 1.000000e+00 : f32
    %129 = vector.broadcast %cst_69 : f32 to vector<8x128xf32>
    %130 = arith.addf %129, %128 : vector<8x128xf32>
    %131 = arith.divf %129, %130 : vector<8x128xf32>
    %132 = vector.extract_strided_slice %131 {offsets = [0, 0], sizes = [8, 32], strides = [1, 1]} : vector<8x128xf32> to vector<8x32xf32>
    %133 = vector.extract_strided_slice %131 {offsets = [0, 32], sizes = [8, 32], strides = [1, 1]} : vector<8x128xf32> to vector<8x32xf32>
    %134 = vector.extract_strided_slice %131 {offsets = [0, 64], sizes = [8, 32], strides = [1, 1]} : vector<8x128xf32> to vector<8x32xf32>
    %cst_70 = arith.constant 2.000000e+00 : f32
    %135 = vector.broadcast %cst_70 : f32 to vector<8x32xf32>
    %136 = arith.mulf %135, %134 : vector<8x32xf32>
    %cst_71 = arith.constant 1.000000e+00 : f32
    %137 = vector.broadcast %cst_71 : f32 to vector<8x32xf32>
    %138 = arith.subf %136, %137 : vector<8x32xf32>
    %139 = vector.extract_strided_slice %131 {offsets = [0, 96], sizes = [8, 32], strides = [1, 1]} : vector<8x128xf32> to vector<8x32xf32>
    %140 = arith.mulf %133, %105 : vector<8x32xf32>
    %141 = arith.mulf %132, %138 : vector<8x32xf32>
    %142 = arith.addf %140, %141 : vector<8x32xf32>
    %143 = math.tanh %142 : vector<8x32xf32>
    %144 = arith.mulf %139, %143 : vector<8x32xf32>
    %145 = vector.extract_strided_slice %144 {offsets = [0, 0], sizes = [4, 32], strides = [1, 1]} : vector<8x32xf32> to vector<4x32xf32>
    %146 = arith.index_cast %c1_i32 : i32 to index
    %c0_72 = arith.constant 0 : index
    %c0_73 = arith.constant 0 : index
    %147 = vector.load %arg25[%146, %c0_72, %c0_73] : memref<8x4x32xf32, #tpu.memory_space<vmem>>, vector<1x4x32xf32>
    %148 = vector.shape_cast %147 : vector<1x4x32xf32> to vector<4x32xf32>
    %149 = vector.shape_cast %145 : vector<4x32xf32> to vector<1x4x32xf32>
    tpu.vector_store %arg25[%146, %c0_72, %c0_73], %149 {strides = array<i32>} : memref<8x4x32xf32, #tpu.memory_space<vmem>>, vector<1x4x32xf32>,
    %150 = vector.extract_strided_slice %144 {offsets = [4, 0], sizes = [4, 32], strides = [1, 1]} : vector<8x32xf32> to vector<4x32xf32>
    %c7_i32_74 = arith.constant 7 : i32
    %151 = arith.subi %c7_i32_74, %c1_i32 : i32
    %152 = arith.index_cast %151 : i32 to index
    %c0_75 = arith.constant 0 : index
    %c0_76 = arith.constant 0 : index
    %153 = vector.load %arg26[%152, %c0_75, %c0_76] : memref<8x4x32xf32, #tpu.memory_space<vmem>>, vector<1x4x32xf32>
    %154 = vector.shape_cast %153 : vector<1x4x32xf32> to vector<4x32xf32>
    %155 = vector.shape_cast %150 : vector<4x32xf32> to vector<1x4x32xf32>
    tpu.vector_store %arg26[%152, %c0_75, %c0_76], %155 {strides = array<i32>} : memref<8x4x32xf32, #tpu.memory_space<vmem>>, vector<1x4x32xf32>,
    %c2_i32 = arith.constant 2 : i32
    %cst_77 = arith.constant dense<0.000000e+00> : vector<8x256xf32>
    %156 = tpu.matmul %144, %79, %cst_77 {dimension_numbers = #tpu.dot_dimension_numbers<[1], [0], [0], [1], [0, 0, 1, 1], [], []>} : vector<8x32xf32>, vector<32x256xf32>, vector<8x256xf32> -> vector<8x256xf32>
    %157 = arith.index_cast %c2_i32 : i32 to index
    %c0_78 = arith.constant 0 : index
    %c0_79 = arith.constant 0 : index
    %158 = vector.load %arg24[%157, %c0_78, %c0_79] : memref<8x8x128xf32, #tpu.memory_space<vmem>>, vector<1x8x128xf32>
    %159 = vector.shape_cast %158 : vector<1x8x128xf32> to vector<8x128xf32>
    %160 = vector.extract_strided_slice %156 {offsets = [0, 0], sizes = [8, 128], strides = [1, 1]} : vector<8x256xf32> to vector<8x128xf32>
    %161 = vector.extract_strided_slice %156 {offsets = [0, 128], sizes = [8, 128], strides = [1, 1]} : vector<8x256xf32> to vector<8x128xf32>
    %162 = arith.select %2, %160, %161 : vector<8x128xi1>, vector<8x128xf32>
    %163 = arith.addf %159, %162 : vector<8x128xf32>
    %164 = arith.negf %163 : vector<8x128xf32>
    %165 = math.exp %164 : vector<8x128xf32>
    %cst_80 = arith.constant 1.000000e+00 : f32
    %166 = vector.broadcast %cst_80 : f32 to vector<8x128xf32>
    %167 = arith.addf %166, %165 : vector<8x128xf32>
    %168 = arith.divf %166, %167 : vector<8x128xf32>
    %169 = vector.extract_strided_slice %168 {offsets = [0, 0], sizes = [8, 32], strides = [1, 1]} : vector<8x128xf32> to vector<8x32xf32>
    %170 = vector.extract_strided_slice %168 {offsets = [0, 32], sizes = [8, 32], strides = [1, 1]} : vector<8x128xf32> to vector<8x32xf32>
    %171 = vector.extract_strided_slice %168 {offsets = [0, 64], sizes = [8, 32], strides = [1, 1]} : vector<8x128xf32> to vector<8x32xf32>
    %cst_81 = arith.constant 2.000000e+00 : f32
    %172 = vector.broadcast %cst_81 : f32 to vector<8x32xf32>
    %173 = arith.mulf %172, %171 : vector<8x32xf32>
    %cst_82 = arith.constant 1.000000e+00 : f32
    %174 = vector.broadcast %cst_82 : f32 to vector<8x32xf32>
    %175 = arith.subf %173, %174 : vector<8x32xf32>
    %176 = vector.extract_strided_slice %168 {offsets = [0, 96], sizes = [8, 32], strides = [1, 1]} : vector<8x128xf32> to vector<8x32xf32>
    %177 = arith.mulf %170, %142 : vector<8x32xf32>
    %178 = arith.mulf %169, %175 : vector<8x32xf32>
    %179 = arith.addf %177, %178 : vector<8x32xf32>
    %180 = math.tanh %179 : vector<8x32xf32>
    %181 = arith.mulf %176, %180 : vector<8x32xf32>
    %182 = vector.extract_strided_slice %181 {offsets = [0, 0], sizes = [4, 32], strides = [1, 1]} : vector<8x32xf32> to vector<4x32xf32>
    %183 = arith.index_cast %c2_i32 : i32 to index
    %c0_83 = arith.constant 0 : index
    %c0_84 = arith.constant 0 : index
    %184 = vector.load %arg25[%183, %c0_83, %c0_84] : memref<8x4x32xf32, #tpu.memory_space<vmem>>, vector<1x4x32xf32>
    %185 = vector.shape_cast %184 : vector<1x4x32xf32> to vector<4x32xf32>
    %186 = vector.shape_cast %182 : vector<4x32xf32> to vector<1x4x32xf32>
    tpu.vector_store %arg25[%183, %c0_83, %c0_84], %186 {strides = array<i32>} : memref<8x4x32xf32, #tpu.memory_space<vmem>>, vector<1x4x32xf32>,
    %187 = vector.extract_strided_slice %181 {offsets = [4, 0], sizes = [4, 32], strides = [1, 1]} : vector<8x32xf32> to vector<4x32xf32>
    %c7_i32_85 = arith.constant 7 : i32
    %188 = arith.subi %c7_i32_85, %c2_i32 : i32
    %189 = arith.index_cast %188 : i32 to index
    %c0_86 = arith.constant 0 : index
    %c0_87 = arith.constant 0 : index
    %190 = vector.load %arg26[%189, %c0_86, %c0_87] : memref<8x4x32xf32, #tpu.memory_space<vmem>>, vector<1x4x32xf32>
    %191 = vector.shape_cast %190 : vector<1x4x32xf32> to vector<4x32xf32>
    %192 = vector.shape_cast %187 : vector<4x32xf32> to vector<1x4x32xf32>
    tpu.vector_store %arg26[%189, %c0_86, %c0_87], %192 {strides = array<i32>} : memref<8x4x32xf32, #tpu.memory_space<vmem>>, vector<1x4x32xf32>,
    %c3_i32 = arith.constant 3 : i32
    %cst_88 = arith.constant dense<0.000000e+00> : vector<8x256xf32>
    %193 = tpu.matmul %181, %79, %cst_88 {dimension_numbers = #tpu.dot_dimension_numbers<[1], [0], [0], [1], [0, 0, 1, 1], [], []>} : vector<8x32xf32>, vector<32x256xf32>, vector<8x256xf32> -> vector<8x256xf32>
    %194 = arith.index_cast %c3_i32 : i32 to index
    %c0_89 = arith.constant 0 : index
    %c0_90 = arith.constant 0 : index
    %195 = vector.load %arg24[%194, %c0_89, %c0_90] : memref<8x8x128xf32, #tpu.memory_space<vmem>>, vector<1x8x128xf32>
    %196 = vector.shape_cast %195 : vector<1x8x128xf32> to vector<8x128xf32>
    %197 = vector.extract_strided_slice %193 {offsets = [0, 0], sizes = [8, 128], strides = [1, 1]} : vector<8x256xf32> to vector<8x128xf32>
    %198 = vector.extract_strided_slice %193 {offsets = [0, 128], sizes = [8, 128], strides = [1, 1]} : vector<8x256xf32> to vector<8x128xf32>
    %199 = arith.select %2, %197, %198 : vector<8x128xi1>, vector<8x128xf32>
    %200 = arith.addf %196, %199 : vector<8x128xf32>
    %201 = arith.negf %200 : vector<8x128xf32>
    %202 = math.exp %201 : vector<8x128xf32>
    %cst_91 = arith.constant 1.000000e+00 : f32
    %203 = vector.broadcast %cst_91 : f32 to vector<8x128xf32>
    %204 = arith.addf %203, %202 : vector<8x128xf32>
    %205 = arith.divf %203, %204 : vector<8x128xf32>
    %206 = vector.extract_strided_slice %205 {offsets = [0, 0], sizes = [8, 32], strides = [1, 1]} : vector<8x128xf32> to vector<8x32xf32>
    %207 = vector.extract_strided_slice %205 {offsets = [0, 32], sizes = [8, 32], strides = [1, 1]} : vector<8x128xf32> to vector<8x32xf32>
    %208 = vector.extract_strided_slice %205 {offsets = [0, 64], sizes = [8, 32], strides = [1, 1]} : vector<8x128xf32> to vector<8x32xf32>
    %cst_92 = arith.constant 2.000000e+00 : f32
    %209 = vector.broadcast %cst_92 : f32 to vector<8x32xf32>
    %210 = arith.mulf %209, %208 : vector<8x32xf32>
    %cst_93 = arith.constant 1.000000e+00 : f32
    %211 = vector.broadcast %cst_93 : f32 to vector<8x32xf32>
    %212 = arith.subf %210, %211 : vector<8x32xf32>
    %213 = vector.extract_strided_slice %205 {offsets = [0, 96], sizes = [8, 32], strides = [1, 1]} : vector<8x128xf32> to vector<8x32xf32>
    %214 = arith.mulf %207, %179 : vector<8x32xf32>
    %215 = arith.mulf %206, %212 : vector<8x32xf32>
    %216 = arith.addf %214, %215 : vector<8x32xf32>
    %217 = math.tanh %216 : vector<8x32xf32>
    %218 = arith.mulf %213, %217 : vector<8x32xf32>
    %219 = vector.extract_strided_slice %218 {offsets = [0, 0], sizes = [4, 32], strides = [1, 1]} : vector<8x32xf32> to vector<4x32xf32>
    %220 = arith.index_cast %c3_i32 : i32 to index
    %c0_94 = arith.constant 0 : index
    %c0_95 = arith.constant 0 : index
    %221 = vector.load %arg25[%220, %c0_94, %c0_95] : memref<8x4x32xf32, #tpu.memory_space<vmem>>, vector<1x4x32xf32>
    %222 = vector.shape_cast %221 : vector<1x4x32xf32> to vector<4x32xf32>
    %223 = vector.shape_cast %219 : vector<4x32xf32> to vector<1x4x32xf32>
    tpu.vector_store %arg25[%220, %c0_94, %c0_95], %223 {strides = array<i32>} : memref<8x4x32xf32, #tpu.memory_space<vmem>>, vector<1x4x32xf32>,
    %224 = vector.extract_strided_slice %218 {offsets = [4, 0], sizes = [4, 32], strides = [1, 1]} : vector<8x32xf32> to vector<4x32xf32>
    %c7_i32_96 = arith.constant 7 : i32
    %225 = arith.subi %c7_i32_96, %c3_i32 : i32
    %226 = arith.index_cast %225 : i32 to index
    %c0_97 = arith.constant 0 : index
    %c0_98 = arith.constant 0 : index
    %227 = vector.load %arg26[%226, %c0_97, %c0_98] : memref<8x4x32xf32, #tpu.memory_space<vmem>>, vector<1x4x32xf32>
    %228 = vector.shape_cast %227 : vector<1x4x32xf32> to vector<4x32xf32>
    %229 = vector.shape_cast %224 : vector<4x32xf32> to vector<1x4x32xf32>
    tpu.vector_store %arg26[%226, %c0_97, %c0_98], %229 {strides = array<i32>} : memref<8x4x32xf32, #tpu.memory_space<vmem>>, vector<1x4x32xf32>,
    %c4_i32_99 = arith.constant 4 : i32
    %cst_100 = arith.constant dense<0.000000e+00> : vector<8x256xf32>
    %230 = tpu.matmul %218, %79, %cst_100 {dimension_numbers = #tpu.dot_dimension_numbers<[1], [0], [0], [1], [0, 0, 1, 1], [], []>} : vector<8x32xf32>, vector<32x256xf32>, vector<8x256xf32> -> vector<8x256xf32>
    %231 = arith.index_cast %c4_i32_99 : i32 to index
    %c0_101 = arith.constant 0 : index
    %c0_102 = arith.constant 0 : index
    %232 = vector.load %arg24[%231, %c0_101, %c0_102] : memref<8x8x128xf32, #tpu.memory_space<vmem>>, vector<1x8x128xf32>
    %233 = vector.shape_cast %232 : vector<1x8x128xf32> to vector<8x128xf32>
    %234 = vector.extract_strided_slice %230 {offsets = [0, 0], sizes = [8, 128], strides = [1, 1]} : vector<8x256xf32> to vector<8x128xf32>
    %235 = vector.extract_strided_slice %230 {offsets = [0, 128], sizes = [8, 128], strides = [1, 1]} : vector<8x256xf32> to vector<8x128xf32>
    %236 = arith.select %2, %234, %235 : vector<8x128xi1>, vector<8x128xf32>
    %237 = arith.addf %233, %236 : vector<8x128xf32>
    %238 = arith.negf %237 : vector<8x128xf32>
    %239 = math.exp %238 : vector<8x128xf32>
    %cst_103 = arith.constant 1.000000e+00 : f32
    %240 = vector.broadcast %cst_103 : f32 to vector<8x128xf32>
    %241 = arith.addf %240, %239 : vector<8x128xf32>
    %242 = arith.divf %240, %241 : vector<8x128xf32>
    %243 = vector.extract_strided_slice %242 {offsets = [0, 0], sizes = [8, 32], strides = [1, 1]} : vector<8x128xf32> to vector<8x32xf32>
    %244 = vector.extract_strided_slice %242 {offsets = [0, 32], sizes = [8, 32], strides = [1, 1]} : vector<8x128xf32> to vector<8x32xf32>
    %245 = vector.extract_strided_slice %242 {offsets = [0, 64], sizes = [8, 32], strides = [1, 1]} : vector<8x128xf32> to vector<8x32xf32>
    %cst_104 = arith.constant 2.000000e+00 : f32
    %246 = vector.broadcast %cst_104 : f32 to vector<8x32xf32>
    %247 = arith.mulf %246, %245 : vector<8x32xf32>
    %cst_105 = arith.constant 1.000000e+00 : f32
    %248 = vector.broadcast %cst_105 : f32 to vector<8x32xf32>
    %249 = arith.subf %247, %248 : vector<8x32xf32>
    %250 = vector.extract_strided_slice %242 {offsets = [0, 96], sizes = [8, 32], strides = [1, 1]} : vector<8x128xf32> to vector<8x32xf32>
    %251 = arith.mulf %244, %216 : vector<8x32xf32>
    %252 = arith.mulf %243, %249 : vector<8x32xf32>
    %253 = arith.addf %251, %252 : vector<8x32xf32>
    %254 = math.tanh %253 : vector<8x32xf32>
    %255 = arith.mulf %250, %254 : vector<8x32xf32>
    %256 = vector.extract_strided_slice %255 {offsets = [0, 0], sizes = [4, 32], strides = [1, 1]} : vector<8x32xf32> to vector<4x32xf32>
    %257 = arith.index_cast %c4_i32_99 : i32 to index
    %c0_106 = arith.constant 0 : index
    %c0_107 = arith.constant 0 : index
    %258 = vector.load %arg25[%257, %c0_106, %c0_107] : memref<8x4x32xf32, #tpu.memory_space<vmem>>, vector<1x4x32xf32>
    %259 = vector.shape_cast %258 : vector<1x4x32xf32> to vector<4x32xf32>
    %260 = vector.shape_cast %256 : vector<4x32xf32> to vector<1x4x32xf32>
    tpu.vector_store %arg25[%257, %c0_106, %c0_107], %260 {strides = array<i32>} : memref<8x4x32xf32, #tpu.memory_space<vmem>>, vector<1x4x32xf32>,
    %261 = vector.extract_strided_slice %255 {offsets = [4, 0], sizes = [4, 32], strides = [1, 1]} : vector<8x32xf32> to vector<4x32xf32>
    %c7_i32_108 = arith.constant 7 : i32
    %262 = arith.subi %c7_i32_108, %c4_i32_99 : i32
    %263 = arith.index_cast %262 : i32 to index
    %c0_109 = arith.constant 0 : index
    %c0_110 = arith.constant 0 : index
    %264 = vector.load %arg26[%263, %c0_109, %c0_110] : memref<8x4x32xf32, #tpu.memory_space<vmem>>, vector<1x4x32xf32>
    %265 = vector.shape_cast %264 : vector<1x4x32xf32> to vector<4x32xf32>
    %266 = vector.shape_cast %261 : vector<4x32xf32> to vector<1x4x32xf32>
    tpu.vector_store %arg26[%263, %c0_109, %c0_110], %266 {strides = array<i32>} : memref<8x4x32xf32, #tpu.memory_space<vmem>>, vector<1x4x32xf32>,
    %c5_i32 = arith.constant 5 : i32
    %cst_111 = arith.constant dense<0.000000e+00> : vector<8x256xf32>
    %267 = tpu.matmul %255, %79, %cst_111 {dimension_numbers = #tpu.dot_dimension_numbers<[1], [0], [0], [1], [0, 0, 1, 1], [], []>} : vector<8x32xf32>, vector<32x256xf32>, vector<8x256xf32> -> vector<8x256xf32>
    %268 = arith.index_cast %c5_i32 : i32 to index
    %c0_112 = arith.constant 0 : index
    %c0_113 = arith.constant 0 : index
    %269 = vector.load %arg24[%268, %c0_112, %c0_113] : memref<8x8x128xf32, #tpu.memory_space<vmem>>, vector<1x8x128xf32>
    %270 = vector.shape_cast %269 : vector<1x8x128xf32> to vector<8x128xf32>
    %271 = vector.extract_strided_slice %267 {offsets = [0, 0], sizes = [8, 128], strides = [1, 1]} : vector<8x256xf32> to vector<8x128xf32>
    %272 = vector.extract_strided_slice %267 {offsets = [0, 128], sizes = [8, 128], strides = [1, 1]} : vector<8x256xf32> to vector<8x128xf32>
    %273 = arith.select %2, %271, %272 : vector<8x128xi1>, vector<8x128xf32>
    %274 = arith.addf %270, %273 : vector<8x128xf32>
    %275 = arith.negf %274 : vector<8x128xf32>
    %276 = math.exp %275 : vector<8x128xf32>
    %cst_114 = arith.constant 1.000000e+00 : f32
    %277 = vector.broadcast %cst_114 : f32 to vector<8x128xf32>
    %278 = arith.addf %277, %276 : vector<8x128xf32>
    %279 = arith.divf %277, %278 : vector<8x128xf32>
    %280 = vector.extract_strided_slice %279 {offsets = [0, 0], sizes = [8, 32], strides = [1, 1]} : vector<8x128xf32> to vector<8x32xf32>
    %281 = vector.extract_strided_slice %279 {offsets = [0, 32], sizes = [8, 32], strides = [1, 1]} : vector<8x128xf32> to vector<8x32xf32>
    %282 = vector.extract_strided_slice %279 {offsets = [0, 64], sizes = [8, 32], strides = [1, 1]} : vector<8x128xf32> to vector<8x32xf32>
    %cst_115 = arith.constant 2.000000e+00 : f32
    %283 = vector.broadcast %cst_115 : f32 to vector<8x32xf32>
    %284 = arith.mulf %283, %282 : vector<8x32xf32>
    %cst_116 = arith.constant 1.000000e+00 : f32
    %285 = vector.broadcast %cst_116 : f32 to vector<8x32xf32>
    %286 = arith.subf %284, %285 : vector<8x32xf32>
    %287 = vector.extract_strided_slice %279 {offsets = [0, 96], sizes = [8, 32], strides = [1, 1]} : vector<8x128xf32> to vector<8x32xf32>
    %288 = arith.mulf %281, %253 : vector<8x32xf32>
    %289 = arith.mulf %280, %286 : vector<8x32xf32>
    %290 = arith.addf %288, %289 : vector<8x32xf32>
    %291 = math.tanh %290 : vector<8x32xf32>
    %292 = arith.mulf %287, %291 : vector<8x32xf32>
    %293 = vector.extract_strided_slice %292 {offsets = [0, 0], sizes = [4, 32], strides = [1, 1]} : vector<8x32xf32> to vector<4x32xf32>
    %294 = arith.index_cast %c5_i32 : i32 to index
    %c0_117 = arith.constant 0 : index
    %c0_118 = arith.constant 0 : index
    %295 = vector.load %arg25[%294, %c0_117, %c0_118] : memref<8x4x32xf32, #tpu.memory_space<vmem>>, vector<1x4x32xf32>
    %296 = vector.shape_cast %295 : vector<1x4x32xf32> to vector<4x32xf32>
    %297 = vector.shape_cast %293 : vector<4x32xf32> to vector<1x4x32xf32>
    tpu.vector_store %arg25[%294, %c0_117, %c0_118], %297 {strides = array<i32>} : memref<8x4x32xf32, #tpu.memory_space<vmem>>, vector<1x4x32xf32>,
    %298 = vector.extract_strided_slice %292 {offsets = [4, 0], sizes = [4, 32], strides = [1, 1]} : vector<8x32xf32> to vector<4x32xf32>
    %c7_i32_119 = arith.constant 7 : i32
    %299 = arith.subi %c7_i32_119, %c5_i32 : i32
    %300 = arith.index_cast %299 : i32 to index
    %c0_120 = arith.constant 0 : index
    %c0_121 = arith.constant 0 : index
    %301 = vector.load %arg26[%300, %c0_120, %c0_121] : memref<8x4x32xf32, #tpu.memory_space<vmem>>, vector<1x4x32xf32>
    %302 = vector.shape_cast %301 : vector<1x4x32xf32> to vector<4x32xf32>
    %303 = vector.shape_cast %298 : vector<4x32xf32> to vector<1x4x32xf32>
    tpu.vector_store %arg26[%300, %c0_120, %c0_121], %303 {strides = array<i32>} : memref<8x4x32xf32, #tpu.memory_space<vmem>>, vector<1x4x32xf32>,
    %c6_i32 = arith.constant 6 : i32
    %cst_122 = arith.constant dense<0.000000e+00> : vector<8x256xf32>
    %304 = tpu.matmul %292, %79, %cst_122 {dimension_numbers = #tpu.dot_dimension_numbers<[1], [0], [0], [1], [0, 0, 1, 1], [], []>} : vector<8x32xf32>, vector<32x256xf32>, vector<8x256xf32> -> vector<8x256xf32>
    %305 = arith.index_cast %c6_i32 : i32 to index
    %c0_123 = arith.constant 0 : index
    %c0_124 = arith.constant 0 : index
    %306 = vector.load %arg24[%305, %c0_123, %c0_124] : memref<8x8x128xf32, #tpu.memory_space<vmem>>, vector<1x8x128xf32>
    %307 = vector.shape_cast %306 : vector<1x8x128xf32> to vector<8x128xf32>
    %308 = vector.extract_strided_slice %304 {offsets = [0, 0], sizes = [8, 128], strides = [1, 1]} : vector<8x256xf32> to vector<8x128xf32>
    %309 = vector.extract_strided_slice %304 {offsets = [0, 128], sizes = [8, 128], strides = [1, 1]} : vector<8x256xf32> to vector<8x128xf32>
    %310 = arith.select %2, %308, %309 : vector<8x128xi1>, vector<8x128xf32>
    %311 = arith.addf %307, %310 : vector<8x128xf32>
    %312 = arith.negf %311 : vector<8x128xf32>
    %313 = math.exp %312 : vector<8x128xf32>
    %cst_125 = arith.constant 1.000000e+00 : f32
    %314 = vector.broadcast %cst_125 : f32 to vector<8x128xf32>
    %315 = arith.addf %314, %313 : vector<8x128xf32>
    %316 = arith.divf %314, %315 : vector<8x128xf32>
    %317 = vector.extract_strided_slice %316 {offsets = [0, 0], sizes = [8, 32], strides = [1, 1]} : vector<8x128xf32> to vector<8x32xf32>
    %318 = vector.extract_strided_slice %316 {offsets = [0, 32], sizes = [8, 32], strides = [1, 1]} : vector<8x128xf32> to vector<8x32xf32>
    %319 = vector.extract_strided_slice %316 {offsets = [0, 64], sizes = [8, 32], strides = [1, 1]} : vector<8x128xf32> to vector<8x32xf32>
    %cst_126 = arith.constant 2.000000e+00 : f32
    %320 = vector.broadcast %cst_126 : f32 to vector<8x32xf32>
    %321 = arith.mulf %320, %319 : vector<8x32xf32>
    %cst_127 = arith.constant 1.000000e+00 : f32
    %322 = vector.broadcast %cst_127 : f32 to vector<8x32xf32>
    %323 = arith.subf %321, %322 : vector<8x32xf32>
    %324 = vector.extract_strided_slice %316 {offsets = [0, 96], sizes = [8, 32], strides = [1, 1]} : vector<8x128xf32> to vector<8x32xf32>
    %325 = arith.mulf %318, %290 : vector<8x32xf32>
    %326 = arith.mulf %317, %323 : vector<8x32xf32>
    %327 = arith.addf %325, %326 : vector<8x32xf32>
    %328 = math.tanh %327 : vector<8x32xf32>
    %329 = arith.mulf %324, %328 : vector<8x32xf32>
    %330 = vector.extract_strided_slice %329 {offsets = [0, 0], sizes = [4, 32], strides = [1, 1]} : vector<8x32xf32> to vector<4x32xf32>
    %331 = arith.index_cast %c6_i32 : i32 to index
    %c0_128 = arith.constant 0 : index
    %c0_129 = arith.constant 0 : index
    %332 = vector.load %arg25[%331, %c0_128, %c0_129] : memref<8x4x32xf32, #tpu.memory_space<vmem>>, vector<1x4x32xf32>
    %333 = vector.shape_cast %332 : vector<1x4x32xf32> to vector<4x32xf32>
    %334 = vector.shape_cast %330 : vector<4x32xf32> to vector<1x4x32xf32>
    tpu.vector_store %arg25[%331, %c0_128, %c0_129], %334 {strides = array<i32>} : memref<8x4x32xf32, #tpu.memory_space<vmem>>, vector<1x4x32xf32>,
    %335 = vector.extract_strided_slice %329 {offsets = [4, 0], sizes = [4, 32], strides = [1, 1]} : vector<8x32xf32> to vector<4x32xf32>
    %c7_i32_130 = arith.constant 7 : i32
    %336 = arith.subi %c7_i32_130, %c6_i32 : i32
    %337 = arith.index_cast %336 : i32 to index
    %c0_131 = arith.constant 0 : index
    %c0_132 = arith.constant 0 : index
    %338 = vector.load %arg26[%337, %c0_131, %c0_132] : memref<8x4x32xf32, #tpu.memory_space<vmem>>, vector<1x4x32xf32>
    %339 = vector.shape_cast %338 : vector<1x4x32xf32> to vector<4x32xf32>
    %340 = vector.shape_cast %335 : vector<4x32xf32> to vector<1x4x32xf32>
    tpu.vector_store %arg26[%337, %c0_131, %c0_132], %340 {strides = array<i32>} : memref<8x4x32xf32, #tpu.memory_space<vmem>>, vector<1x4x32xf32>,
    %c7_i32_133 = arith.constant 7 : i32
    %cst_134 = arith.constant dense<0.000000e+00> : vector<8x256xf32>
    %341 = tpu.matmul %329, %79, %cst_134 {dimension_numbers = #tpu.dot_dimension_numbers<[1], [0], [0], [1], [0, 0, 1, 1], [], []>} : vector<8x32xf32>, vector<32x256xf32>, vector<8x256xf32> -> vector<8x256xf32>
    %342 = arith.index_cast %c7_i32_133 : i32 to index
    %c0_135 = arith.constant 0 : index
    %c0_136 = arith.constant 0 : index
    %343 = vector.load %arg24[%342, %c0_135, %c0_136] : memref<8x8x128xf32, #tpu.memory_space<vmem>>, vector<1x8x128xf32>
    %344 = vector.shape_cast %343 : vector<1x8x128xf32> to vector<8x128xf32>
    %345 = vector.extract_strided_slice %341 {offsets = [0, 0], sizes = [8, 128], strides = [1, 1]} : vector<8x256xf32> to vector<8x128xf32>
    %346 = vector.extract_strided_slice %341 {offsets = [0, 128], sizes = [8, 128], strides = [1, 1]} : vector<8x256xf32> to vector<8x128xf32>
    %347 = arith.select %2, %345, %346 : vector<8x128xi1>, vector<8x128xf32>
    %348 = arith.addf %344, %347 : vector<8x128xf32>
    %349 = arith.negf %348 : vector<8x128xf32>
    %350 = math.exp %349 : vector<8x128xf32>
    %cst_137 = arith.constant 1.000000e+00 : f32
    %351 = vector.broadcast %cst_137 : f32 to vector<8x128xf32>
    %352 = arith.addf %351, %350 : vector<8x128xf32>
    %353 = arith.divf %351, %352 : vector<8x128xf32>
    %354 = vector.extract_strided_slice %353 {offsets = [0, 0], sizes = [8, 32], strides = [1, 1]} : vector<8x128xf32> to vector<8x32xf32>
    %355 = vector.extract_strided_slice %353 {offsets = [0, 32], sizes = [8, 32], strides = [1, 1]} : vector<8x128xf32> to vector<8x32xf32>
    %356 = vector.extract_strided_slice %353 {offsets = [0, 64], sizes = [8, 32], strides = [1, 1]} : vector<8x128xf32> to vector<8x32xf32>
    %cst_138 = arith.constant 2.000000e+00 : f32
    %357 = vector.broadcast %cst_138 : f32 to vector<8x32xf32>
    %358 = arith.mulf %357, %356 : vector<8x32xf32>
    %cst_139 = arith.constant 1.000000e+00 : f32
    %359 = vector.broadcast %cst_139 : f32 to vector<8x32xf32>
    %360 = arith.subf %358, %359 : vector<8x32xf32>
    %361 = vector.extract_strided_slice %353 {offsets = [0, 96], sizes = [8, 32], strides = [1, 1]} : vector<8x128xf32> to vector<8x32xf32>
    %362 = arith.mulf %355, %327 : vector<8x32xf32>
    %363 = arith.mulf %354, %360 : vector<8x32xf32>
    %364 = arith.addf %362, %363 : vector<8x32xf32>
    %365 = math.tanh %364 : vector<8x32xf32>
    %366 = arith.mulf %361, %365 : vector<8x32xf32>
    %367 = vector.extract_strided_slice %366 {offsets = [0, 0], sizes = [4, 32], strides = [1, 1]} : vector<8x32xf32> to vector<4x32xf32>
    %368 = arith.index_cast %c7_i32_133 : i32 to index
    %c0_140 = arith.constant 0 : index
    %c0_141 = arith.constant 0 : index
    %369 = vector.load %arg25[%368, %c0_140, %c0_141] : memref<8x4x32xf32, #tpu.memory_space<vmem>>, vector<1x4x32xf32>
    %370 = vector.shape_cast %369 : vector<1x4x32xf32> to vector<4x32xf32>
    %371 = vector.shape_cast %367 : vector<4x32xf32> to vector<1x4x32xf32>
    tpu.vector_store %arg25[%368, %c0_140, %c0_141], %371 {strides = array<i32>} : memref<8x4x32xf32, #tpu.memory_space<vmem>>, vector<1x4x32xf32>,
    %372 = vector.extract_strided_slice %366 {offsets = [4, 0], sizes = [4, 32], strides = [1, 1]} : vector<8x32xf32> to vector<4x32xf32>
    %c7_i32_142 = arith.constant 7 : i32
    %373 = arith.subi %c7_i32_142, %c7_i32_133 : i32
    %374 = arith.index_cast %373 : i32 to index
    %c0_143 = arith.constant 0 : index
    %c0_144 = arith.constant 0 : index
    %375 = vector.load %arg26[%374, %c0_143, %c0_144] : memref<8x4x32xf32, #tpu.memory_space<vmem>>, vector<1x4x32xf32>
    %376 = vector.shape_cast %375 : vector<1x4x32xf32> to vector<4x32xf32>
    %377 = vector.shape_cast %372 : vector<4x32xf32> to vector<1x4x32xf32>
    tpu.vector_store %arg26[%374, %c0_143, %c0_144], %377 {strides = array<i32>} : memref<8x4x32xf32, #tpu.memory_space<vmem>>, vector<1x4x32xf32>,
    %c8_i32 = arith.constant 8 : i32
    %378 = vector.extract_strided_slice %366 {offsets = [0, 0], sizes = [4, 32], strides = [1, 1]} : vector<8x32xf32> to vector<4x32xf32>
    %379 = vector.extract_strided_slice %366 {offsets = [4, 0], sizes = [4, 32], strides = [1, 1]} : vector<8x32xf32> to vector<4x32xf32>
    %380 = vector.extract_strided_slice %364 {offsets = [0, 0], sizes = [4, 32], strides = [1, 1]} : vector<8x32xf32> to vector<4x32xf32>
    %381 = vector.extract_strided_slice %364 {offsets = [4, 0], sizes = [4, 32], strides = [1, 1]} : vector<8x32xf32> to vector<4x32xf32>
    %c0_145 = arith.constant 0 : index
    %c0_146 = arith.constant 0 : index
    %c0_147 = arith.constant 0 : index
    %382 = vector.load %arg25[%c0_145, %c0_146, %c0_147] : memref<8x4x32xf32, #tpu.memory_space<vmem>>, vector<8x4x32xf32>
    %c0_148 = arith.constant 0 : index
    %c0_149 = arith.constant 0 : index
    %c0_150 = arith.constant 0 : index
    %383 = vector.load %arg26[%c0_148, %c0_149, %c0_150] : memref<8x4x32xf32, #tpu.memory_space<vmem>>, vector<8x4x32xf32>
    %384 = tpu.concatenate %382, %383 in 2 : vector<8x4x32xf32>, vector<8x4x32xf32> -> vector<8x4x64xf32>
    %385 = vector.shape_cast %384 : vector<8x4x64xf32> to vector<32x64xf32>
    %c0_151 = arith.constant 0 : index
    %c0_152 = arith.constant 0 : index
    %386 = vector.load %arg7[%c0_151, %c0_152] : memref<64x128xf32, #tpu.memory_space<vmem>>, vector<64x128xf32>
    %cst_153 = arith.constant dense<0.000000e+00> : vector<32x128xf32>
    %387 = tpu.matmul %385, %386, %cst_153 {dimension_numbers = #tpu.dot_dimension_numbers<[1], [0], [0], [1], [0, 0, 1, 1], [], []>} : vector<32x64xf32>, vector<64x128xf32>, vector<32x128xf32> -> vector<32x128xf32>
    %c0_154 = arith.constant 0 : index
    %c0_155 = arith.constant 0 : index
    %388 = vector.load %arg9[%c0_154, %c0_155] : memref<1x128xf32, #tpu.memory_space<vmem>>, vector<1x128xf32>
    %389 = vector.broadcast %388 : vector<1x128xf32> to vector<32x128xf32>
    %390 = arith.addf %387, %389 : vector<32x128xf32>
    %c0_156 = arith.constant 0 : index
    %c0_157 = arith.constant 0 : index
    %391 = vector.load %arg8[%c0_156, %c0_157] : memref<64x128xf32, #tpu.memory_space<vmem>>, vector<64x128xf32>
    %cst_158 = arith.constant dense<0.000000e+00> : vector<32x128xf32>
    %392 = tpu.matmul %385, %391, %cst_158 {dimension_numbers = #tpu.dot_dimension_numbers<[1], [0], [0], [1], [0, 0, 1, 1], [], []>} : vector<32x64xf32>, vector<64x128xf32>, vector<32x128xf32> -> vector<32x128xf32>
    %c0_159 = arith.constant 0 : index
    %c0_160 = arith.constant 0 : index
    %393 = vector.load %arg10[%c0_159, %c0_160] : memref<1x128xf32, #tpu.memory_space<vmem>>, vector<1x128xf32>
    %394 = vector.broadcast %393 : vector<1x128xf32> to vector<32x128xf32>
    %395 = arith.addf %392, %394 : vector<32x128xf32>
    %396 = vector.extract_strided_slice %390 {offsets = [0, 0], sizes = [4, 128], strides = [1, 1]} : vector<32x128xf32> to vector<4x128xf32>
    %c0_161 = arith.constant 0 : index
    %c0_162 = arith.constant 0 : index
    %c0_163 = arith.constant 0 : index
    %397 = vector.load %arg24[%c0_161, %c0_162, %c0_163] : memref<8x8x128xf32, #tpu.memory_space<vmem>>, vector<1x4x128xf32>
    %398 = vector.shape_cast %397 : vector<1x4x128xf32> to vector<4x128xf32>
    %399 = vector.shape_cast %396 : vector<4x128xf32> to vector<1x4x128xf32>
    tpu.vector_store %arg24[%c0_161, %c0_162, %c0_163], %399 {strides = array<i32>} : memref<8x8x128xf32, #tpu.memory_space<vmem>>, vector<1x4x128xf32>,
    %400 = vector.extract_strided_slice %395 {offsets = [28, 0], sizes = [4, 128], strides = [1, 1]} : vector<32x128xf32> to vector<4x128xf32>
    %c0_164 = arith.constant 0 : index
    %c4_165 = arith.constant 4 : index
    %c0_166 = arith.constant 0 : index
    %401 = vector.load %arg24[%c0_164, %c4_165, %c0_166] : memref<8x8x128xf32, #tpu.memory_space<vmem>>, vector<1x4x128xf32>
    %402 = vector.shape_cast %401 : vector<1x4x128xf32> to vector<4x128xf32>
    %403 = vector.shape_cast %400 : vector<4x128xf32> to vector<1x4x128xf32>
    tpu.vector_store %arg24[%c0_164, %c4_165, %c0_166], %403 {strides = array<i32>} : memref<8x8x128xf32, #tpu.memory_space<vmem>>, vector<1x4x128xf32>,
    %404 = vector.extract_strided_slice %390 {offsets = [4, 0], sizes = [4, 128], strides = [1, 1]} : vector<32x128xf32> to vector<4x128xf32>
    %c1_167 = arith.constant 1 : index
    %c0_168 = arith.constant 0 : index
    %c0_169 = arith.constant 0 : index
    %405 = vector.load %arg24[%c1_167, %c0_168, %c0_169] : memref<8x8x128xf32, #tpu.memory_space<vmem>>, vector<1x4x128xf32>
    %406 = vector.shape_cast %405 : vector<1x4x128xf32> to vector<4x128xf32>
    %407 = vector.shape_cast %404 : vector<4x128xf32> to vector<1x4x128xf32>
    tpu.vector_store %arg24[%c1_167, %c0_168, %c0_169], %407 {strides = array<i32>} : memref<8x8x128xf32, #tpu.memory_space<vmem>>, vector<1x4x128xf32>,
    %408 = vector.extract_strided_slice %395 {offsets = [24, 0], sizes = [4, 128], strides = [1, 1]} : vector<32x128xf32> to vector<4x128xf32>
    %c1_170 = arith.constant 1 : index
    %c4_171 = arith.constant 4 : index
    %c0_172 = arith.constant 0 : index
    %409 = vector.load %arg24[%c1_170, %c4_171, %c0_172] : memref<8x8x128xf32, #tpu.memory_space<vmem>>, vector<1x4x128xf32>
    %410 = vector.shape_cast %409 : vector<1x4x128xf32> to vector<4x128xf32>
    %411 = vector.shape_cast %408 : vector<4x128xf32> to vector<1x4x128xf32>
    tpu.vector_store %arg24[%c1_170, %c4_171, %c0_172], %411 {strides = array<i32>} : memref<8x8x128xf32, #tpu.memory_space<vmem>>, vector<1x4x128xf32>,
    %412 = vector.extract_strided_slice %390 {offsets = [8, 0], sizes = [4, 128], strides = [1, 1]} : vector<32x128xf32> to vector<4x128xf32>
    %c2_173 = arith.constant 2 : index
    %c0_174 = arith.constant 0 : index
    %c0_175 = arith.constant 0 : index
    %413 = vector.load %arg24[%c2_173, %c0_174, %c0_175] : memref<8x8x128xf32, #tpu.memory_space<vmem>>, vector<1x4x128xf32>
    %414 = vector.shape_cast %413 : vector<1x4x128xf32> to vector<4x128xf32>
    %415 = vector.shape_cast %412 : vector<4x128xf32> to vector<1x4x128xf32>
    tpu.vector_store %arg24[%c2_173, %c0_174, %c0_175], %415 {strides = array<i32>} : memref<8x8x128xf32, #tpu.memory_space<vmem>>, vector<1x4x128xf32>,
    %416 = vector.extract_strided_slice %395 {offsets = [20, 0], sizes = [4, 128], strides = [1, 1]} : vector<32x128xf32> to vector<4x128xf32>
    %c2_176 = arith.constant 2 : index
    %c4_177 = arith.constant 4 : index
    %c0_178 = arith.constant 0 : index
    %417 = vector.load %arg24[%c2_176, %c4_177, %c0_178] : memref<8x8x128xf32, #tpu.memory_space<vmem>>, vector<1x4x128xf32>
    %418 = vector.shape_cast %417 : vector<1x4x128xf32> to vector<4x128xf32>
    %419 = vector.shape_cast %416 : vector<4x128xf32> to vector<1x4x128xf32>
    tpu.vector_store %arg24[%c2_176, %c4_177, %c0_178], %419 {strides = array<i32>} : memref<8x8x128xf32, #tpu.memory_space<vmem>>, vector<1x4x128xf32>,
    %420 = vector.extract_strided_slice %390 {offsets = [12, 0], sizes = [4, 128], strides = [1, 1]} : vector<32x128xf32> to vector<4x128xf32>
    %c3_179 = arith.constant 3 : index
    %c0_180 = arith.constant 0 : index
    %c0_181 = arith.constant 0 : index
    %421 = vector.load %arg24[%c3_179, %c0_180, %c0_181] : memref<8x8x128xf32, #tpu.memory_space<vmem>>, vector<1x4x128xf32>
    %422 = vector.shape_cast %421 : vector<1x4x128xf32> to vector<4x128xf32>
    %423 = vector.shape_cast %420 : vector<4x128xf32> to vector<1x4x128xf32>
    tpu.vector_store %arg24[%c3_179, %c0_180, %c0_181], %423 {strides = array<i32>} : memref<8x8x128xf32, #tpu.memory_space<vmem>>, vector<1x4x128xf32>,
    %424 = vector.extract_strided_slice %395 {offsets = [16, 0], sizes = [4, 128], strides = [1, 1]} : vector<32x128xf32> to vector<4x128xf32>
    %c3_182 = arith.constant 3 : index
    %c4_183 = arith.constant 4 : index
    %c0_184 = arith.constant 0 : index
    %425 = vector.load %arg24[%c3_182, %c4_183, %c0_184] : memref<8x8x128xf32, #tpu.memory_space<vmem>>, vector<1x4x128xf32>
    %426 = vector.shape_cast %425 : vector<1x4x128xf32> to vector<4x128xf32>
    %427 = vector.shape_cast %424 : vector<4x128xf32> to vector<1x4x128xf32>
    tpu.vector_store %arg24[%c3_182, %c4_183, %c0_184], %427 {strides = array<i32>} : memref<8x8x128xf32, #tpu.memory_space<vmem>>, vector<1x4x128xf32>,
    %428 = vector.extract_strided_slice %390 {offsets = [16, 0], sizes = [4, 128], strides = [1, 1]} : vector<32x128xf32> to vector<4x128xf32>
    %c4_185 = arith.constant 4 : index
    %c0_186 = arith.constant 0 : index
    %c0_187 = arith.constant 0 : index
    %429 = vector.load %arg24[%c4_185, %c0_186, %c0_187] : memref<8x8x128xf32, #tpu.memory_space<vmem>>, vector<1x4x128xf32>
    %430 = vector.shape_cast %429 : vector<1x4x128xf32> to vector<4x128xf32>
    %431 = vector.shape_cast %428 : vector<4x128xf32> to vector<1x4x128xf32>
    tpu.vector_store %arg24[%c4_185, %c0_186, %c0_187], %431 {strides = array<i32>} : memref<8x8x128xf32, #tpu.memory_space<vmem>>, vector<1x4x128xf32>,
    %432 = vector.extract_strided_slice %395 {offsets = [12, 0], sizes = [4, 128], strides = [1, 1]} : vector<32x128xf32> to vector<4x128xf32>
    %c4_188 = arith.constant 4 : index
    %c4_189 = arith.constant 4 : index
    %c0_190 = arith.constant 0 : index
    %433 = vector.load %arg24[%c4_188, %c4_189, %c0_190] : memref<8x8x128xf32, #tpu.memory_space<vmem>>, vector<1x4x128xf32>
    %434 = vector.shape_cast %433 : vector<1x4x128xf32> to vector<4x128xf32>
    %435 = vector.shape_cast %432 : vector<4x128xf32> to vector<1x4x128xf32>
    tpu.vector_store %arg24[%c4_188, %c4_189, %c0_190], %435 {strides = array<i32>} : memref<8x8x128xf32, #tpu.memory_space<vmem>>, vector<1x4x128xf32>,
    %436 = vector.extract_strided_slice %390 {offsets = [20, 0], sizes = [4, 128], strides = [1, 1]} : vector<32x128xf32> to vector<4x128xf32>
    %c5_191 = arith.constant 5 : index
    %c0_192 = arith.constant 0 : index
    %c0_193 = arith.constant 0 : index
    %437 = vector.load %arg24[%c5_191, %c0_192, %c0_193] : memref<8x8x128xf32, #tpu.memory_space<vmem>>, vector<1x4x128xf32>
    %438 = vector.shape_cast %437 : vector<1x4x128xf32> to vector<4x128xf32>
    %439 = vector.shape_cast %436 : vector<4x128xf32> to vector<1x4x128xf32>
    tpu.vector_store %arg24[%c5_191, %c0_192, %c0_193], %439 {strides = array<i32>} : memref<8x8x128xf32, #tpu.memory_space<vmem>>, vector<1x4x128xf32>,
    %440 = vector.extract_strided_slice %395 {offsets = [8, 0], sizes = [4, 128], strides = [1, 1]} : vector<32x128xf32> to vector<4x128xf32>
    %c5_194 = arith.constant 5 : index
    %c4_195 = arith.constant 4 : index
    %c0_196 = arith.constant 0 : index
    %441 = vector.load %arg24[%c5_194, %c4_195, %c0_196] : memref<8x8x128xf32, #tpu.memory_space<vmem>>, vector<1x4x128xf32>
    %442 = vector.shape_cast %441 : vector<1x4x128xf32> to vector<4x128xf32>
    %443 = vector.shape_cast %440 : vector<4x128xf32> to vector<1x4x128xf32>
    tpu.vector_store %arg24[%c5_194, %c4_195, %c0_196], %443 {strides = array<i32>} : memref<8x8x128xf32, #tpu.memory_space<vmem>>, vector<1x4x128xf32>,
    %444 = vector.extract_strided_slice %390 {offsets = [24, 0], sizes = [4, 128], strides = [1, 1]} : vector<32x128xf32> to vector<4x128xf32>
    %c6_197 = arith.constant 6 : index
    %c0_198 = arith.constant 0 : index
    %c0_199 = arith.constant 0 : index
    %445 = vector.load %arg24[%c6_197, %c0_198, %c0_199] : memref<8x8x128xf32, #tpu.memory_space<vmem>>, vector<1x4x128xf32>
    %446 = vector.shape_cast %445 : vector<1x4x128xf32> to vector<4x128xf32>
    %447 = vector.shape_cast %444 : vector<4x128xf32> to vector<1x4x128xf32>
    tpu.vector_store %arg24[%c6_197, %c0_198, %c0_199], %447 {strides = array<i32>} : memref<8x8x128xf32, #tpu.memory_space<vmem>>, vector<1x4x128xf32>,
    %448 = vector.extract_strided_slice %395 {offsets = [4, 0], sizes = [4, 128], strides = [1, 1]} : vector<32x128xf32> to vector<4x128xf32>
    %c6_200 = arith.constant 6 : index
    %c4_201 = arith.constant 4 : index
    %c0_202 = arith.constant 0 : index
    %449 = vector.load %arg24[%c6_200, %c4_201, %c0_202] : memref<8x8x128xf32, #tpu.memory_space<vmem>>, vector<1x4x128xf32>
    %450 = vector.shape_cast %449 : vector<1x4x128xf32> to vector<4x128xf32>
    %451 = vector.shape_cast %448 : vector<4x128xf32> to vector<1x4x128xf32>
    tpu.vector_store %arg24[%c6_200, %c4_201, %c0_202], %451 {strides = array<i32>} : memref<8x8x128xf32, #tpu.memory_space<vmem>>, vector<1x4x128xf32>,
    %452 = vector.extract_strided_slice %390 {offsets = [28, 0], sizes = [4, 128], strides = [1, 1]} : vector<32x128xf32> to vector<4x128xf32>
    %c7_203 = arith.constant 7 : index
    %c0_204 = arith.constant 0 : index
    %c0_205 = arith.constant 0 : index
    %453 = vector.load %arg24[%c7_203, %c0_204, %c0_205] : memref<8x8x128xf32, #tpu.memory_space<vmem>>, vector<1x4x128xf32>
    %454 = vector.shape_cast %453 : vector<1x4x128xf32> to vector<4x128xf32>
    %455 = vector.shape_cast %452 : vector<4x128xf32> to vector<1x4x128xf32>
    tpu.vector_store %arg24[%c7_203, %c0_204, %c0_205], %455 {strides = array<i32>} : memref<8x8x128xf32, #tpu.memory_space<vmem>>, vector<1x4x128xf32>,
    %456 = vector.extract_strided_slice %395 {offsets = [0, 0], sizes = [4, 128], strides = [1, 1]} : vector<32x128xf32> to vector<4x128xf32>
    %c7_206 = arith.constant 7 : index
    %c4_207 = arith.constant 4 : index
    %c0_208 = arith.constant 0 : index
    %457 = vector.load %arg24[%c7_206, %c4_207, %c0_208] : memref<8x8x128xf32, #tpu.memory_space<vmem>>, vector<1x4x128xf32>
    %458 = vector.shape_cast %457 : vector<1x4x128xf32> to vector<4x128xf32>
    %459 = vector.shape_cast %456 : vector<4x128xf32> to vector<1x4x128xf32>
    tpu.vector_store %arg24[%c7_206, %c4_207, %c0_208], %459 {strides = array<i32>} : memref<8x8x128xf32, #tpu.memory_space<vmem>>, vector<1x4x128xf32>,
    %c0_209 = arith.constant 0 : index
    %c0_210 = arith.constant 0 : index
    %460 = vector.load %arg11[%c0_209, %c0_210] : memref<32x256xf32, #tpu.memory_space<vmem>>, vector<32x256xf32>
    %cst_211 = arith.constant 0.000000e+00 : f32
    %461 = vector.broadcast %cst_211 : f32 to vector<8x32xf32>
    %cst_212 = arith.constant 0.000000e+00 : f32
    %462 = vector.broadcast %cst_212 : f32 to vector<8x32xf32>
    %c0_i32_213 = arith.constant 0 : i32
    %cst_214 = arith.constant dense<0.000000e+00> : vector<8x256xf32>
    %463 = tpu.matmul %461, %460, %cst_214 {dimension_numbers = #tpu.dot_dimension_numbers<[1], [0], [0], [1], [0, 0, 1, 1], [], []>} : vector<8x32xf32>, vector<32x256xf32>, vector<8x256xf32> -> vector<8x256xf32>
    %464 = arith.index_cast %c0_i32_213 : i32 to index
    %c0_215 = arith.constant 0 : index
    %c0_216 = arith.constant 0 : index
    %465 = vector.load %arg24[%464, %c0_215, %c0_216] : memref<8x8x128xf32, #tpu.memory_space<vmem>>, vector<1x8x128xf32>
    %466 = vector.shape_cast %465 : vector<1x8x128xf32> to vector<8x128xf32>
    %467 = vector.extract_strided_slice %463 {offsets = [0, 0], sizes = [8, 128], strides = [1, 1]} : vector<8x256xf32> to vector<8x128xf32>
    %468 = vector.extract_strided_slice %463 {offsets = [0, 128], sizes = [8, 128], strides = [1, 1]} : vector<8x256xf32> to vector<8x128xf32>
    %469 = arith.select %2, %467, %468 : vector<8x128xi1>, vector<8x128xf32>
    %470 = arith.addf %466, %469 : vector<8x128xf32>
    %471 = arith.negf %470 : vector<8x128xf32>
    %472 = math.exp %471 : vector<8x128xf32>
    %cst_217 = arith.constant 1.000000e+00 : f32
    %473 = vector.broadcast %cst_217 : f32 to vector<8x128xf32>
    %474 = arith.addf %473, %472 : vector<8x128xf32>
    %475 = arith.divf %473, %474 : vector<8x128xf32>
    %476 = vector.extract_strided_slice %475 {offsets = [0, 0], sizes = [8, 32], strides = [1, 1]} : vector<8x128xf32> to vector<8x32xf32>
    %477 = vector.extract_strided_slice %475 {offsets = [0, 32], sizes = [8, 32], strides = [1, 1]} : vector<8x128xf32> to vector<8x32xf32>
    %478 = vector.extract_strided_slice %475 {offsets = [0, 64], sizes = [8, 32], strides = [1, 1]} : vector<8x128xf32> to vector<8x32xf32>
    %cst_218 = arith.constant 2.000000e+00 : f32
    %479 = vector.broadcast %cst_218 : f32 to vector<8x32xf32>
    %480 = arith.mulf %479, %478 : vector<8x32xf32>
    %cst_219 = arith.constant 1.000000e+00 : f32
    %481 = vector.broadcast %cst_219 : f32 to vector<8x32xf32>
    %482 = arith.subf %480, %481 : vector<8x32xf32>
    %483 = vector.extract_strided_slice %475 {offsets = [0, 96], sizes = [8, 32], strides = [1, 1]} : vector<8x128xf32> to vector<8x32xf32>
    %484 = arith.mulf %477, %462 : vector<8x32xf32>
    %485 = arith.mulf %476, %482 : vector<8x32xf32>
    %486 = arith.addf %484, %485 : vector<8x32xf32>
    %487 = math.tanh %486 : vector<8x32xf32>
    %488 = arith.mulf %483, %487 : vector<8x32xf32>
    %c1_i32_220 = arith.constant 1 : i32
    %cst_221 = arith.constant dense<0.000000e+00> : vector<8x256xf32>
    %489 = tpu.matmul %488, %460, %cst_221 {dimension_numbers = #tpu.dot_dimension_numbers<[1], [0], [0], [1], [0, 0, 1, 1], [], []>} : vector<8x32xf32>, vector<32x256xf32>, vector<8x256xf32> -> vector<8x256xf32>
    %490 = arith.index_cast %c1_i32_220 : i32 to index
    %c0_222 = arith.constant 0 : index
    %c0_223 = arith.constant 0 : index
    %491 = vector.load %arg24[%490, %c0_222, %c0_223] : memref<8x8x128xf32, #tpu.memory_space<vmem>>, vector<1x8x128xf32>
    %492 = vector.shape_cast %491 : vector<1x8x128xf32> to vector<8x128xf32>
    %493 = vector.extract_strided_slice %489 {offsets = [0, 0], sizes = [8, 128], strides = [1, 1]} : vector<8x256xf32> to vector<8x128xf32>
    %494 = vector.extract_strided_slice %489 {offsets = [0, 128], sizes = [8, 128], strides = [1, 1]} : vector<8x256xf32> to vector<8x128xf32>
    %495 = arith.select %2, %493, %494 : vector<8x128xi1>, vector<8x128xf32>
    %496 = arith.addf %492, %495 : vector<8x128xf32>
    %497 = arith.negf %496 : vector<8x128xf32>
    %498 = math.exp %497 : vector<8x128xf32>
    %cst_224 = arith.constant 1.000000e+00 : f32
    %499 = vector.broadcast %cst_224 : f32 to vector<8x128xf32>
    %500 = arith.addf %499, %498 : vector<8x128xf32>
    %501 = arith.divf %499, %500 : vector<8x128xf32>
    %502 = vector.extract_strided_slice %501 {offsets = [0, 0], sizes = [8, 32], strides = [1, 1]} : vector<8x128xf32> to vector<8x32xf32>
    %503 = vector.extract_strided_slice %501 {offsets = [0, 32], sizes = [8, 32], strides = [1, 1]} : vector<8x128xf32> to vector<8x32xf32>
    %504 = vector.extract_strided_slice %501 {offsets = [0, 64], sizes = [8, 32], strides = [1, 1]} : vector<8x128xf32> to vector<8x32xf32>
    %cst_225 = arith.constant 2.000000e+00 : f32
    %505 = vector.broadcast %cst_225 : f32 to vector<8x32xf32>
    %506 = arith.mulf %505, %504 : vector<8x32xf32>
    %cst_226 = arith.constant 1.000000e+00 : f32
    %507 = vector.broadcast %cst_226 : f32 to vector<8x32xf32>
    %508 = arith.subf %506, %507 : vector<8x32xf32>
    %509 = vector.extract_strided_slice %501 {offsets = [0, 96], sizes = [8, 32], strides = [1, 1]} : vector<8x128xf32> to vector<8x32xf32>
    %510 = arith.mulf %503, %486 : vector<8x32xf32>
    %511 = arith.mulf %502, %508 : vector<8x32xf32>
    %512 = arith.addf %510, %511 : vector<8x32xf32>
    %513 = math.tanh %512 : vector<8x32xf32>
    %514 = arith.mulf %509, %513 : vector<8x32xf32>
    %c2_i32_227 = arith.constant 2 : i32
    %cst_228 = arith.constant dense<0.000000e+00> : vector<8x256xf32>
    %515 = tpu.matmul %514, %460, %cst_228 {dimension_numbers = #tpu.dot_dimension_numbers<[1], [0], [0], [1], [0, 0, 1, 1], [], []>} : vector<8x32xf32>, vector<32x256xf32>, vector<8x256xf32> -> vector<8x256xf32>
    %516 = arith.index_cast %c2_i32_227 : i32 to index
    %c0_229 = arith.constant 0 : index
    %c0_230 = arith.constant 0 : index
    %517 = vector.load %arg24[%516, %c0_229, %c0_230] : memref<8x8x128xf32, #tpu.memory_space<vmem>>, vector<1x8x128xf32>
    %518 = vector.shape_cast %517 : vector<1x8x128xf32> to vector<8x128xf32>
    %519 = vector.extract_strided_slice %515 {offsets = [0, 0], sizes = [8, 128], strides = [1, 1]} : vector<8x256xf32> to vector<8x128xf32>
    %520 = vector.extract_strided_slice %515 {offsets = [0, 128], sizes = [8, 128], strides = [1, 1]} : vector<8x256xf32> to vector<8x128xf32>
    %521 = arith.select %2, %519, %520 : vector<8x128xi1>, vector<8x128xf32>
    %522 = arith.addf %518, %521 : vector<8x128xf32>
    %523 = arith.negf %522 : vector<8x128xf32>
    %524 = math.exp %523 : vector<8x128xf32>
    %cst_231 = arith.constant 1.000000e+00 : f32
    %525 = vector.broadcast %cst_231 : f32 to vector<8x128xf32>
    %526 = arith.addf %525, %524 : vector<8x128xf32>
    %527 = arith.divf %525, %526 : vector<8x128xf32>
    %528 = vector.extract_strided_slice %527 {offsets = [0, 0], sizes = [8, 32], strides = [1, 1]} : vector<8x128xf32> to vector<8x32xf32>
    %529 = vector.extract_strided_slice %527 {offsets = [0, 32], sizes = [8, 32], strides = [1, 1]} : vector<8x128xf32> to vector<8x32xf32>
    %530 = vector.extract_strided_slice %527 {offsets = [0, 64], sizes = [8, 32], strides = [1, 1]} : vector<8x128xf32> to vector<8x32xf32>
    %cst_232 = arith.constant 2.000000e+00 : f32
    %531 = vector.broadcast %cst_232 : f32 to vector<8x32xf32>
    %532 = arith.mulf %531, %530 : vector<8x32xf32>
    %cst_233 = arith.constant 1.000000e+00 : f32
    %533 = vector.broadcast %cst_233 : f32 to vector<8x32xf32>
    %534 = arith.subf %532, %533 : vector<8x32xf32>
    %535 = vector.extract_strided_slice %527 {offsets = [0, 96], sizes = [8, 32], strides = [1, 1]} : vector<8x128xf32> to vector<8x32xf32>
    %536 = arith.mulf %529, %512 : vector<8x32xf32>
    %537 = arith.mulf %528, %534 : vector<8x32xf32>
    %538 = arith.addf %536, %537 : vector<8x32xf32>
    %539 = math.tanh %538 : vector<8x32xf32>
    %540 = arith.mulf %535, %539 : vector<8x32xf32>
    %c3_i32_234 = arith.constant 3 : i32
    %cst_235 = arith.constant dense<0.000000e+00> : vector<8x256xf32>
    %541 = tpu.matmul %540, %460, %cst_235 {dimension_numbers = #tpu.dot_dimension_numbers<[1], [0], [0], [1], [0, 0, 1, 1], [], []>} : vector<8x32xf32>, vector<32x256xf32>, vector<8x256xf32> -> vector<8x256xf32>
    %542 = arith.index_cast %c3_i32_234 : i32 to index
    %c0_236 = arith.constant 0 : index
    %c0_237 = arith.constant 0 : index
    %543 = vector.load %arg24[%542, %c0_236, %c0_237] : memref<8x8x128xf32, #tpu.memory_space<vmem>>, vector<1x8x128xf32>
    %544 = vector.shape_cast %543 : vector<1x8x128xf32> to vector<8x128xf32>
    %545 = vector.extract_strided_slice %541 {offsets = [0, 0], sizes = [8, 128], strides = [1, 1]} : vector<8x256xf32> to vector<8x128xf32>
    %546 = vector.extract_strided_slice %541 {offsets = [0, 128], sizes = [8, 128], strides = [1, 1]} : vector<8x256xf32> to vector<8x128xf32>
    %547 = arith.select %2, %545, %546 : vector<8x128xi1>, vector<8x128xf32>
    %548 = arith.addf %544, %547 : vector<8x128xf32>
    %549 = arith.negf %548 : vector<8x128xf32>
    %550 = math.exp %549 : vector<8x128xf32>
    %cst_238 = arith.constant 1.000000e+00 : f32
    %551 = vector.broadcast %cst_238 : f32 to vector<8x128xf32>
    %552 = arith.addf %551, %550 : vector<8x128xf32>
    %553 = arith.divf %551, %552 : vector<8x128xf32>
    %554 = vector.extract_strided_slice %553 {offsets = [0, 0], sizes = [8, 32], strides = [1, 1]} : vector<8x128xf32> to vector<8x32xf32>
    %555 = vector.extract_strided_slice %553 {offsets = [0, 32], sizes = [8, 32], strides = [1, 1]} : vector<8x128xf32> to vector<8x32xf32>
    %556 = vector.extract_strided_slice %553 {offsets = [0, 64], sizes = [8, 32], strides = [1, 1]} : vector<8x128xf32> to vector<8x32xf32>
    %cst_239 = arith.constant 2.000000e+00 : f32
    %557 = vector.broadcast %cst_239 : f32 to vector<8x32xf32>
    %558 = arith.mulf %557, %556 : vector<8x32xf32>
    %cst_240 = arith.constant 1.000000e+00 : f32
    %559 = vector.broadcast %cst_240 : f32 to vector<8x32xf32>
    %560 = arith.subf %558, %559 : vector<8x32xf32>
    %561 = vector.extract_strided_slice %553 {offsets = [0, 96], sizes = [8, 32], strides = [1, 1]} : vector<8x128xf32> to vector<8x32xf32>
    %562 = arith.mulf %555, %538 : vector<8x32xf32>
    %563 = arith.mulf %554, %560 : vector<8x32xf32>
    %564 = arith.addf %562, %563 : vector<8x32xf32>
    %565 = math.tanh %564 : vector<8x32xf32>
    %566 = arith.mulf %561, %565 : vector<8x32xf32>
    %c4_i32_241 = arith.constant 4 : i32
    %cst_242 = arith.constant dense<0.000000e+00> : vector<8x256xf32>
    %567 = tpu.matmul %566, %460, %cst_242 {dimension_numbers = #tpu.dot_dimension_numbers<[1], [0], [0], [1], [0, 0, 1, 1], [], []>} : vector<8x32xf32>, vector<32x256xf32>, vector<8x256xf32> -> vector<8x256xf32>
    %568 = arith.index_cast %c4_i32_241 : i32 to index
    %c0_243 = arith.constant 0 : index
    %c0_244 = arith.constant 0 : index
    %569 = vector.load %arg24[%568, %c0_243, %c0_244] : memref<8x8x128xf32, #tpu.memory_space<vmem>>, vector<1x8x128xf32>
    %570 = vector.shape_cast %569 : vector<1x8x128xf32> to vector<8x128xf32>
    %571 = vector.extract_strided_slice %567 {offsets = [0, 0], sizes = [8, 128], strides = [1, 1]} : vector<8x256xf32> to vector<8x128xf32>
    %572 = vector.extract_strided_slice %567 {offsets = [0, 128], sizes = [8, 128], strides = [1, 1]} : vector<8x256xf32> to vector<8x128xf32>
    %573 = arith.select %2, %571, %572 : vector<8x128xi1>, vector<8x128xf32>
    %574 = arith.addf %570, %573 : vector<8x128xf32>
    %575 = arith.negf %574 : vector<8x128xf32>
    %576 = math.exp %575 : vector<8x128xf32>
    %cst_245 = arith.constant 1.000000e+00 : f32
    %577 = vector.broadcast %cst_245 : f32 to vector<8x128xf32>
    %578 = arith.addf %577, %576 : vector<8x128xf32>
    %579 = arith.divf %577, %578 : vector<8x128xf32>
    %580 = vector.extract_strided_slice %579 {offsets = [0, 0], sizes = [8, 32], strides = [1, 1]} : vector<8x128xf32> to vector<8x32xf32>
    %581 = vector.extract_strided_slice %579 {offsets = [0, 32], sizes = [8, 32], strides = [1, 1]} : vector<8x128xf32> to vector<8x32xf32>
    %582 = vector.extract_strided_slice %579 {offsets = [0, 64], sizes = [8, 32], strides = [1, 1]} : vector<8x128xf32> to vector<8x32xf32>
    %cst_246 = arith.constant 2.000000e+00 : f32
    %583 = vector.broadcast %cst_246 : f32 to vector<8x32xf32>
    %584 = arith.mulf %583, %582 : vector<8x32xf32>
    %cst_247 = arith.constant 1.000000e+00 : f32
    %585 = vector.broadcast %cst_247 : f32 to vector<8x32xf32>
    %586 = arith.subf %584, %585 : vector<8x32xf32>
    %587 = vector.extract_strided_slice %579 {offsets = [0, 96], sizes = [8, 32], strides = [1, 1]} : vector<8x128xf32> to vector<8x32xf32>
    %588 = arith.mulf %581, %564 : vector<8x32xf32>
    %589 = arith.mulf %580, %586 : vector<8x32xf32>
    %590 = arith.addf %588, %589 : vector<8x32xf32>
    %591 = math.tanh %590 : vector<8x32xf32>
    %592 = arith.mulf %587, %591 : vector<8x32xf32>
    %c5_i32_248 = arith.constant 5 : i32
    %cst_249 = arith.constant dense<0.000000e+00> : vector<8x256xf32>
    %593 = tpu.matmul %592, %460, %cst_249 {dimension_numbers = #tpu.dot_dimension_numbers<[1], [0], [0], [1], [0, 0, 1, 1], [], []>} : vector<8x32xf32>, vector<32x256xf32>, vector<8x256xf32> -> vector<8x256xf32>
    %594 = arith.index_cast %c5_i32_248 : i32 to index
    %c0_250 = arith.constant 0 : index
    %c0_251 = arith.constant 0 : index
    %595 = vector.load %arg24[%594, %c0_250, %c0_251] : memref<8x8x128xf32, #tpu.memory_space<vmem>>, vector<1x8x128xf32>
    %596 = vector.shape_cast %595 : vector<1x8x128xf32> to vector<8x128xf32>
    %597 = vector.extract_strided_slice %593 {offsets = [0, 0], sizes = [8, 128], strides = [1, 1]} : vector<8x256xf32> to vector<8x128xf32>
    %598 = vector.extract_strided_slice %593 {offsets = [0, 128], sizes = [8, 128], strides = [1, 1]} : vector<8x256xf32> to vector<8x128xf32>
    %599 = arith.select %2, %597, %598 : vector<8x128xi1>, vector<8x128xf32>
    %600 = arith.addf %596, %599 : vector<8x128xf32>
    %601 = arith.negf %600 : vector<8x128xf32>
    %602 = math.exp %601 : vector<8x128xf32>
    %cst_252 = arith.constant 1.000000e+00 : f32
    %603 = vector.broadcast %cst_252 : f32 to vector<8x128xf32>
    %604 = arith.addf %603, %602 : vector<8x128xf32>
    %605 = arith.divf %603, %604 : vector<8x128xf32>
    %606 = vector.extract_strided_slice %605 {offsets = [0, 0], sizes = [8, 32], strides = [1, 1]} : vector<8x128xf32> to vector<8x32xf32>
    %607 = vector.extract_strided_slice %605 {offsets = [0, 32], sizes = [8, 32], strides = [1, 1]} : vector<8x128xf32> to vector<8x32xf32>
    %608 = vector.extract_strided_slice %605 {offsets = [0, 64], sizes = [8, 32], strides = [1, 1]} : vector<8x128xf32> to vector<8x32xf32>
    %cst_253 = arith.constant 2.000000e+00 : f32
    %609 = vector.broadcast %cst_253 : f32 to vector<8x32xf32>
    %610 = arith.mulf %609, %608 : vector<8x32xf32>
    %cst_254 = arith.constant 1.000000e+00 : f32
    %611 = vector.broadcast %cst_254 : f32 to vector<8x32xf32>
    %612 = arith.subf %610, %611 : vector<8x32xf32>
    %613 = vector.extract_strided_slice %605 {offsets = [0, 96], sizes = [8, 32], strides = [1, 1]} : vector<8x128xf32> to vector<8x32xf32>
    %614 = arith.mulf %607, %590 : vector<8x32xf32>
    %615 = arith.mulf %606, %612 : vector<8x32xf32>
    %616 = arith.addf %614, %615 : vector<8x32xf32>
    %617 = math.tanh %616 : vector<8x32xf32>
    %618 = arith.mulf %613, %617 : vector<8x32xf32>
    %c6_i32_255 = arith.constant 6 : i32
    %cst_256 = arith.constant dense<0.000000e+00> : vector<8x256xf32>
    %619 = tpu.matmul %618, %460, %cst_256 {dimension_numbers = #tpu.dot_dimension_numbers<[1], [0], [0], [1], [0, 0, 1, 1], [], []>} : vector<8x32xf32>, vector<32x256xf32>, vector<8x256xf32> -> vector<8x256xf32>
    %620 = arith.index_cast %c6_i32_255 : i32 to index
    %c0_257 = arith.constant 0 : index
    %c0_258 = arith.constant 0 : index
    %621 = vector.load %arg24[%620, %c0_257, %c0_258] : memref<8x8x128xf32, #tpu.memory_space<vmem>>, vector<1x8x128xf32>
    %622 = vector.shape_cast %621 : vector<1x8x128xf32> to vector<8x128xf32>
    %623 = vector.extract_strided_slice %619 {offsets = [0, 0], sizes = [8, 128], strides = [1, 1]} : vector<8x256xf32> to vector<8x128xf32>
    %624 = vector.extract_strided_slice %619 {offsets = [0, 128], sizes = [8, 128], strides = [1, 1]} : vector<8x256xf32> to vector<8x128xf32>
    %625 = arith.select %2, %623, %624 : vector<8x128xi1>, vector<8x128xf32>
    %626 = arith.addf %622, %625 : vector<8x128xf32>
    %627 = arith.negf %626 : vector<8x128xf32>
    %628 = math.exp %627 : vector<8x128xf32>
    %cst_259 = arith.constant 1.000000e+00 : f32
    %629 = vector.broadcast %cst_259 : f32 to vector<8x128xf32>
    %630 = arith.addf %629, %628 : vector<8x128xf32>
    %631 = arith.divf %629, %630 : vector<8x128xf32>
    %632 = vector.extract_strided_slice %631 {offsets = [0, 0], sizes = [8, 32], strides = [1, 1]} : vector<8x128xf32> to vector<8x32xf32>
    %633 = vector.extract_strided_slice %631 {offsets = [0, 32], sizes = [8, 32], strides = [1, 1]} : vector<8x128xf32> to vector<8x32xf32>
    %634 = vector.extract_strided_slice %631 {offsets = [0, 64], sizes = [8, 32], strides = [1, 1]} : vector<8x128xf32> to vector<8x32xf32>
    %cst_260 = arith.constant 2.000000e+00 : f32
    %635 = vector.broadcast %cst_260 : f32 to vector<8x32xf32>
    %636 = arith.mulf %635, %634 : vector<8x32xf32>
    %cst_261 = arith.constant 1.000000e+00 : f32
    %637 = vector.broadcast %cst_261 : f32 to vector<8x32xf32>
    %638 = arith.subf %636, %637 : vector<8x32xf32>
    %639 = vector.extract_strided_slice %631 {offsets = [0, 96], sizes = [8, 32], strides = [1, 1]} : vector<8x128xf32> to vector<8x32xf32>
    %640 = arith.mulf %633, %616 : vector<8x32xf32>
    %641 = arith.mulf %632, %638 : vector<8x32xf32>
    %642 = arith.addf %640, %641 : vector<8x32xf32>
    %643 = math.tanh %642 : vector<8x32xf32>
    %644 = arith.mulf %639, %643 : vector<8x32xf32>
    %c7_i32_262 = arith.constant 7 : i32
    %cst_263 = arith.constant dense<0.000000e+00> : vector<8x256xf32>
    %645 = tpu.matmul %644, %460, %cst_263 {dimension_numbers = #tpu.dot_dimension_numbers<[1], [0], [0], [1], [0, 0, 1, 1], [], []>} : vector<8x32xf32>, vector<32x256xf32>, vector<8x256xf32> -> vector<8x256xf32>
    %646 = arith.index_cast %c7_i32_262 : i32 to index
    %c0_264 = arith.constant 0 : index
    %c0_265 = arith.constant 0 : index
    %647 = vector.load %arg24[%646, %c0_264, %c0_265] : memref<8x8x128xf32, #tpu.memory_space<vmem>>, vector<1x8x128xf32>
    %648 = vector.shape_cast %647 : vector<1x8x128xf32> to vector<8x128xf32>
    %649 = vector.extract_strided_slice %645 {offsets = [0, 0], sizes = [8, 128], strides = [1, 1]} : vector<8x256xf32> to vector<8x128xf32>
    %650 = vector.extract_strided_slice %645 {offsets = [0, 128], sizes = [8, 128], strides = [1, 1]} : vector<8x256xf32> to vector<8x128xf32>
    %651 = arith.select %2, %649, %650 : vector<8x128xi1>, vector<8x128xf32>
    %652 = arith.addf %648, %651 : vector<8x128xf32>
    %653 = arith.negf %652 : vector<8x128xf32>
    %654 = math.exp %653 : vector<8x128xf32>
    %cst_266 = arith.constant 1.000000e+00 : f32
    %655 = vector.broadcast %cst_266 : f32 to vector<8x128xf32>
    %656 = arith.addf %655, %654 : vector<8x128xf32>
    %657 = arith.divf %655, %656 : vector<8x128xf32>
    %658 = vector.extract_strided_slice %657 {offsets = [0, 0], sizes = [8, 32], strides = [1, 1]} : vector<8x128xf32> to vector<8x32xf32>
    %659 = vector.extract_strided_slice %657 {offsets = [0, 32], sizes = [8, 32], strides = [1, 1]} : vector<8x128xf32> to vector<8x32xf32>
    %660 = vector.extract_strided_slice %657 {offsets = [0, 64], sizes = [8, 32], strides = [1, 1]} : vector<8x128xf32> to vector<8x32xf32>
    %cst_267 = arith.constant 2.000000e+00 : f32
    %661 = vector.broadcast %cst_267 : f32 to vector<8x32xf32>
    %662 = arith.mulf %661, %660 : vector<8x32xf32>
    %cst_268 = arith.constant 1.000000e+00 : f32
    %663 = vector.broadcast %cst_268 : f32 to vector<8x32xf32>
    %664 = arith.subf %662, %663 : vector<8x32xf32>
    %665 = vector.extract_strided_slice %657 {offsets = [0, 96], sizes = [8, 32], strides = [1, 1]} : vector<8x128xf32> to vector<8x32xf32>
    %666 = arith.mulf %659, %642 : vector<8x32xf32>
    %667 = arith.mulf %658, %664 : vector<8x32xf32>
    %668 = arith.addf %666, %667 : vector<8x32xf32>
    %669 = math.tanh %668 : vector<8x32xf32>
    %670 = arith.mulf %665, %669 : vector<8x32xf32>
    %c8_i32_269 = arith.constant 8 : i32
    %671 = vector.extract_strided_slice %670 {offsets = [0, 0], sizes = [4, 32], strides = [1, 1]} : vector<8x32xf32> to vector<4x32xf32>
    %672 = vector.extract_strided_slice %670 {offsets = [4, 0], sizes = [4, 32], strides = [1, 1]} : vector<8x32xf32> to vector<4x32xf32>
    %673 = vector.extract_strided_slice %668 {offsets = [0, 0], sizes = [4, 32], strides = [1, 1]} : vector<8x32xf32> to vector<4x32xf32>
    %674 = vector.extract_strided_slice %668 {offsets = [4, 0], sizes = [4, 32], strides = [1, 1]} : vector<8x32xf32> to vector<4x32xf32>
    %675 = tpu.concatenate %378, %379, %671, %672 in 1 : vector<4x32xf32>, vector<4x32xf32>, vector<4x32xf32>, vector<4x32xf32> -> vector<4x128xf32>
    %676 = tpu.concatenate %380, %381, %673, %674 in 1 : vector<4x32xf32>, vector<4x32xf32>, vector<4x32xf32>, vector<4x32xf32> -> vector<4x128xf32>
    %677 = tpu.concatenate %675, %676 in 0 : vector<4x128xf32>, vector<4x128xf32> -> vector<8x128xf32>
    %c0_270 = arith.constant 0 : index
    %c0_271 = arith.constant 0 : index
    %678 = vector.load %arg12[%c0_270, %c0_271] : memref<128x32xf32, #tpu.memory_space<vmem>>, vector<128x32xf32>
    %cst_272 = arith.constant dense<0.000000e+00> : vector<8x32xf32>
    %679 = tpu.matmul %677, %678, %cst_272 {dimension_numbers = #tpu.dot_dimension_numbers<[1], [0], [0], [1], [0, 0, 1, 1], [], []>} : vector<8x128xf32>, vector<128x32xf32>, vector<8x32xf32> -> vector<8x32xf32>
    %c0_273 = arith.constant 0 : index
    %c0_274 = arith.constant 0 : index
    %680 = vector.load %arg13[%c0_273, %c0_274] : memref<1x32xf32, #tpu.memory_space<vmem>>, vector<1x32xf32>
    %681 = vector.broadcast %680 : vector<1x32xf32> to vector<8x32xf32>
    %682 = arith.addf %679, %681 : vector<8x32xf32>
    %c0_275 = arith.constant 0 : index
    %c0_276 = arith.constant 0 : index
    %683 = vector.load %arg14[%c0_275, %c0_276] : memref<32x32xf32, #tpu.memory_space<vmem>>, vector<32x32xf32>
    %684 = arith.mulf %682, %682 : vector<8x32xf32>
    %cst_277 = arith.constant dense<0.000000e+00> : vector<8xf32>
    %685 = vector.multi_reduction <add>, %684, %cst_277 [1] : vector<8x32xf32> to vector<8xf32>
    %686 = vector.shape_cast %685 : vector<8xf32> to vector<8x1xf32>
    %687 = arith.mulf %683, %683 : vector<32x32xf32>
    %cst_278 = arith.constant dense<0.000000e+00> : vector<32xf32>
    %688 = vector.multi_reduction <add>, %687, %cst_278 [1] : vector<32x32xf32> to vector<32xf32>
    %689 = vector.shape_cast %688 : vector<32xf32> to vector<1x32xf32>
    "tpu.trace_start"() <{level = 10 : i32, message = "bd,kd->bk"}> : () -> ()
    %cst_279 = arith.constant dense<0.000000e+00> : vector<8x32xf32>
    %690 = tpu.matmul %682, %683, %cst_279 {dimension_numbers = #tpu.dot_dimension_numbers<[1], [1], [0], [0], [0, 0, 1, 0], [], []>} : vector<8x32xf32>, vector<32x32xf32>, vector<8x32xf32> -> vector<8x32xf32>
    "tpu.trace_stop"() : () -> ()
    %cst_280 = arith.constant 2.000000e+00 : f32
    %691 = vector.broadcast %cst_280 : f32 to vector<8x32xf32>
    %692 = arith.mulf %691, %690 : vector<8x32xf32>
    %693 = vector.broadcast %686 : vector<8x1xf32> to vector<8x32xf32>
    %694 = arith.subf %693, %692 : vector<8x32xf32>
    %695 = vector.broadcast %689 : vector<1x32xf32> to vector<8x32xf32>
    %696 = arith.addf %694, %695 : vector<8x32xf32>
    %697 = tpu.iota {dimensions = array<i32: 0>} : vector<8x32xi32>
    %698 = tpu.iota {dimensions = array<i32: 1>} : vector<8x32xi32>
    %c4_i32_281 = arith.constant 4 : i32
    %699 = vector.broadcast %c4_i32_281 : i32 to vector<8x32xi32>
    %700 = arith.cmpi slt, %697, %699 : vector<8x32xi32>
    %c16_i32 = arith.constant 16 : i32
    %701 = vector.broadcast %c16_i32 : i32 to vector<8x32xi32>
    %702 = arith.cmpi slt, %698, %701 : vector<8x32xi32>
    %703 = arith.andi %700, %702 : vector<8x32xi1>
    %c4_i32_282 = arith.constant 4 : i32
    %704 = vector.broadcast %c4_i32_282 : i32 to vector<8x32xi32>
    %705 = arith.cmpi sge, %697, %704 : vector<8x32xi32>
    %c16_i32_283 = arith.constant 16 : i32
    %706 = vector.broadcast %c16_i32_283 : i32 to vector<8x32xi32>
    %707 = arith.cmpi sge, %698, %706 : vector<8x32xi32>
    %708 = arith.andi %705, %707 : vector<8x32xi1>
    %709 = arith.ori %703, %708 : vector<8x32xi1>
    %cst_284 = arith.constant 1.000000e+30 : f32
    %710 = vector.broadcast %cst_284 : f32 to vector<8x32xf32>
    %711 = arith.select %709, %696, %710 : vector<8x32xi1>, vector<8x32xf32>
    %712 = tpu.reduce_index %711 {axis = 1 : i32, kind = #tpu.reduction_kind<arg_min>} : vector<8x32xf32> -> vector<8xi32>
    %713 = vector.shape_cast %712 : vector<8xi32> to vector<8x1xi32>
    %714 = vector.broadcast %713 : vector<8x1xi32> to vector<8x32xi32>
    %715 = arith.cmpi eq, %714, %698 : vector<8x32xi32>
    %716 = arith.extui %715 : vector<8x32xi1> to vector<8x32xi32>
    %717 = arith.sitofp %716 : vector<8x32xi32> to vector<8x32xf32>
    %cst_285 = arith.constant dense<0.000000e+00> : vector<8x32xf32>
    %718 = tpu.matmul %717, %683, %cst_285 {dimension_numbers = #tpu.dot_dimension_numbers<[1], [0], [0], [1], [0, 0, 1, 1], [], []>} : vector<8x32xf32>, vector<32x32xf32>, vector<8x32xf32> -> vector<8x32xf32>
    %719 = vector.extract_strided_slice %682 {offsets = [0, 0], sizes = [4, 32], strides = [1, 1]} : vector<8x32xf32> to vector<4x32xf32>
    %c0_286 = arith.constant 0 : index
    %c0_287 = arith.constant 0 : index
    %720 = vector.load %arg20[%c0_286, %c0_287] : memref<4x32xf32, #tpu.memory_space<vmem>>, vector<4x32xf32>
    tpu.vector_store %arg20[%c0_286, %c0_287], %719 {strides = array<i32>} : memref<4x32xf32, #tpu.memory_space<vmem>>, vector<4x32xf32>,
    %721 = vector.extract_strided_slice %682 {offsets = [4, 0], sizes = [4, 32], strides = [1, 1]} : vector<8x32xf32> to vector<4x32xf32>
    %c0_288 = arith.constant 0 : index
    %c0_289 = arith.constant 0 : index
    %722 = vector.load %arg21[%c0_288, %c0_289] : memref<4x32xf32, #tpu.memory_space<vmem>>, vector<4x32xf32>
    tpu.vector_store %arg21[%c0_288, %c0_289], %721 {strides = array<i32>} : memref<4x32xf32, #tpu.memory_space<vmem>>, vector<4x32xf32>,
    %723 = vector.extract_strided_slice %718 {offsets = [0, 0], sizes = [4, 32], strides = [1, 1]} : vector<8x32xf32> to vector<4x32xf32>
    %c0_290 = arith.constant 0 : index
    %c0_291 = arith.constant 0 : index
    %724 = vector.load %arg22[%c0_290, %c0_291] : memref<4x32xf32, #tpu.memory_space<vmem>>, vector<4x32xf32>
    tpu.vector_store %arg22[%c0_290, %c0_291], %723 {strides = array<i32>} : memref<4x32xf32, #tpu.memory_space<vmem>>, vector<4x32xf32>,
    %725 = vector.extract_strided_slice %718 {offsets = [4, 0], sizes = [4, 32], strides = [1, 1]} : vector<8x32xf32> to vector<4x32xf32>
    %c0_292 = arith.constant 0 : index
    %c0_293 = arith.constant 0 : index
    %726 = vector.load %arg23[%c0_292, %c0_293] : memref<4x32xf32, #tpu.memory_space<vmem>>, vector<4x32xf32>
    tpu.vector_store %arg23[%c0_292, %c0_293], %725 {strides = array<i32>} : memref<4x32xf32, #tpu.memory_space<vmem>>, vector<4x32xf32>,
    %c0_294 = arith.constant 0 : index
    %c0_295 = arith.constant 0 : index
    %727 = vector.load %arg15[%c0_294, %c0_295] : memref<48x128xf32, #tpu.memory_space<vmem>>, vector<48x128xf32>
    %c0_296 = arith.constant 0 : index
    %c0_297 = arith.constant 0 : index
    %728 = vector.load %arg16[%c0_296, %c0_297] : memref<1x128xf32, #tpu.memory_space<vmem>>, vector<1x128xf32>
    %c0_298 = arith.constant 0 : index
    %c0_299 = arith.constant 0 : index
    %729 = vector.load %arg17[%c0_298, %c0_299] : memref<32x16xf32, #tpu.memory_space<vmem>>, vector<32x16xf32>
    %c0_300 = arith.constant 0 : index
    %c0_301 = arith.constant 0 : index
    %730 = vector.load %arg18[%c0_300, %c0_301] : memref<1x16xf32, #tpu.memory_space<vmem>>, vector<1x16xf32>
    %c0_302 = arith.constant 0 : index
    %c0_303 = arith.constant 0 : index
    %c0_304 = arith.constant 0 : index
    %731 = vector.load %arg1[%c0_302, %c0_303, %c0_304] : memref<8x4x16xf32, #tpu.memory_space<vmem>>, vector<1x4x16xf32>
    %732 = vector.shape_cast %731 : vector<1x4x16xf32> to vector<4x16xf32>
    %c0_305 = arith.constant 0 : index
    %c0_306 = arith.constant 0 : index
    %c0_307 = arith.constant 0 : index
    %733 = vector.load %arg19[%c0_305, %c0_306, %c0_307] : memref<8x4x16xf32, #tpu.memory_space<vmem>>, vector<1x4x16xf32>
    %734 = vector.shape_cast %733 : vector<1x4x16xf32> to vector<4x16xf32>
    %735 = vector.shape_cast %732 : vector<4x16xf32> to vector<1x4x16xf32>
    tpu.vector_store %arg19[%c0_305, %c0_306, %c0_307], %735 {strides = array<i32>} : memref<8x4x16xf32, #tpu.memory_space<vmem>>, vector<1x4x16xf32>,
    %736 = vector.extract_strided_slice %718 {offsets = [0, 0], sizes = [4, 32], strides = [1, 1]} : vector<8x32xf32> to vector<4x32xf32>
    %737 = tpu.concatenate %732, %736 in 1 : vector<4x16xf32>, vector<4x32xf32> -> vector<4x48xf32>
    %738 = vector.extract_strided_slice %718 {offsets = [4, 0], sizes = [4, 32], strides = [1, 1]} : vector<8x32xf32> to vector<4x32xf32>
    %c1_i32_308 = arith.constant 1 : i32
    %cst_309 = arith.constant dense<0.000000e+00> : vector<4x128xf32>
    %739 = tpu.matmul %737, %727, %cst_309 {dimension_numbers = #tpu.dot_dimension_numbers<[1], [0], [0], [1], [0, 0, 1, 1], [], []>} : vector<4x48xf32>, vector<48x128xf32>, vector<4x128xf32> -> vector<4x128xf32>
    %740 = vector.broadcast %728 : vector<1x128xf32> to vector<4x128xf32>
    %741 = arith.addf %739, %740 : vector<4x128xf32>
    %742 = arith.negf %741 : vector<4x128xf32>
    %743 = math.exp %742 : vector<4x128xf32>
    %cst_310 = arith.constant 1.000000e+00 : f32
    %744 = vector.broadcast %cst_310 : f32 to vector<4x128xf32>
    %745 = arith.addf %744, %743 : vector<4x128xf32>
    %746 = arith.divf %744, %745 : vector<4x128xf32>
    %747 = vector.extract_strided_slice %746 {offsets = [0, 0], sizes = [4, 32], strides = [1, 1]} : vector<4x128xf32> to vector<4x32xf32>
    %748 = vector.extract_strided_slice %746 {offsets = [0, 32], sizes = [4, 32], strides = [1, 1]} : vector<4x128xf32> to vector<4x32xf32>
    %749 = vector.extract_strided_slice %746 {offsets = [0, 64], sizes = [4, 32], strides = [1, 1]} : vector<4x128xf32> to vector<4x32xf32>
    %cst_311 = arith.constant 2.000000e+00 : f32
    %750 = vector.broadcast %cst_311 : f32 to vector<4x32xf32>
    %751 = arith.mulf %750, %749 : vector<4x32xf32>
    %cst_312 = arith.constant 1.000000e+00 : f32
    %752 = vector.broadcast %cst_312 : f32 to vector<4x32xf32>
    %753 = arith.subf %751, %752 : vector<4x32xf32>
    %754 = vector.extract_strided_slice %746 {offsets = [0, 96], sizes = [4, 32], strides = [1, 1]} : vector<4x128xf32> to vector<4x32xf32>
    %755 = arith.mulf %748, %738 : vector<4x32xf32>
    %756 = arith.mulf %747, %753 : vector<4x32xf32>
    %757 = arith.addf %755, %756 : vector<4x32xf32>
    %758 = math.tanh %757 : vector<4x32xf32>
    %759 = arith.mulf %754, %758 : vector<4x32xf32>
    %cst_313 = arith.constant dense<0.000000e+00> : vector<4x16xf32>
    %760 = tpu.matmul %759, %729, %cst_313 {dimension_numbers = #tpu.dot_dimension_numbers<[1], [0], [0], [1], [0, 0, 1, 1], [], []>} : vector<4x32xf32>, vector<32x16xf32>, vector<4x16xf32> -> vector<4x16xf32>
    %761 = vector.broadcast %730 : vector<1x16xf32> to vector<4x16xf32>
    %762 = arith.addf %760, %761 : vector<4x16xf32>
    %763 = arith.index_cast %c1_i32_308 : i32 to index
    %c0_314 = arith.constant 0 : index
    %c0_315 = arith.constant 0 : index
    %764 = vector.load %arg19[%763, %c0_314, %c0_315] : memref<8x4x16xf32, #tpu.memory_space<vmem>>, vector<1x4x16xf32>
    %765 = vector.shape_cast %764 : vector<1x4x16xf32> to vector<4x16xf32>
    %766 = vector.shape_cast %762 : vector<4x16xf32> to vector<1x4x16xf32>
    tpu.vector_store %arg19[%763, %c0_314, %c0_315], %766 {strides = array<i32>} : memref<8x4x16xf32, #tpu.memory_space<vmem>>, vector<1x4x16xf32>,
    %767 = arith.index_cast %c1_i32_308 : i32 to index
    %768 = memref.load %arg0[%767] : memref<8xi32, #tpu.memory_space<smem>>
    %c0_i32_316 = arith.constant 0 : i32
    %769 = arith.cmpi sgt, %768, %c0_i32_316 : i32
    %770 = arith.index_cast %c1_i32_308 : i32 to index
    %c0_317 = arith.constant 0 : index
    %c0_318 = arith.constant 0 : index
    %771 = vector.load %arg1[%770, %c0_317, %c0_318] : memref<8x4x16xf32, #tpu.memory_space<vmem>>, vector<1x4x16xf32>
    %772 = vector.shape_cast %771 : vector<1x4x16xf32> to vector<4x16xf32>
    %773 = arith.select %769, %772, %762 : vector<4x16xf32>
    %774 = tpu.concatenate %773, %759 in 1 : vector<4x16xf32>, vector<4x32xf32> -> vector<4x48xf32>
    %c2_i32_319 = arith.constant 2 : i32
    %cst_320 = arith.constant dense<0.000000e+00> : vector<4x128xf32>
    %775 = tpu.matmul %774, %727, %cst_320 {dimension_numbers = #tpu.dot_dimension_numbers<[1], [0], [0], [1], [0, 0, 1, 1], [], []>} : vector<4x48xf32>, vector<48x128xf32>, vector<4x128xf32> -> vector<4x128xf32>
    %776 = vector.broadcast %728 : vector<1x128xf32> to vector<4x128xf32>
    %777 = arith.addf %775, %776 : vector<4x128xf32>
    %778 = arith.negf %777 : vector<4x128xf32>
    %779 = math.exp %778 : vector<4x128xf32>
    %cst_321 = arith.constant 1.000000e+00 : f32
    %780 = vector.broadcast %cst_321 : f32 to vector<4x128xf32>
    %781 = arith.addf %780, %779 : vector<4x128xf32>
    %782 = arith.divf %780, %781 : vector<4x128xf32>
    %783 = vector.extract_strided_slice %782 {offsets = [0, 0], sizes = [4, 32], strides = [1, 1]} : vector<4x128xf32> to vector<4x32xf32>
    %784 = vector.extract_strided_slice %782 {offsets = [0, 32], sizes = [4, 32], strides = [1, 1]} : vector<4x128xf32> to vector<4x32xf32>
    %785 = vector.extract_strided_slice %782 {offsets = [0, 64], sizes = [4, 32], strides = [1, 1]} : vector<4x128xf32> to vector<4x32xf32>
    %cst_322 = arith.constant 2.000000e+00 : f32
    %786 = vector.broadcast %cst_322 : f32 to vector<4x32xf32>
    %787 = arith.mulf %786, %785 : vector<4x32xf32>
    %cst_323 = arith.constant 1.000000e+00 : f32
    %788 = vector.broadcast %cst_323 : f32 to vector<4x32xf32>
    %789 = arith.subf %787, %788 : vector<4x32xf32>
    %790 = vector.extract_strided_slice %782 {offsets = [0, 96], sizes = [4, 32], strides = [1, 1]} : vector<4x128xf32> to vector<4x32xf32>
    %791 = arith.mulf %784, %757 : vector<4x32xf32>
    %792 = arith.mulf %783, %789 : vector<4x32xf32>
    %793 = arith.addf %791, %792 : vector<4x32xf32>
    %794 = math.tanh %793 : vector<4x32xf32>
    %795 = arith.mulf %790, %794 : vector<4x32xf32>
    %cst_324 = arith.constant dense<0.000000e+00> : vector<4x16xf32>
    %796 = tpu.matmul %795, %729, %cst_324 {dimension_numbers = #tpu.dot_dimension_numbers<[1], [0], [0], [1], [0, 0, 1, 1], [], []>} : vector<4x32xf32>, vector<32x16xf32>, vector<4x16xf32> -> vector<4x16xf32>
    %797 = vector.broadcast %730 : vector<1x16xf32> to vector<4x16xf32>
    %798 = arith.addf %796, %797 : vector<4x16xf32>
    %799 = arith.index_cast %c2_i32_319 : i32 to index
    %c0_325 = arith.constant 0 : index
    %c0_326 = arith.constant 0 : index
    %800 = vector.load %arg19[%799, %c0_325, %c0_326] : memref<8x4x16xf32, #tpu.memory_space<vmem>>, vector<1x4x16xf32>
    %801 = vector.shape_cast %800 : vector<1x4x16xf32> to vector<4x16xf32>
    %802 = vector.shape_cast %798 : vector<4x16xf32> to vector<1x4x16xf32>
    tpu.vector_store %arg19[%799, %c0_325, %c0_326], %802 {strides = array<i32>} : memref<8x4x16xf32, #tpu.memory_space<vmem>>, vector<1x4x16xf32>,
    %803 = arith.index_cast %c2_i32_319 : i32 to index
    %804 = memref.load %arg0[%803] : memref<8xi32, #tpu.memory_space<smem>>
    %c0_i32_327 = arith.constant 0 : i32
    %805 = arith.cmpi sgt, %804, %c0_i32_327 : i32
    %806 = arith.index_cast %c2_i32_319 : i32 to index
    %c0_328 = arith.constant 0 : index
    %c0_329 = arith.constant 0 : index
    %807 = vector.load %arg1[%806, %c0_328, %c0_329] : memref<8x4x16xf32, #tpu.memory_space<vmem>>, vector<1x4x16xf32>
    %808 = vector.shape_cast %807 : vector<1x4x16xf32> to vector<4x16xf32>
    %809 = arith.select %805, %808, %798 : vector<4x16xf32>
    %810 = tpu.concatenate %809, %795 in 1 : vector<4x16xf32>, vector<4x32xf32> -> vector<4x48xf32>
    %c3_i32_330 = arith.constant 3 : i32
    %cst_331 = arith.constant dense<0.000000e+00> : vector<4x128xf32>
    %811 = tpu.matmul %810, %727, %cst_331 {dimension_numbers = #tpu.dot_dimension_numbers<[1], [0], [0], [1], [0, 0, 1, 1], [], []>} : vector<4x48xf32>, vector<48x128xf32>, vector<4x128xf32> -> vector<4x128xf32>
    %812 = vector.broadcast %728 : vector<1x128xf32> to vector<4x128xf32>
    %813 = arith.addf %811, %812 : vector<4x128xf32>
    %814 = arith.negf %813 : vector<4x128xf32>
    %815 = math.exp %814 : vector<4x128xf32>
    %cst_332 = arith.constant 1.000000e+00 : f32
    %816 = vector.broadcast %cst_332 : f32 to vector<4x128xf32>
    %817 = arith.addf %816, %815 : vector<4x128xf32>
    %818 = arith.divf %816, %817 : vector<4x128xf32>
    %819 = vector.extract_strided_slice %818 {offsets = [0, 0], sizes = [4, 32], strides = [1, 1]} : vector<4x128xf32> to vector<4x32xf32>
    %820 = vector.extract_strided_slice %818 {offsets = [0, 32], sizes = [4, 32], strides = [1, 1]} : vector<4x128xf32> to vector<4x32xf32>
    %821 = vector.extract_strided_slice %818 {offsets = [0, 64], sizes = [4, 32], strides = [1, 1]} : vector<4x128xf32> to vector<4x32xf32>
    %cst_333 = arith.constant 2.000000e+00 : f32
    %822 = vector.broadcast %cst_333 : f32 to vector<4x32xf32>
    %823 = arith.mulf %822, %821 : vector<4x32xf32>
    %cst_334 = arith.constant 1.000000e+00 : f32
    %824 = vector.broadcast %cst_334 : f32 to vector<4x32xf32>
    %825 = arith.subf %823, %824 : vector<4x32xf32>
    %826 = vector.extract_strided_slice %818 {offsets = [0, 96], sizes = [4, 32], strides = [1, 1]} : vector<4x128xf32> to vector<4x32xf32>
    %827 = arith.mulf %820, %793 : vector<4x32xf32>
    %828 = arith.mulf %819, %825 : vector<4x32xf32>
    %829 = arith.addf %827, %828 : vector<4x32xf32>
    %830 = math.tanh %829 : vector<4x32xf32>
    %831 = arith.mulf %826, %830 : vector<4x32xf32>
    %cst_335 = arith.constant dense<0.000000e+00> : vector<4x16xf32>
    %832 = tpu.matmul %831, %729, %cst_335 {dimension_numbers = #tpu.dot_dimension_numbers<[1], [0], [0], [1], [0, 0, 1, 1], [], []>} : vector<4x32xf32>, vector<32x16xf32>, vector<4x16xf32> -> vector<4x16xf32>
    %833 = vector.broadcast %730 : vector<1x16xf32> to vector<4x16xf32>
    %834 = arith.addf %832, %833 : vector<4x16xf32>
    %835 = arith.index_cast %c3_i32_330 : i32 to index
    %c0_336 = arith.constant 0 : index
    %c0_337 = arith.constant 0 : index
    %836 = vector.load %arg19[%835, %c0_336, %c0_337] : memref<8x4x16xf32, #tpu.memory_space<vmem>>, vector<1x4x16xf32>
    %837 = vector.shape_cast %836 : vector<1x4x16xf32> to vector<4x16xf32>
    %838 = vector.shape_cast %834 : vector<4x16xf32> to vector<1x4x16xf32>
    tpu.vector_store %arg19[%835, %c0_336, %c0_337], %838 {strides = array<i32>} : memref<8x4x16xf32, #tpu.memory_space<vmem>>, vector<1x4x16xf32>,
    %839 = arith.index_cast %c3_i32_330 : i32 to index
    %840 = memref.load %arg0[%839] : memref<8xi32, #tpu.memory_space<smem>>
    %c0_i32_338 = arith.constant 0 : i32
    %841 = arith.cmpi sgt, %840, %c0_i32_338 : i32
    %842 = arith.index_cast %c3_i32_330 : i32 to index
    %c0_339 = arith.constant 0 : index
    %c0_340 = arith.constant 0 : index
    %843 = vector.load %arg1[%842, %c0_339, %c0_340] : memref<8x4x16xf32, #tpu.memory_space<vmem>>, vector<1x4x16xf32>
    %844 = vector.shape_cast %843 : vector<1x4x16xf32> to vector<4x16xf32>
    %845 = arith.select %841, %844, %834 : vector<4x16xf32>
    %846 = tpu.concatenate %845, %831 in 1 : vector<4x16xf32>, vector<4x32xf32> -> vector<4x48xf32>
    %c4_i32_341 = arith.constant 4 : i32
    %cst_342 = arith.constant dense<0.000000e+00> : vector<4x128xf32>
    %847 = tpu.matmul %846, %727, %cst_342 {dimension_numbers = #tpu.dot_dimension_numbers<[1], [0], [0], [1], [0, 0, 1, 1], [], []>} : vector<4x48xf32>, vector<48x128xf32>, vector<4x128xf32> -> vector<4x128xf32>
    %848 = vector.broadcast %728 : vector<1x128xf32> to vector<4x128xf32>
    %849 = arith.addf %847, %848 : vector<4x128xf32>
    %850 = arith.negf %849 : vector<4x128xf32>
    %851 = math.exp %850 : vector<4x128xf32>
    %cst_343 = arith.constant 1.000000e+00 : f32
    %852 = vector.broadcast %cst_343 : f32 to vector<4x128xf32>
    %853 = arith.addf %852, %851 : vector<4x128xf32>
    %854 = arith.divf %852, %853 : vector<4x128xf32>
    %855 = vector.extract_strided_slice %854 {offsets = [0, 0], sizes = [4, 32], strides = [1, 1]} : vector<4x128xf32> to vector<4x32xf32>
    %856 = vector.extract_strided_slice %854 {offsets = [0, 32], sizes = [4, 32], strides = [1, 1]} : vector<4x128xf32> to vector<4x32xf32>
    %857 = vector.extract_strided_slice %854 {offsets = [0, 64], sizes = [4, 32], strides = [1, 1]} : vector<4x128xf32> to vector<4x32xf32>
    %cst_344 = arith.constant 2.000000e+00 : f32
    %858 = vector.broadcast %cst_344 : f32 to vector<4x32xf32>
    %859 = arith.mulf %858, %857 : vector<4x32xf32>
    %cst_345 = arith.constant 1.000000e+00 : f32
    %860 = vector.broadcast %cst_345 : f32 to vector<4x32xf32>
    %861 = arith.subf %859, %860 : vector<4x32xf32>
    %862 = vector.extract_strided_slice %854 {offsets = [0, 96], sizes = [4, 32], strides = [1, 1]} : vector<4x128xf32> to vector<4x32xf32>
    %863 = arith.mulf %856, %829 : vector<4x32xf32>
    %864 = arith.mulf %855, %861 : vector<4x32xf32>
    %865 = arith.addf %863, %864 : vector<4x32xf32>
    %866 = math.tanh %865 : vector<4x32xf32>
    %867 = arith.mulf %862, %866 : vector<4x32xf32>
    %cst_346 = arith.constant dense<0.000000e+00> : vector<4x16xf32>
    %868 = tpu.matmul %867, %729, %cst_346 {dimension_numbers = #tpu.dot_dimension_numbers<[1], [0], [0], [1], [0, 0, 1, 1], [], []>} : vector<4x32xf32>, vector<32x16xf32>, vector<4x16xf32> -> vector<4x16xf32>
    %869 = vector.broadcast %730 : vector<1x16xf32> to vector<4x16xf32>
    %870 = arith.addf %868, %869 : vector<4x16xf32>
    %871 = arith.index_cast %c4_i32_341 : i32 to index
    %c0_347 = arith.constant 0 : index
    %c0_348 = arith.constant 0 : index
    %872 = vector.load %arg19[%871, %c0_347, %c0_348] : memref<8x4x16xf32, #tpu.memory_space<vmem>>, vector<1x4x16xf32>
    %873 = vector.shape_cast %872 : vector<1x4x16xf32> to vector<4x16xf32>
    %874 = vector.shape_cast %870 : vector<4x16xf32> to vector<1x4x16xf32>
    tpu.vector_store %arg19[%871, %c0_347, %c0_348], %874 {strides = array<i32>} : memref<8x4x16xf32, #tpu.memory_space<vmem>>, vector<1x4x16xf32>,
    %875 = arith.index_cast %c4_i32_341 : i32 to index
    %876 = memref.load %arg0[%875] : memref<8xi32, #tpu.memory_space<smem>>
    %c0_i32_349 = arith.constant 0 : i32
    %877 = arith.cmpi sgt, %876, %c0_i32_349 : i32
    %878 = arith.index_cast %c4_i32_341 : i32 to index
    %c0_350 = arith.constant 0 : index
    %c0_351 = arith.constant 0 : index
    %879 = vector.load %arg1[%878, %c0_350, %c0_351] : memref<8x4x16xf32, #tpu.memory_space<vmem>>, vector<1x4x16xf32>
    %880 = vector.shape_cast %879 : vector<1x4x16xf32> to vector<4x16xf32>
    %881 = arith.select %877, %880, %870 : vector<4x16xf32>
    %882 = tpu.concatenate %881, %867 in 1 : vector<4x16xf32>, vector<4x32xf32> -> vector<4x48xf32>
    %c5_i32_352 = arith.constant 5 : i32
    %cst_353 = arith.constant dense<0.000000e+00> : vector<4x128xf32>
    %883 = tpu.matmul %882, %727, %cst_353 {dimension_numbers = #tpu.dot_dimension_numbers<[1], [0], [0], [1], [0, 0, 1, 1], [], []>} : vector<4x48xf32>, vector<48x128xf32>, vector<4x128xf32> -> vector<4x128xf32>
    %884 = vector.broadcast %728 : vector<1x128xf32> to vector<4x128xf32>
    %885 = arith.addf %883, %884 : vector<4x128xf32>
    %886 = arith.negf %885 : vector<4x128xf32>
    %887 = math.exp %886 : vector<4x128xf32>
    %cst_354 = arith.constant 1.000000e+00 : f32
    %888 = vector.broadcast %cst_354 : f32 to vector<4x128xf32>
    %889 = arith.addf %888, %887 : vector<4x128xf32>
    %890 = arith.divf %888, %889 : vector<4x128xf32>
    %891 = vector.extract_strided_slice %890 {offsets = [0, 0], sizes = [4, 32], strides = [1, 1]} : vector<4x128xf32> to vector<4x32xf32>
    %892 = vector.extract_strided_slice %890 {offsets = [0, 32], sizes = [4, 32], strides = [1, 1]} : vector<4x128xf32> to vector<4x32xf32>
    %893 = vector.extract_strided_slice %890 {offsets = [0, 64], sizes = [4, 32], strides = [1, 1]} : vector<4x128xf32> to vector<4x32xf32>
    %cst_355 = arith.constant 2.000000e+00 : f32
    %894 = vector.broadcast %cst_355 : f32 to vector<4x32xf32>
    %895 = arith.mulf %894, %893 : vector<4x32xf32>
    %cst_356 = arith.constant 1.000000e+00 : f32
    %896 = vector.broadcast %cst_356 : f32 to vector<4x32xf32>
    %897 = arith.subf %895, %896 : vector<4x32xf32>
    %898 = vector.extract_strided_slice %890 {offsets = [0, 96], sizes = [4, 32], strides = [1, 1]} : vector<4x128xf32> to vector<4x32xf32>
    %899 = arith.mulf %892, %865 : vector<4x32xf32>
    %900 = arith.mulf %891, %897 : vector<4x32xf32>
    %901 = arith.addf %899, %900 : vector<4x32xf32>
    %902 = math.tanh %901 : vector<4x32xf32>
    %903 = arith.mulf %898, %902 : vector<4x32xf32>
    %cst_357 = arith.constant dense<0.000000e+00> : vector<4x16xf32>
    %904 = tpu.matmul %903, %729, %cst_357 {dimension_numbers = #tpu.dot_dimension_numbers<[1], [0], [0], [1], [0, 0, 1, 1], [], []>} : vector<4x32xf32>, vector<32x16xf32>, vector<4x16xf32> -> vector<4x16xf32>
    %905 = vector.broadcast %730 : vector<1x16xf32> to vector<4x16xf32>
    %906 = arith.addf %904, %905 : vector<4x16xf32>
    %907 = arith.index_cast %c5_i32_352 : i32 to index
    %c0_358 = arith.constant 0 : index
    %c0_359 = arith.constant 0 : index
    %908 = vector.load %arg19[%907, %c0_358, %c0_359] : memref<8x4x16xf32, #tpu.memory_space<vmem>>, vector<1x4x16xf32>
    %909 = vector.shape_cast %908 : vector<1x4x16xf32> to vector<4x16xf32>
    %910 = vector.shape_cast %906 : vector<4x16xf32> to vector<1x4x16xf32>
    tpu.vector_store %arg19[%907, %c0_358, %c0_359], %910 {strides = array<i32>} : memref<8x4x16xf32, #tpu.memory_space<vmem>>, vector<1x4x16xf32>,
    %911 = arith.index_cast %c5_i32_352 : i32 to index
    %912 = memref.load %arg0[%911] : memref<8xi32, #tpu.memory_space<smem>>
    %c0_i32_360 = arith.constant 0 : i32
    %913 = arith.cmpi sgt, %912, %c0_i32_360 : i32
    %914 = arith.index_cast %c5_i32_352 : i32 to index
    %c0_361 = arith.constant 0 : index
    %c0_362 = arith.constant 0 : index
    %915 = vector.load %arg1[%914, %c0_361, %c0_362] : memref<8x4x16xf32, #tpu.memory_space<vmem>>, vector<1x4x16xf32>
    %916 = vector.shape_cast %915 : vector<1x4x16xf32> to vector<4x16xf32>
    %917 = arith.select %913, %916, %906 : vector<4x16xf32>
    %918 = tpu.concatenate %917, %903 in 1 : vector<4x16xf32>, vector<4x32xf32> -> vector<4x48xf32>
    %c6_i32_363 = arith.constant 6 : i32
    %cst_364 = arith.constant dense<0.000000e+00> : vector<4x128xf32>
    %919 = tpu.matmul %918, %727, %cst_364 {dimension_numbers = #tpu.dot_dimension_numbers<[1], [0], [0], [1], [0, 0, 1, 1], [], []>} : vector<4x48xf32>, vector<48x128xf32>, vector<4x128xf32> -> vector<4x128xf32>
    %920 = vector.broadcast %728 : vector<1x128xf32> to vector<4x128xf32>
    %921 = arith.addf %919, %920 : vector<4x128xf32>
    %922 = arith.negf %921 : vector<4x128xf32>
    %923 = math.exp %922 : vector<4x128xf32>
    %cst_365 = arith.constant 1.000000e+00 : f32
    %924 = vector.broadcast %cst_365 : f32 to vector<4x128xf32>
    %925 = arith.addf %924, %923 : vector<4x128xf32>
    %926 = arith.divf %924, %925 : vector<4x128xf32>
    %927 = vector.extract_strided_slice %926 {offsets = [0, 0], sizes = [4, 32], strides = [1, 1]} : vector<4x128xf32> to vector<4x32xf32>
    %928 = vector.extract_strided_slice %926 {offsets = [0, 32], sizes = [4, 32], strides = [1, 1]} : vector<4x128xf32> to vector<4x32xf32>
    %929 = vector.extract_strided_slice %926 {offsets = [0, 64], sizes = [4, 32], strides = [1, 1]} : vector<4x128xf32> to vector<4x32xf32>
    %cst_366 = arith.constant 2.000000e+00 : f32
    %930 = vector.broadcast %cst_366 : f32 to vector<4x32xf32>
    %931 = arith.mulf %930, %929 : vector<4x32xf32>
    %cst_367 = arith.constant 1.000000e+00 : f32
    %932 = vector.broadcast %cst_367 : f32 to vector<4x32xf32>
    %933 = arith.subf %931, %932 : vector<4x32xf32>
    %934 = vector.extract_strided_slice %926 {offsets = [0, 96], sizes = [4, 32], strides = [1, 1]} : vector<4x128xf32> to vector<4x32xf32>
    %935 = arith.mulf %928, %901 : vector<4x32xf32>
    %936 = arith.mulf %927, %933 : vector<4x32xf32>
    %937 = arith.addf %935, %936 : vector<4x32xf32>
    %938 = math.tanh %937 : vector<4x32xf32>
    %939 = arith.mulf %934, %938 : vector<4x32xf32>
    %cst_368 = arith.constant dense<0.000000e+00> : vector<4x16xf32>
    %940 = tpu.matmul %939, %729, %cst_368 {dimension_numbers = #tpu.dot_dimension_numbers<[1], [0], [0], [1], [0, 0, 1, 1], [], []>} : vector<4x32xf32>, vector<32x16xf32>, vector<4x16xf32> -> vector<4x16xf32>
    %941 = vector.broadcast %730 : vector<1x16xf32> to vector<4x16xf32>
    %942 = arith.addf %940, %941 : vector<4x16xf32>
    %943 = arith.index_cast %c6_i32_363 : i32 to index
    %c0_369 = arith.constant 0 : index
    %c0_370 = arith.constant 0 : index
    %944 = vector.load %arg19[%943, %c0_369, %c0_370] : memref<8x4x16xf32, #tpu.memory_space<vmem>>, vector<1x4x16xf32>
    %945 = vector.shape_cast %944 : vector<1x4x16xf32> to vector<4x16xf32>
    %946 = vector.shape_cast %942 : vector<4x16xf32> to vector<1x4x16xf32>
    tpu.vector_store %arg19[%943, %c0_369, %c0_370], %946 {strides = array<i32>} : memref<8x4x16xf32, #tpu.memory_space<vmem>>, vector<1x4x16xf32>,
    %947 = arith.index_cast %c6_i32_363 : i32 to index
    %948 = memref.load %arg0[%947] : memref<8xi32, #tpu.memory_space<smem>>
    %c0_i32_371 = arith.constant 0 : i32
    %949 = arith.cmpi sgt, %948, %c0_i32_371 : i32
    %950 = arith.index_cast %c6_i32_363 : i32 to index
    %c0_372 = arith.constant 0 : index
    %c0_373 = arith.constant 0 : index
    %951 = vector.load %arg1[%950, %c0_372, %c0_373] : memref<8x4x16xf32, #tpu.memory_space<vmem>>, vector<1x4x16xf32>
    %952 = vector.shape_cast %951 : vector<1x4x16xf32> to vector<4x16xf32>
    %953 = arith.select %949, %952, %942 : vector<4x16xf32>
    %954 = tpu.concatenate %953, %939 in 1 : vector<4x16xf32>, vector<4x32xf32> -> vector<4x48xf32>
    %c7_i32_374 = arith.constant 7 : i32
    %cst_375 = arith.constant dense<0.000000e+00> : vector<4x128xf32>
    %955 = tpu.matmul %954, %727, %cst_375 {dimension_numbers = #tpu.dot_dimension_numbers<[1], [0], [0], [1], [0, 0, 1, 1], [], []>} : vector<4x48xf32>, vector<48x128xf32>, vector<4x128xf32> -> vector<4x128xf32>
    %956 = vector.broadcast %728 : vector<1x128xf32> to vector<4x128xf32>
    %957 = arith.addf %955, %956 : vector<4x128xf32>
    %958 = arith.negf %957 : vector<4x128xf32>
    %959 = math.exp %958 : vector<4x128xf32>
    %cst_376 = arith.constant 1.000000e+00 : f32
    %960 = vector.broadcast %cst_376 : f32 to vector<4x128xf32>
    %961 = arith.addf %960, %959 : vector<4x128xf32>
    %962 = arith.divf %960, %961 : vector<4x128xf32>
    %963 = vector.extract_strided_slice %962 {offsets = [0, 0], sizes = [4, 32], strides = [1, 1]} : vector<4x128xf32> to vector<4x32xf32>
    %964 = vector.extract_strided_slice %962 {offsets = [0, 32], sizes = [4, 32], strides = [1, 1]} : vector<4x128xf32> to vector<4x32xf32>
    %965 = vector.extract_strided_slice %962 {offsets = [0, 64], sizes = [4, 32], strides = [1, 1]} : vector<4x128xf32> to vector<4x32xf32>
    %cst_377 = arith.constant 2.000000e+00 : f32
    %966 = vector.broadcast %cst_377 : f32 to vector<4x32xf32>
    %967 = arith.mulf %966, %965 : vector<4x32xf32>
    %cst_378 = arith.constant 1.000000e+00 : f32
    %968 = vector.broadcast %cst_378 : f32 to vector<4x32xf32>
    %969 = arith.subf %967, %968 : vector<4x32xf32>
    %970 = vector.extract_strided_slice %962 {offsets = [0, 96], sizes = [4, 32], strides = [1, 1]} : vector<4x128xf32> to vector<4x32xf32>
    %971 = arith.mulf %964, %937 : vector<4x32xf32>
    %972 = arith.mulf %963, %969 : vector<4x32xf32>
    %973 = arith.addf %971, %972 : vector<4x32xf32>
    %974 = math.tanh %973 : vector<4x32xf32>
    %975 = arith.mulf %970, %974 : vector<4x32xf32>
    %cst_379 = arith.constant dense<0.000000e+00> : vector<4x16xf32>
    %976 = tpu.matmul %975, %729, %cst_379 {dimension_numbers = #tpu.dot_dimension_numbers<[1], [0], [0], [1], [0, 0, 1, 1], [], []>} : vector<4x32xf32>, vector<32x16xf32>, vector<4x16xf32> -> vector<4x16xf32>
    %977 = vector.broadcast %730 : vector<1x16xf32> to vector<4x16xf32>
    %978 = arith.addf %976, %977 : vector<4x16xf32>
    %979 = arith.index_cast %c7_i32_374 : i32 to index
    %c0_380 = arith.constant 0 : index
    %c0_381 = arith.constant 0 : index
    %980 = vector.load %arg19[%979, %c0_380, %c0_381] : memref<8x4x16xf32, #tpu.memory_space<vmem>>, vector<1x4x16xf32>
    %981 = vector.shape_cast %980 : vector<1x4x16xf32> to vector<4x16xf32>
    %982 = vector.shape_cast %978 : vector<4x16xf32> to vector<1x4x16xf32>
    tpu.vector_store %arg19[%979, %c0_380, %c0_381], %982 {strides = array<i32>} : memref<8x4x16xf32, #tpu.memory_space<vmem>>, vector<1x4x16xf32>,
    %983 = arith.index_cast %c7_i32_374 : i32 to index
    %984 = memref.load %arg0[%983] : memref<8xi32, #tpu.memory_space<smem>>
    %c0_i32_382 = arith.constant 0 : i32
    %985 = arith.cmpi sgt, %984, %c0_i32_382 : i32
    %986 = arith.index_cast %c7_i32_374 : i32 to index
    %c0_383 = arith.constant 0 : index
    %c0_384 = arith.constant 0 : index
    %987 = vector.load %arg1[%986, %c0_383, %c0_384] : memref<8x4x16xf32, #tpu.memory_space<vmem>>, vector<1x4x16xf32>
    %988 = vector.shape_cast %987 : vector<1x4x16xf32> to vector<4x16xf32>
    %989 = arith.select %985, %988, %978 : vector<4x16xf32>
    %990 = tpu.concatenate %989, %975 in 1 : vector<4x16xf32>, vector<4x32xf32> -> vector<4x48xf32>
    %c7_i32_385 = arith.constant 7 : i32
    return
  }
}

</mosaic_0001>

<bundles_post_ra>
// kernel: model_forward.1
= control target key start
LH: loop header
LB: loop body
LE: loop exit
PB: predicated region body
PF: predicated region fallthrough
CT: control target
= control target key end

     0   :  { %s6764_s0 = inlined_call_operand.vmem [shape: s32[8], index: 0, kind: input, shape index: {}]   ;;  %s6765_s1 = inlined_call_operand.vmem [shape: f32[8,4,16], index: 1, kind: input, shape index: {}]   ;;  %s6766_s2 = inlined_call_operand.hbm [shape: f32[16,128], index: 2, kind: input, shape index: {}]   ;;  %s6767_s3 = inlined_call_operand.hbm [shape: f32[16,128], index: 3, kind: input, shape index: {}]   ;;  %s6768_s4 = inlined_call_operand.hbm [shape: f32[1,128], index: 4, kind: input, shape index: {}]   ;;  %s6769_s5 = inlined_call_operand.hbm [shape: f32[1,128], index: 5, kind: input, shape index: {}]   ;;  %s6770_s6 = inlined_call_operand.vmem [shape: f32[32,256], index: 6, kind: input, shape index: {}]   ;;  %s6771_s7 = inlined_call_operand.vmem [shape: f32[64,128], index: 7, kind: input, shape index: {}]   ;;  %s6772_s8 = inlined_call_operand.vmem [shape: f32[64,128], index: 8, kind: input, shape index: {}]   ;;  %s6773_s9 = inlined_call_operand.hbm [shape: f32[1,128], index: 9, kind: input, shape index: {}]   ;;  %s6774_s10 = inlined_call_operand.hbm [shape: f32[1,128], index: 10, kind: input, shape index: {}]   ;;  %s6775_s11 = inlined_call_operand.hbm [shape: f32[32,256], index: 11, kind: input, shape index: {}]   ;;  %s6776_s12 = inlined_call_operand.vmem [shape: f32[128,32], index: 12, kind: input, shape index: {}]   ;;  %s6777_s13 = inlined_call_operand.vmem [shape: f32[1,32], index: 13, kind: input, shape index: {}]   ;;  %s6778_s14 = inlined_call_operand.hbm [shape: f32[32,32], index: 14, kind: input, shape index: {}]   ;;  %s6779_s15 = inlined_call_operand.hbm [shape: f32[48,128], index: 15, kind: input, shape index: {}]   ;;  %s6780_s16 = inlined_call_operand.hbm [shape: f32[1,128], index: 16, kind: input, shape index: {}]   ;;  %s6781_s17 = inlined_call_operand.vmem [shape: f32[32,16], index: 17, kind: input, shape index: {}]   ;;  %s6782_s18 = inlined_call_operand.hbm [shape: f32[1,16], index: 18, kind: input, shape index: {}]   ;;  %s6783_s19 = inlined_call_operand.hbm [shape: f32[8,4,16], index: 19, kind: output, shape index: {0}]   ;;  %s6784_s20 = inlined_call_operand.hbm [shape: f32[4,32], index: 20, kind: output, shape index: {1}]   ;;  %s6785_s21 = inlined_call_operand.hbm [shape: f32[4,32], index: 21, kind: output, shape index: {2}]   ;;  %s6786_s22 = inlined_call_operand.hbm [shape: f32[4,32], index: 22, kind: output, shape index: {3}]   ;;  %s6787_s23 = inlined_call_operand.hbm [shape: f32[4,32], index: 23, kind: output, shape index: {4}]  }
   0x1   :  { %6801 = sst [smem:[#allocation42_spill]] %s6764_s0 }
   0x2   :  { %6802 = sst [smem:[#allocation43_spill]] %s6765_s1 }
   0x3   :  { %6803 = sst [smem:[#allocation44_spill]] %s6766_s2 }
   0x4   :  { %6804 = sst [smem:[#allocation45_spill]] %s6767_s3 }
   0x5   :  { %6805 = sst [smem:[#allocation46_spill]] %s6768_s4 }
   0x6   :  { %6806 = sst [smem:[#allocation47_spill]] %s6769_s5 }
   0x7   :  { %6807 = sst [smem:[#allocation48_spill]] %s6770_s6 }
   0x8   :  { %6808 = sst [smem:[#allocation49_spill]] %s6771_s7 }
   0x9   :  { %6809 = sst [smem:[#allocation50_spill]] %s6783_s19 }
   0xa   :  { %6810 = sst [smem:[#allocation51_spill]] %s6787_s23 }
   0xb   :  { %29 = vsyncpa [#allocation8], 0 }
   0xc   :  { %30 = vsyncpa [#allocation6], 0 }
   0xd   :  { %31 = vsyncpa [#allocation11], 0 }
   0xe   :  { %32 = vsyncpa [#allocation14], 0 }
   0xf   :  { %33 = vsyncpa [#allocation17], 0 }
  0x10   :  { %34 = vsyncpa [#allocation20], 0 }
  0x11   :  { %35 = vsyncpa [#allocation23], 0 }
  0x12   :  { %36 = vsyncpa [#allocation7], 0 }
  0x13   :  { %37 = vsyncpa [#allocation27], 0 }
  0x14   :  { %38 = vsyncpa [#allocation30], 0  ;;  %s5696_s4 = smov [#allocation10]   ;;  %s5697_s24 = smov [#allocation13]  }
  0x15   :  { %s68_s30 = sshll.u32 %s5696_s4, 4  ;;  %s91_s25 = sshll.u32 %s5697_s24, 4  ;;  %s69_s30 = int_to_ptr.vmem [resolvable:$true] %s68_s30  ;;  %s5845_s25 = int_to_ptr.vmem [resolvable:$true] %s91_s25 }
  0x16   :  { %s6811_s26 = sld [smem:[#allocation45_spill]] }
  0x1c   :  { %s5312_s2 = scalar_lea.hbm %s6811_s26, 256 }
  0x1d   :  { %p5313_p0 = scmp.ne.s32.totalorder %s6811_s26, %s5312_s2  ;;  %p5316_p1 = scmp.lt.u32.totalorder %s5312_s2, %s6811_s26 }
  0x1f   :  { %p5318_p2 = pnand %p5316_p1, %p5313_p0 }
  0x21   :  { %5321 = shalt.err (!%p5318_p2)
}
  0x22   :  { %s5322_s29 = scalar_lea.vmem %s69_s30, 256  ;;  %p5327_p4 = scmp.lt.s32.totalorder %s69_s30, %s69_s30 }
  0x23   :  { %p5323_p3 = scmp.ne.s32.totalorder %s69_s30, %s5322_s29  ;;  %p5328_p5 = scmp.lt.s32.totalorder %s5322_s29, %s5322_s29 }
  0x25   :  { %p5329_p6 = por %p5328_p5, %p5327_p4 }
  0x27   :  { %p5330_p7 = pnand %p5329_p6, %p5323_p3 }
  0x29   :  { %5333 = shalt.err (!%p5330_p7)
}
  0x2a   :  { %s6795_s3 = smov 128   ;;  %s6797_s0 = smov 8  }
  0x2b   :  { %74 = dma.hbm_to_vmem [thread:$0]  %s6811_s26, 256, %s69_s30, [#allocation11], %s6795_s3, %s6795_s3, %s6797_s0  }
  0x2c   :  { %s6812_s2 = sld [smem:[#allocation47_spill]] }
  0x32   :  { %s5334_s6 = scalar_lea.hbm %s6812_s2, 16 }
  0x33   :  { %p5335_p8 = scmp.ne.s32.totalorder %s6812_s2, %s5334_s6  ;;  %p5338_p9 = scmp.lt.u32.totalorder %s5334_s6, %s6812_s2 }
  0x35   :  { %p5340_p10 = pnand %p5338_p9, %p5335_p8 }
  0x37   :  { %5343 = shalt.err (!%p5340_p10)
}
  0x38   :  { %s5344_s4 = scalar_lea.vmem %s5845_s25, 16  ;;  %s5348_s30 = scalar_lea.vmem %s5845_s25, 32 }
  0x39   :  { %p5345_p11 = scmp.ne.s32.totalorder %s5845_s25, %s5344_s4  ;;  %p5349_p12 = scmp.lt.s32.totalorder %s5845_s25, %s5845_s25 }
  0x3a   :  { %p5350_p13 = scmp.lt.s32.totalorder %s5348_s30, %s5344_s4 }
  0x3c   :  { %p5351_p0 = por %p5350_p13, %p5349_p12 }
  0x3e   :  { %p5352_p1 = pnand %p5351_p0, %p5345_p11 }
  0x40   :  { %5355 = shalt.err (!%p5352_p1)
}
  0x41   :  { %94 = dma.hbm_to_vmem [thread:$0]  %s6812_s2, 16, %s5845_s25, [#allocation14]  }
  0x42   :  { %s5700_s5 = smov [#allocation16]   ;;  %s5701_s6 = smov [#allocation19]  }
  0x43   :  { %s117_s1 = sshll.u32 %s5700_s5, 4  ;;  %s142_s27 = sshll.u32 %s5701_s6, 4  ;;  %s118_s1 = int_to_ptr.vmem [resolvable:$true] %s117_s1  ;;  %s5880_s27 = int_to_ptr.vmem [resolvable:$true] %s142_s27 }
  0x44   :  { %s5356_s29 = scalar_lea.hbm %s6774_s10, 16 }
  0x45   :  { %p5357_p2 = scmp.ne.s32.totalorder %s6774_s10, %s5356_s29  ;;  %p5360_p3 = scmp.lt.u32.totalorder %s5356_s29, %s6774_s10 }
  0x47   :  { %p5362_p4 = pnand %p5360_p3, %p5357_p2 }
  0x49   :  { %5365 = shalt.err (!%p5362_p4)
}
  0x4a   :  { %s5366_s25 = scalar_lea.vmem %s118_s1, 16  ;;  %s5370_s2 = scalar_lea.vmem %s118_s1, 32 }
  0x4b   :  { %p5367_p5 = scmp.ne.s32.totalorder %s118_s1, %s5366_s25  ;;  %p5371_p6 = scmp.lt.s32.totalorder %s118_s1, %s118_s1 }
  0x4c   :  { %p5372_p7 = scmp.lt.s32.totalorder %s5370_s2, %s5366_s25 }
  0x4e   :  { %p5373_p8 = por %p5372_p7, %p5371_p6 }
  0x50   :  { %p5374_p9 = pnand %p5373_p8, %p5367_p5 }
  0x52   :  { %5377 = shalt.err (!%p5374_p9)
}
  0x53   :  { %120 = dma.hbm_to_vmem [thread:$0]  %s6774_s10, 16, %s118_s1, [#allocation17]  }
  0x54   :  { %s5378_s7 = scalar_lea.hbm %s6778_s14, 512 }
  0x55   :  { %p5379_p10 = scmp.ne.s32.totalorder %s6778_s14, %s5378_s7  ;;  %p5382_p11 = scmp.lt.u32.totalorder %s5378_s7, %s6778_s14 }
  0x57   :  { %p5384_p12 = pnand %p5382_p11, %p5379_p10 }
  0x59   :  { %5387 = shalt.err (!%p5384_p12)
}
  0x5a   :  { %s5388_s4 = scalar_lea.vmem %s5880_s27, 512  ;;  %p5393_p0 = scmp.lt.s32.totalorder %s5880_s27, %s5880_s27 }
  0x5b   :  { %p5389_p13 = scmp.ne.s32.totalorder %s5880_s27, %s5388_s4  ;;  %p5394_p1 = scmp.lt.s32.totalorder %s5388_s4, %s5388_s4 }
  0x5d   :  { %p5395_p2 = por %p5394_p1, %p5393_p0 }
  0x5f   :  { %p5396_p3 = pnand %p5395_p2, %p5389_p13 }
  0x61   :  { %5399 = shalt.err (!%p5396_p3)
}
  0x62   :  { %s6813_s10 = smov 8   ;;  %s6814_s1 = smov 128  }
  0x63   :  { %148 = dma.hbm_to_vmem [thread:$0]  %s6778_s14, 512, %s5880_s27, [#allocation20], %s6814_s1, %s6814_s1, %s6813_s10  }
  0x64   :  { %s6815_s24 = sld [smem:[#allocation42_spill]]  ;;  %s5702_s6 = smov [#allocation22]  }
  0x65   :  { %s167_s7 = sshll.u32 %s5702_s6, 4  ;;  %s5400_s28 = scalar_lea.hbm %s6780_s16, 16  ;;  %s168_s7 = int_to_ptr.vmem [resolvable:$true] %s167_s7 }
  0x66   :  { %p5401_p4 = scmp.ne.s32.totalorder %s6780_s16, %s5400_s28  ;;  %p5404_p5 = scmp.lt.u32.totalorder %s5400_s28, %s6780_s16 }
  0x68   :  { %p5406_p6 = pnand %p5404_p5, %p5401_p4 }
  0x6a   :  { %s45_s5 = sshll.u32 %s6815_s24, 4  ;;  %s46_s5 = int_to_ptr.vmem [resolvable:$true] %s45_s5 }
  0x6b   :  { %5409 = shalt.err (!%p5406_p6)
}
  0x6c   :  { %s5410_s14 = scalar_lea.vmem %s168_s7, 16  ;;  %s5414_s27 = scalar_lea.vmem %s168_s7, 32 }
  0x6d   :  { %p5411_p7 = scmp.ne.s32.totalorder %s168_s7, %s5410_s14  ;;  %p5415_p8 = scmp.lt.s32.totalorder %s168_s7, %s168_s7 }
  0x6e   :  { %p5416_p9 = scmp.lt.s32.totalorder %s5414_s27, %s5410_s14 }
  0x70   :  { %p5417_p10 = por %p5416_p9, %p5415_p8 }
  0x72   :  { %p5418_p11 = pnand %p5417_p10, %p5411_p7 }
  0x74   :  { %5421 = shalt.err (!%p5418_p11)
}
  0x75   :  { %170 = dma.hbm_to_vmem [thread:$0]  %s6780_s16, 16, %s168_s7, [#allocation23]  }
  0x76   :  { %s5422_s2 = scalar_lea.vmem %s46_s5, 16  ;;  %p5427_p13 = scmp.lt.s32.totalorder %s46_s5, %s46_s5 }
  0x77   :  { %p5423_p12 = scmp.ne.s32.totalorder %s46_s5, %s5422_s2  ;;  %p5428_p0 = scmp.lt.s32.totalorder %s5422_s2, %s5422_s2 }
  0x79   :  { %p5429_p1 = por %p5428_p0, %p5427_p13 }
  0x7b   :  { %p5430_p2 = pnand %p5429_p1, %p5423_p12 }
  0x7d   :  { %5433 = shalt.err (!%p5430_p2)
}
  0x7e   :  { %s5703_s19 = smov [#allocation5]   ;;  %s5704_s23 = smov [#allocation9]  }
  0x7f   :  { %48 = dma.vmem_to_smem %s46_s5, 16, %s5703_s19, [#allocation8]  }
  0x80   :  { %s56_s26 = sshll.u32 %s5704_s23, 4  ;;  %s5705_s24 = smov [#allocation12]   ;;  %s57_s26 = int_to_ptr.vmem [resolvable:$true] %s56_s26 }
  0x81   :  { %s81_s6 = sshll.u32 %s5705_s24, 4  ;;  %s6816_s28 = sld [smem:[#allocation44_spill]]  ;;  %s82_s6 = int_to_ptr.vmem [resolvable:$true] %s81_s6 }
  0x87   :  { %s5434_s29 = scalar_lea.hbm %s6816_s28, 256 }
  0x88   :  { %p5435_p3 = scmp.ne.s32.totalorder %s6816_s28, %s5434_s29  ;;  %p5438_p4 = scmp.lt.u32.totalorder %s5434_s29, %s6816_s28 }
  0x8a   :  { %p5440_p5 = pnand %p5438_p4, %p5435_p3 }
  0x8c   :  { %5443 = shalt.err (!%p5440_p5)
}
  0x8d   :  { %s5444_s5 = scalar_lea.vmem %s57_s26, 256  ;;  %p5449_p7 = scmp.lt.s32.totalorder %s57_s26, %s57_s26 }
  0x8e   :  { %p5445_p6 = scmp.ne.s32.totalorder %s57_s26, %s5444_s5  ;;  %p5450_p8 = scmp.lt.s32.totalorder %s5444_s5, %s5444_s5 }
  0x90   :  { %p5451_p9 = por %p5450_p8, %p5449_p7 }
  0x92   :  { %p5452_p10 = pnand %p5451_p9, %p5445_p6 }
  0x94   :  { %5455 = shalt.err (!%p5452_p10)
}
  0x95   :  { %62 = dma.hbm_to_vmem [thread:$0]  %s6816_s28, 256, %s57_s26, [#allocation6], %s6814_s1, %s6814_s1, %s6813_s10  }
  0x96   :  { %s6817_s19 = sld [smem:[#allocation46_spill]] }
  0x9c   :  { %s5456_s23 = scalar_lea.hbm %s6817_s19, 16 }
  0x9d   :  { %p5457_p11 = scmp.ne.s32.totalorder %s6817_s19, %s5456_s23  ;;  %p5460_p12 = scmp.lt.u32.totalorder %s5456_s23, %s6817_s19 }
  0x9f   :  { %p5462_p13 = pnand %p5460_p12, %p5457_p11 }
  0xa1   :  { %5465 = shalt.err (!%p5462_p13)
}
  0xa2   :  { %s5466_s16 = scalar_lea.vmem %s82_s6, 16  ;;  %s5470_s7 = scalar_lea.vmem %s82_s6, 32 }
  0xa3   :  { %p5467_p0 = scmp.ne.s32.totalorder %s82_s6, %s5466_s16  ;;  %p5471_p1 = scmp.lt.s32.totalorder %s82_s6, %s82_s6 }
  0xa4   :  { %p5472_p2 = scmp.lt.s32.totalorder %s5470_s7, %s5466_s16 }
  0xa6   :  { %p5473_p3 = por %p5472_p2, %p5471_p1 }
  0xa8   :  { %p5474_p4 = pnand %p5473_p3, %p5467_p0 }
  0xaa   :  { %5477 = shalt.err (!%p5474_p4)
}
  0xab   :  { %84 = dma.hbm_to_vmem [thread:$0]  %s6817_s19, 16, %s82_s6, [#allocation11]  }
  0xac   :  { %s5706_s4 = smov [#allocation15]   ;;  %s5707_s5 = smov [#allocation18]  }
  0xad   :  { %s107_s14 = sshll.u32 %s5706_s4, 4  ;;  %s126_s27 = sshll.u32 %s5707_s5, 4  ;;  %s108_s14 = int_to_ptr.vmem [resolvable:$true] %s107_s14  ;;  %s5956_s27 = int_to_ptr.vmem [resolvable:$true] %s126_s27 }
  0xae   :  { %s5478_s2 = scalar_lea.hbm %s6773_s9, 16 }
  0xaf   :  { %p5479_p5 = scmp.ne.s32.totalorder %s6773_s9, %s5478_s2  ;;  %p5482_p6 = scmp.lt.u32.totalorder %s5478_s2, %s6773_s9 }
  0xb1   :  { %p5484_p7 = pnand %p5482_p6, %p5479_p5 }
  0xb3   :  { %5487 = shalt.err (!%p5484_p7)
}
  0xb4   :  { %s5488_s6 = scalar_lea.vmem %s108_s14, 16  ;;  %s5492_s19 = scalar_lea.vmem %s108_s14, 32 }
  0xb5   :  { %p5489_p8 = scmp.ne.s32.totalorder %s108_s14, %s5488_s6  ;;  %p5493_p9 = scmp.lt.s32.totalorder %s108_s14, %s108_s14 }
  0xb6   :  { %p5494_p10 = scmp.lt.s32.totalorder %s5492_s19, %s5488_s6 }
  0xb8   :  { %p5495_p11 = por %p5494_p10, %p5493_p9 }
  0xba   :  { %p5496_p12 = pnand %p5495_p11, %p5489_p8 }
  0xbc   :  { %5499 = shalt.err (!%p5496_p12)
}
  0xbd   :  { %110 = dma.hbm_to_vmem [thread:$0]  %s6773_s9, 16, %s108_s14, [#allocation14]  }
  0xbe   :  { %s5500_s28 = scalar_lea.hbm %s6775_s11, 1024 }
  0xbf   :  { %p5501_p13 = scmp.ne.s32.totalorder %s6775_s11, %s5500_s28  ;;  %p5504_p0 = scmp.lt.u32.totalorder %s5500_s28, %s6775_s11 }
  0xc1   :  { %p5506_p1 = pnand %p5504_p0, %p5501_p13 }
  0xc3   :  { %5509 = shalt.err (!%p5506_p1)
}
  0xc4   :  { %s5510_s2 = scalar_lea.vmem %s5956_s27, 1024  ;;  %p5515_p3 = scmp.lt.s32.totalorder %s5956_s27, %s5956_s27 }
  0xc5   :  { %p5511_p2 = scmp.ne.s32.totalorder %s5956_s27, %s5510_s2  ;;  %p5516_p4 = scmp.lt.s32.totalorder %s5510_s2, %s5510_s2 }
  0xc7   :  { %p5517_p5 = por %p5516_p4, %p5515_p3 }
  0xc9   :  { %p5518_p6 = pnand %p5517_p5, %p5511_p2 }
  0xcb   :  { %5521 = shalt.err (!%p5518_p6)
}
  0xcc   :  { %s5708_s9 = smov 256   ;;  %s5709_s14 = smov 16  }
  0xcd   :  { %132 = dma.hbm_to_vmem [thread:$0]  %s6775_s11, 1024, %s5956_s27, [#allocation17], %s5708_s9, %s5708_s9, %s5709_s14  }
  0xce   :  { %s5710_s3 = smov [#allocation21]   ;;  %s5711_s6 = smov [#allocation24]  }
  0xcf   :  { %s154_s0 = sshll.u32 %s5710_s3, 4  ;;  %s179_s19 = sshll.u32 %s5711_s6, 4  ;;  %s155_s0 = int_to_ptr.vmem [resolvable:$true] %s154_s0  ;;  %s180_s19 = int_to_ptr.vmem [resolvable:$true] %s179_s19 }
  0xd0   :  { %s5522_s7 = scalar_lea.hbm %s6779_s15, 768 }
  0xd1   :  { %p5523_p7 = scmp.ne.s32.totalorder %s6779_s15, %s5522_s7  ;;  %p5526_p8 = scmp.lt.u32.totalorder %s5522_s7, %s6779_s15 }
  0xd3   :  { %p5528_p9 = pnand %p5526_p8, %p5523_p7 }
  0xd5   :  { %5531 = shalt.err (!%p5528_p9)
}
  0xd6   :  { %s5532_s11 = scalar_lea.vmem %s155_s0, 768  ;;  %p5537_p11 = scmp.lt.s32.totalorder %s155_s0, %s155_s0 }
  0xd7   :  { %p5533_p10 = scmp.ne.s32.totalorder %s155_s0, %s5532_s11  ;;  %p5538_p12 = scmp.lt.s32.totalorder %s5532_s11, %s5532_s11 }
  0xd9   :  { %p5539_p13 = por %p5538_p12, %p5537_p11 }
  0xdb   :  { %p5540_p0 = pnand %p5539_p13, %p5533_p10 }
  0xdd   :  { %5543 = shalt.err (!%p5540_p0)
}
  0xde   :  { %160 = dma.hbm_to_vmem [thread:$0]  %s6779_s15, 768, %s155_s0, [#allocation20], %s6814_s1, %s6814_s1, %s6813_s10  }
  0xdf   :  { %s5544_s9 = scalar_lea.hbm %s6782_s18, 16 }
  0xe0   :  { %p5545_p1 = scmp.ne.s32.totalorder %s6782_s18, %s5544_s9  ;;  %p5548_p2 = scmp.lt.u32.totalorder %s5544_s9, %s6782_s18 }
  0xe2   :  { %p5550_p3 = pnand %p5548_p2, %p5545_p1 }
  0xe4   :  { %5553 = shalt.err (!%p5550_p3)
}
  0xe5   :  { %s5554_s29 = scalar_lea.vmem %s180_s19, 16  ;;  %s5558_s16 = scalar_lea.vmem %s180_s19, 32 }
  0xe6   :  { %p5555_p4 = scmp.ne.s32.totalorder %s180_s19, %s5554_s29  ;;  %p5559_p5 = scmp.lt.s32.totalorder %s180_s19, %s180_s19 }
  0xe7   :  { %p5560_p6 = scmp.lt.s32.totalorder %s5558_s16, %s5554_s29 }
  0xe9   :  { %p5561_p7 = por %p5560_p6, %p5559_p5 }
  0xeb   :  { %p5562_p8 = pnand %p5561_p7, %p5555_p4 }
  0xed   :  { %5565 = shalt.err (!%p5562_p8)
}
  0xee   :  { %182 = dma.hbm_to_vmem [thread:$0]  %s6782_s18, 16, %s180_s19, [#allocation23]  }
  0xef   :  { %5676 = dma.done.wait [#allocation8], 16  }
  0xf0   :  { %5677 = vsyncadd [#allocation8], 4294967280 }
  0xf1   :  { %5678 = dma.done.wait [#allocation6], 256  }
  0xf2   :  { %5679 = vsyncadd [#allocation6], 4294967040 }
  0xf3   :  { %5680 = dma.done.wait [#allocation11], 272  }
  0xf4   :  { %5681 = vsyncadd [#allocation11], 4294967024 }
  0xf5   :  { %5682 = dma.done.wait [#allocation14], 32  }
  0xf6   :  { %5683 = vsyncadd [#allocation14], 4294967264 }
  0xf7   :  { %5684 = dma.done.wait [#allocation17], 1040  }
  0xf8   :  { %5685 = vsyncadd [#allocation17], 4294966256 }
  0xf9   :  { %5686 = dma.done.wait [#allocation20], 1280  }
  0xfa   :  { %5687 = vsyncadd [#allocation20], 4294966016 }
  0xfb   :  { %5688 = dma.done.wait [#allocation23], 32  }
  0xfc   :  { %5689 = vsyncadd [#allocation23], 4294967264 }
  0xfd   :  { %219 = sfence }
  0xfe   :  { %v231_v0 = vld [vmem:[#allocation9] sm:$0xff]  ;;  %v232_v1 = vld [vmem:[#allocation9 + $0x8] sm:$0xff]  ;;  %v346_v2 = vld [vmem:[#allocation10] sm:$0xff]  ;;  %s6818_s0 = sld [smem:[#allocation43_spill]]  ;;  %vm252_vm0 = vcmask 130048   ;;  %s6819_s11 = sld [smem:[#allocation48_spill]]  ;;  %v220_v26 = vlaneseq }
  0xff   :  { %v4825_v3 = vpack.c.bf16 %v232_v1, %v231_v0  ;;  %v347_v4 = vld [vmem:[#allocation10 + $0x8] sm:$0xff]  ;;  %v5712_v22 = vmov 0.0   ;;  %v4259_v23 = vld [vmem:[#allocation12] ss:$0 sm:$0xff]  ;;  %v4264_v24 = vld [vmem:[#allocation13] ss:$0 sm:$0xff] }
 0x100   :  { %v4829_v5 = vpack.c.bf16 %v347_v4, %v346_v2  ;;  %v6086_v35 = vshrl.u32 %v220_v26, 7  ;;  %s5713_s7 = smov 64   ;;  %s5714_s26 = smov 32   ;;  %vm578_vm2 = vcmask 257024   ;;  %vm581_vm3 = vcmask 261124  }
 0x101   :  { %4826 = vmatprep.subr.bf16.mxu0 %v4825_v3  ;;  %vm471_vm4 = vcmask 261120   ;;  %s6820_s5 = sld [smem:[#allocation49_spill]]  ;;  %vm1428_vm5 = vcmask 523264   ;;  %vm5717_vm6 = vmmov 0   ;;  %vm2485_vm8 = vcmask 785408   ;;  %s4345_s18 = sld [smem:[#allocation5 + $0x2]] }
 0x102   :  { %4830 = vmatprep.subr.bf16.mxu1 %v4829_v5  ;;  %4828 = vmatpush3.bf16.msra.mxu0 %v4825_v3  ;;  %vm222_vm1 = vcmp.lt.s32.totalorder %v6086_v35, 4  ;;  %vm5019_vm7 = vmpackc.low %vm471_vm4, %vm471_vm4  ;;  %vm2507_vm9 = vcmask 1043456   ;;  %vm2728_vm10 = vcmask 130112   ;;  %vm2735_vm12 = vcmask 195712   ;;  %s4351_s4 = sld [smem:[#allocation5 + $0x3]]  ;;  %s4369_s24 = sld [smem:[#allocation5 + $0x6]] }
 0x103   :  { %4832 = vmatpush3.bf16.msra.mxu1 %v4829_v5  ;;  %vm2760_vm13 = vcmp.ge.s32.totalorder %v6086_v35, 4 }
 0x104   :  { %v5170_v6 = vld [vmem:[%s6818_s0] sm:$0xff]   ;;  %v5171_v7 = vld [vmem:[%s6818_s0 + $0x8] sm:$0xff]   ;;  %v5172_v8 = vld [vmem:[%s6818_s0 + $0x10] sm:$0xff]  }
 0x105   :  { %v464_v9 = vld [vmem:[%s6819_s11 + $0x8] sm:$0xff]  ;;  %v466_v10 = vld [vmem:[%s6819_s11 + $0x18] sm:$0xff]  ;;  %4526 = vmatprep.mubr.msk.f32.mxu0 %vm252_vm0, %v5170_v6  ;;  %4536 = vmatprep.mubr.msk.f32.mxu1 %vm252_vm0, %v5170_v6  ;;  %v463_v13 = vld [vmem:[%s6819_s11] sm:$0xff] }
 0x106   :  { %v6031_v11 = vpack.c.bf16 %v466_v10, %v464_v9  ;;  %v5173_v12 = vld [vmem:[%s6818_s0 + $0x18] sm:$0xff]   ;;  %v465_v14 = vld [vmem:[%s6819_s11 + $0x10] sm:$0xff]  ;;  %v468_v15 = vld [vmem:[%s6819_s11 + $0x28] sm:$0xff]  ;;  %4527 = vmatmul.mubr.msk.f32.vlgmr.msra.gmra.mrb[0].mxu0 %vm252_vm0, %v5171_v7  ;;  %4537 = vmatmul.mubr.msk.f32.vlgmr.msra.gmra.mrb[0].mxu1 %vm252_vm0, %v5171_v7 }
 0x107   :  { %v6048_v16 = vpack.c.bf16 %v465_v14, %v463_v13  ;;  %v470_v17 = vld [vmem:[%s6819_s11 + $0x38] sm:$0xff]  ;;  %v467_v18 = vld [vmem:[%s6819_s11 + $0x20] sm:$0xff]  ;;  %v469_v19 = vld [vmem:[%s6819_s11 + $0x30] sm:$0xff]  ;;  %4529 = vmatprep.mubr.msk.f32.mxu0 %vm252_vm0, %v5172_v8  ;;  %4539 = vmatprep.mubr.msk.f32.mxu1 %vm252_vm0, %v5172_v8  ;;  %p3248_p10 = scmp.gt.s32.totalorder %s4345_s18, 0 }
 0x108   :  { %4834 = vmatprep.subr.bf16.mxu0 %v6031_v11  ;;  %v6061_v20 = vpack.c.bf16 %v470_v17, %v468_v15  ;;  %v6065_v21 = vpack.c.bf16 %v469_v19, %v467_v18  ;;  %4842 = vmatprep.subr.bf16.mxu1 %v6031_v11  ;;  %p3435_p11 = scmp.gt.s32.totalorder %s4351_s4, 0  ;;  %p3996_p0 = scmp.gt.s32.totalorder %s4369_s24, 0 }
 0x109   :  { %4836 = vmatpush1.bf16.msra.mxu0 %v6048_v16  ;;  %4844 = vmatpush1.bf16.msra.mxu1 %v6048_v16  ;;  %s3251_s1 = scalar_select %p3248_p10, 1, 0 }
 0x10a   :  { %4838 = vmatprep.subr.bf16.mxu0 %v6061_v20  ;;  %4530 = vmatmul.mubr.msk.f32.gmra.mrb[2].mxu0 %vm252_vm0, %v5173_v12  ;;  %s3438_s11 = scalar_select %p3435_p11, 1, 0 }
 0x10b   :  { %4540 = vmatmul.mubr.msk.f32.gmra.mrb[2].mxu1 %vm252_vm0, %v5173_v12  ;;  %539 = vmatprep.mubr.f32.mxu0 %v5712_v22  ;;  %s3999_s3 = scalar_select %p3996_p0, 1, 0 }
 0x10c   :  { %4846 = vmatprep.subr.bf16.mxu1 %v6061_v20  ;;  %649 = vmatprep.mubr.f32.mxu1 %v5712_v22 }
 0x10d   :  { %4840 = vmatpush1.bf16.msra.mxu0 %v6065_v21  ;;  %4848 = vmatpush1.bf16.msra.mxu1 %v6065_v21 }
 0x10e   :  { %4850 = vmatprep.subr.bf16.mxu0 %v6031_v11  ;;  %4858 = vmatprep.subr.bf16.mxu1 %v6031_v11 }
 0x110   :  { %540 = vmatmul.mubr.f32.vlgmr.msra.gmra.mrb[4].mxu0 %v5712_v22 }
 0x111   :  { %4852 = vmatpush1.bf16.msra.mxu0 %v6048_v16  ;;  %758 = vmatprep.mubr.f32.mxu0 %v5712_v22 }
 0x112   :  { %4854 = vmatprep.subr.bf16.mxu0 %v6061_v20 }
 0x115   :  { %4856 = vmatpush1.bf16.msra.mxu0 %v6065_v21 }
 0x116   :  { %4866 = vmatprep.subr.bf16.mxu0 %v6031_v11 }
 0x1d9   :  { %v4528_v25 = vpop.f32.mrb[0].mxu0  ;;  %v4538_v27 = vpop.f32.mrb[0].mxu1 }
 0x1da   :  { %v333_v28 = vadd.f32 %v4528_v25, %v4259_v23  ;;  %v327_v29 = vpop.f32.mrb[1].mxu0  ;;  %v427_v30 = vadd.f32 %v4538_v27, %v4264_v24  ;;  %v421_v31 = vpop.f32.mrb[1].mxu1 }
 0x1db   :  { %v328_v32 = vadd.f32 %v4259_v23, %v327_v29  ;;  %v422_v33 = vadd.f32 %v4264_v24, %v421_v31 }
 0x1dc   :  { %446 = vst [vmem:[#allocation2 + $0x10] ss:$8 sps:$4 sm:$0xff] %v333_v28   ;;  %453 = vst [vmem:[#allocation2 + $0x2c] ss:$-8 sps:$4 sm:$0xff] %v427_v30  }
 0x1dd   :  { %440 = vst [vmem:[#allocation2] ss:$8 sps:$4 sm:$0xff] %v328_v32   ;;  %v4531_v34 = vpop.f32.mrb[2].mxu0  ;;  %459 = vst [vmem:[#allocation2 + $0x3c] ss:$-8 sps:$4 sm:$0xff] %v422_v33  }
 0x1de   :  { %v343_v36 = vadd.f32 %v4531_v34, %v4259_v23  ;;  %v4541_v37 = vpop.f32.mrb[2].mxu1  ;;  %v337_v38 = vpop.f32.mrb[3].mxu0 }
 0x1df   :  { %v437_v39 = vadd.f32 %v4541_v37, %v4264_v24  ;;  %v338_v40 = vadd.f32 %v4259_v23, %v337_v38  ;;  %v431_v41 = vpop.f32.mrb[3].mxu1 }
 0x1e0   :  { %458 = vst [vmem:[#allocation2 + $0x30] ss:$8 sps:$4 sm:$0xff] %v343_v36   ;;  %v432_v42 = vadd.f32 %v4264_v24, %v431_v41 }
 0x1e1   :  { %441 = vst [vmem:[#allocation2 + $0xc] ss:$-8 sps:$4 sm:$0xff] %v437_v39   ;;  %452 = vst [vmem:[#allocation2 + $0x20] ss:$8 sps:$4 sm:$0xff] %v338_v40  }
 0x1e2   :  { %447 = vst [vmem:[#allocation2 + $0x1c] ss:$-8 sps:$4 sm:$0xff] %v432_v42  }
 0x1e3   :  { %v541_v43 = vpop.f32.mrb[4].mxu0 }
 0x1e4   :  { %v543_v44 = vpop.f32.mrb[5].mxu0 }
 0x1e5   :  { %v547_v45 = vsel %vm222_vm1, %v541_v43, %v543_v44 }
 0x1e8   :  { %v546_v46 = vld [vmem:[#allocation2] sm:$0xff]  ;;  %v656_v1 = vld [vmem:[#allocation2 + $0x8] sm:$0xff] }
 0x1e9   :  { %v548_v47 = vadd.f32 %v547_v45, %v546_v46  ;;  %v765_v27 = vld [vmem:[#allocation2 + $0x10] sm:$0xff] }
 0x1eb   :  { %v4269_v48 = vmul.f32 -1.442695, %v548_v47 }
 0x1ed   :  { %5174 = vpow2.f32 %v4269_v48  ;;  %v874_v48 = vld [vmem:[#allocation2 + $0x18] sm:$0xff] }
 0x1f7   :  { %v5175_v49 = vpop.eup %5174 }
 0x1f8   :  { %v552_v50 = vadd.f32 1.0, %v5175_v49 }
 0x1fa   :  { %5176 = vrcp.f32 %v552_v50 }
 0x204   :  { %v5177_v51 = vpop.eup %5176 }
 0x205   :  { %v555_v52 = vmul.f32 2.0, %v5177_v51  ;;  %v557_v56 = vmul.f32 0.0, %v5177_v51 }
 0x207   :  { %v4270_v53 = vadd.f32 -1.0, %v555_v52 }
 0x209   :  { %559 = vrot.lane.b32.xlu0 %v4270_v53, %s5713_s7 }
 0x27b   :  { %v560_v54 = vpop.permute.xlu0 %559 }
 0x27c   :  { %v562_v55 = vmul.f32 %v5177_v51, %v560_v54 }
 0x27e   :  { %564 = vrot.lane.b32.xlu0 %v562_v55, %s5714_s26 }
 0x2f0   :  { %v565_v57 = vpop.permute.xlu0 %564 }
 0x2f1   :  { %v567_v58 = vadd.f32 %v565_v57, %v557_v56 }
 0x2f3   :  { %5178 = vtanh.f32 %v567_v58 }
 0x2fd   :  { %v5179_v59 = vpop.eup %5178 }
 0x2fe   :  { %570 = vrot.lane.b32.xlu1 %v5179_v59, %s5713_s7 }
 0x370   :  { %v571_v60 = vpop.permute.xlu1 %570 }
 0x371   :  { %v573_v61 = vmul.f32 %v5177_v51, %v571_v60 }
 0x373   :  { %575 = vrot.lane.b32.xlu1 %v573_v61, %s5714_s26 }
 0x3e5   :  { %v576_v62 = vpop.permute.xlu1 %575 }
 0x3e6   :  { %579 = vst.msk [vmem:[#allocation3] sm:$0xf] %vm578_vm2, %v576_v62  ;;  %4271 = vmatmul.mubr.msk.f32.vlgmr.msra.gmra.mrb[4].mxu1 %vm471_vm4, %v576_v62 }
 0x3e7   :  { %582 = vst.msk [vmem:[#allocation4 + $0x18] sm:$0xf0] %vm581_vm3, %v576_v62  ;;  %4860 = vmatpush1.bf16.msra.mxu1 %v6048_v16  ;;  %867 = vmatprep.mubr.f32.mxu1 %v5712_v22 }
 0x3e8   :  { %4862 = vmatprep.subr.bf16.mxu1 %v6061_v20 }
 0x3eb   :  { %4864 = vmatpush1.bf16.msra.mxu1 %v6065_v21 }
 0x3ec   :  { %4874 = vmatprep.subr.bf16.mxu1 %v6031_v11 }
 0x4b9   :  { %v651_v63 = vpop.f32.mrb[4].mxu1 }
 0x4ba   :  { %v653_v0 = vpop.f32.mrb[5].mxu1 }
 0x4bb   :  { %v657_v2 = vsel %vm222_vm1, %v651_v63, %v653_v0 }
 0x4bc   :  { %v658_v3 = vadd.f32 %v657_v2, %v656_v1 }
 0x4be   :  { %v4272_v4 = vmul.f32 -1.442695, %v658_v3  ;;  %v983_v3 = vld [vmem:[#allocation2 + $0x20] sm:$0xff] }
 0x4c0   :  { %5180 = vpow2.f32 %v4272_v4 }
 0x4ca   :  { %v5181_v5 = vpop.eup %5180 }
 0x4cb   :  { %v662_v6 = vadd.f32 1.0, %v5181_v5 }
 0x4cd   :  { %5182 = vrcp.f32 %v662_v6 }
 0x4d7   :  { %v5183_v7 = vpop.eup %5182 }
 0x4d8   :  { %v665_v8 = vmul.f32 2.0, %v5183_v7  ;;  %v667_v13 = vmul.f32 %v5183_v7, %v567_v58 }
 0x4da   :  { %v4273_v9 = vadd.f32 -1.0, %v665_v8 }
 0x4dc   :  { %669 = vrot.lane.b32.xlu0 %v4273_v9, %s5713_s7 }
 0x54e   :  { %v670_v10 = vpop.permute.xlu0 %669 }
 0x54f   :  { %v672_v12 = vmul.f32 %v5183_v7, %v670_v10 }
 0x551   :  { %674 = vrot.lane.b32.xlu1 %v672_v12, %s5714_s26 }
 0x5c3   :  { %v675_v14 = vpop.permute.xlu1 %674 }
 0x5c4   :  { %v677_v15 = vadd.f32 %v675_v14, %v667_v13 }
 0x5c6   :  { %5184 = vtanh.f32 %v677_v15 }
 0x5d0   :  { %v5185_v17 = vpop.eup %5184 }
 0x5d1   :  { %680 = vrot.lane.b32.xlu0 %v5185_v17, %s5713_s7 }
 0x643   :  { %v681_v18 = vpop.permute.xlu0 %680 }
 0x644   :  { %v683_v19 = vmul.f32 %v5183_v7, %v681_v18 }
 0x646   :  { %685 = vrot.lane.b32.xlu1 %v683_v19, %s5714_s26 }
 0x6b8   :  { %v686_v23 = vpop.permute.xlu1 %685 }
 0x6b9   :  { %689 = vst.msk [vmem:[#allocation3 + $0x4] sm:$0xf] %vm578_vm2, %v686_v23  ;;  %4274 = vmatmul.mubr.msk.f32.vlgmr.msra.gmra.mrb[6].mxu0 %vm471_vm4, %v686_v23 }
 0x6ba   :  { %691 = vst.msk [vmem:[#allocation4 + $0x14] sm:$0xf0] %vm581_vm3, %v686_v23  ;;  %4868 = vmatpush1.bf16.msra.mxu0 %v6048_v16  ;;  %976 = vmatprep.mubr.f32.mxu0 %v5712_v22 }
 0x6bb   :  { %4870 = vmatprep.subr.bf16.mxu0 %v6061_v20 }
 0x6be   :  { %4872 = vmatpush1.bf16.msra.mxu0 %v6065_v21 }
 0x6bf   :  { %4882 = vmatprep.subr.bf16.mxu0 %v6031_v11 }
 0x78c   :  { %v760_v24 = vpop.f32.mrb[6].mxu0 }
 0x78d   :  { %v762_v25 = vpop.f32.mrb[7].mxu0 }
 0x78e   :  { %v766_v28 = vsel %vm222_vm1, %v760_v24, %v762_v25 }
 0x78f   :  { %v767_v29 = vadd.f32 %v766_v28, %v765_v27 }
 0x791   :  { %v4275_v30 = vmul.f32 -1.442695, %v767_v29  ;;  %v1092_v29 = vld [vmem:[#allocation2 + $0x28] sm:$0xff] }
 0x793   :  { %5186 = vpow2.f32 %v4275_v30 }
 0x79d   :  { %v5187_v31 = vpop.eup %5186 }
 0x79e   :  { %v771_v32 = vadd.f32 1.0, %v5187_v31 }
 0x7a0   :  { %5188 = vrcp.f32 %v771_v32 }
 0x7aa   :  { %v5189_v33 = vpop.eup %5188 }
 0x7ab   :  { %v774_v34 = vmul.f32 2.0, %v5189_v33  ;;  %v776_v39 = vmul.f32 %v5189_v33, %v677_v15 }
 0x7ad   :  { %v4276_v36 = vadd.f32 -1.0, %v774_v34 }
 0x7af   :  { %778 = vrot.lane.b32.xlu0 %v4276_v36, %s5713_s7 }
 0x821   :  { %v779_v37 = vpop.permute.xlu0 %778 }
 0x822   :  { %v781_v38 = vmul.f32 %v5189_v33, %v779_v37 }
 0x824   :  { %783 = vrot.lane.b32.xlu1 %v781_v38, %s5714_s26 }
 0x896   :  { %v784_v40 = vpop.permute.xlu1 %783 }
 0x897   :  { %v786_v41 = vadd.f32 %v784_v40, %v776_v39 }
 0x899   :  { %5190 = vtanh.f32 %v786_v41 }
 0x8a3   :  { %v5191_v42 = vpop.eup %5190 }
 0x8a4   :  { %789 = vrot.lane.b32.xlu0 %v5191_v42, %s5713_s7 }
 0x916   :  { %v790_v43 = vpop.permute.xlu0 %789 }
 0x917   :  { %v792_v44 = vmul.f32 %v5189_v33, %v790_v43 }
 0x919   :  { %794 = vrot.lane.b32.xlu1 %v792_v44, %s5714_s26 }
 0x98b   :  { %v795_v45 = vpop.permute.xlu1 %794 }
 0x98c   :  { %798 = vst.msk [vmem:[#allocation3 + $0x8] sm:$0xf] %vm578_vm2, %v795_v45  ;;  %4277 = vmatmul.mubr.msk.f32.vlgmr.msra.gmra.mrb[6].mxu1 %vm471_vm4, %v795_v45 }
 0x98d   :  { %800 = vst.msk [vmem:[#allocation4 + $0x10] sm:$0xf0] %vm581_vm3, %v795_v45  ;;  %4876 = vmatpush1.bf16.msra.mxu1 %v6048_v16  ;;  %1085 = vmatprep.mubr.f32.mxu1 %v5712_v22 }
 0x98e   :  { %4878 = vmatprep.subr.bf16.mxu1 %v6061_v20 }
 0x991   :  { %4880 = vmatpush1.bf16.msra.mxu1 %v6065_v21 }
 0x992   :  { %4890 = vmatprep.subr.bf16.mxu1 %v6031_v11 }
 0xa5f   :  { %v869_v46 = vpop.f32.mrb[6].mxu1 }
 0xa60   :  { %v871_v47 = vpop.f32.mrb[7].mxu1 }
 0xa61   :  { %v875_v49 = vsel %vm222_vm1, %v869_v46, %v871_v47  ;;  %v1201_v47 = vld [vmem:[#allocation2 + $0x30] sm:$0xff] }
 0xa62   :  { %v876_v50 = vadd.f32 %v875_v49, %v874_v48 }
 0xa64   :  { %v4278_v51 = vmul.f32 -1.442695, %v876_v50 }
 0xa66   :  { %5192 = vpow2.f32 %v4278_v51 }
 0xa70   :  { %v5193_v52 = vpop.eup %5192 }
 0xa71   :  { %v880_v53 = vadd.f32 1.0, %v5193_v52 }
 0xa73   :  { %5194 = vrcp.f32 %v880_v53 }
 0xa7d   :  { %v5195_v54 = vpop.eup %5194 }
 0xa7e   :  { %v883_v55 = vmul.f32 2.0, %v5195_v54  ;;  %v885_v11 = vmul.f32 %v5195_v54, %v786_v41 }
 0xa80   :  { %v4279_v56 = vadd.f32 -1.0, %v883_v55 }
 0xa82   :  { %887 = vrot.lane.b32.xlu0 %v4279_v56, %s5713_s7 }
 0xaf4   :  { %v888_v57 = vpop.permute.xlu0 %887 }
 0xaf5   :  { %v890_v58 = vmul.f32 %v5195_v54, %v888_v57 }
 0xaf7   :  { %892 = vrot.lane.b32.xlu1 %v890_v58, %s5714_s26 }
 0xb69   :  { %v893_v59 = vpop.permute.xlu1 %892 }
 0xb6a   :  { %v895_v60 = vadd.f32 %v893_v59, %v885_v11 }
 0xb6c   :  { %5196 = vtanh.f32 %v895_v60 }
 0xb76   :  { %v5197_v61 = vpop.eup %5196 }
 0xb77   :  { %898 = vrot.lane.b32.xlu0 %v5197_v61, %s5713_s7 }
 0xbe9   :  { %v899_v62 = vpop.permute.xlu0 %898 }
 0xbea   :  { %v901_v63 = vmul.f32 %v5195_v54, %v899_v62 }
 0xbec   :  { %903 = vrot.lane.b32.xlu1 %v901_v63, %s5714_s26 }
 0xc5e   :  { %v904_v0 = vpop.permute.xlu1 %903 }
 0xc5f   :  { %907 = vst.msk [vmem:[#allocation3 + $0xc] sm:$0xf] %vm578_vm2, %v904_v0  ;;  %4280 = vmatmul.mubr.msk.f32.vlgmr.msra.gmra.mrb[8].mxu0 %vm471_vm4, %v904_v0 }
 0xc60   :  { %909 = vst.msk [vmem:[#allocation4 + $0xc] sm:$0xf0] %vm581_vm3, %v904_v0  ;;  %4884 = vmatpush1.bf16.msra.mxu0 %v6048_v16  ;;  %1194 = vmatprep.mubr.f32.mxu0 %v5712_v22 }
 0xc61   :  { %4886 = vmatprep.subr.bf16.mxu0 %v6061_v20 }
 0xc64   :  { %4888 = vmatpush1.bf16.msra.mxu0 %v6065_v21 }
 0xd32   :  { %v978_v1 = vpop.f32.mrb[8].mxu0 }
 0xd33   :  { %v980_v2 = vpop.f32.mrb[9].mxu0 }
 0xd34   :  { %v984_v4 = vsel %vm222_vm1, %v978_v1, %v980_v2  ;;  %v1310_v2 = vld [vmem:[#allocation2 + $0x38] sm:$0xff] }
 0xd35   :  { %v985_v5 = vadd.f32 %v984_v4, %v983_v3 }
 0xd37   :  { %v4281_v6 = vmul.f32 -1.442695, %v985_v5 }
 0xd39   :  { %5198 = vpow2.f32 %v4281_v6 }
 0xd43   :  { %v5199_v7 = vpop.eup %5198 }
 0xd44   :  { %v989_v8 = vadd.f32 1.0, %v5199_v7 }
 0xd46   :  { %5200 = vrcp.f32 %v989_v8 }
 0xd50   :  { %v5201_v9 = vpop.eup %5200 }
 0xd51   :  { %v992_v10 = vmul.f32 2.0, %v5201_v9  ;;  %v994_v15 = vmul.f32 %v5201_v9, %v895_v60 }
 0xd53   :  { %v4282_v12 = vadd.f32 -1.0, %v992_v10 }
 0xd55   :  { %996 = vrot.lane.b32.xlu0 %v4282_v12, %s5713_s7 }
 0xdc7   :  { %v997_v13 = vpop.permute.xlu0 %996 }
 0xdc8   :  { %v999_v14 = vmul.f32 %v5201_v9, %v997_v13 }
 0xdca   :  { %1001 = vrot.lane.b32.xlu1 %v999_v14, %s5714_s26 }
 0xe3c   :  { %v1002_v17 = vpop.permute.xlu1 %1001 }
 0xe3d   :  { %v1004_v18 = vadd.f32 %v1002_v17, %v994_v15 }
 0xe3f   :  { %5202 = vtanh.f32 %v1004_v18 }
 0xe49   :  { %v5203_v19 = vpop.eup %5202 }
 0xe4a   :  { %1007 = vrot.lane.b32.xlu0 %v5203_v19, %s5713_s7 }
 0xebc   :  { %v1008_v23 = vpop.permute.xlu0 %1007 }
 0xebd   :  { %v1010_v24 = vmul.f32 %v5201_v9, %v1008_v23 }
 0xebf   :  { %1012 = vrot.lane.b32.xlu1 %v1010_v24, %s5714_s26 }
 0xf31   :  { %v1013_v25 = vpop.permute.xlu1 %1012 }
 0xf32   :  { %1016 = vst.msk [vmem:[#allocation3 + $0x10] sm:$0xf] %vm578_vm2, %v1013_v25  ;;  %4283 = vmatmul.mubr.msk.f32.vlgmr.msra.gmra.mrb[8].mxu1 %vm471_vm4, %v1013_v25 }
 0xf33   :  { %1018 = vst.msk [vmem:[#allocation4 + $0x8] sm:$0xf0] %vm581_vm3, %v1013_v25  ;;  %4892 = vmatpush1.bf16.msra.mxu1 %v6048_v16  ;;  %1303 = vmatprep.mubr.f32.mxu1 %v5712_v22 }
 0xf34   :  { %4894 = vmatprep.subr.bf16.mxu1 %v6061_v20 }
 0xf37   :  { %4896 = vmatpush1.bf16.msra.mxu1 %v6065_v21 }
0x1005   :  { %v1087_v27 = vpop.f32.mrb[8].mxu1 }
0x1006   :  { %v1089_v28 = vpop.f32.mrb[9].mxu1 }
0x1007   :  { %v1093_v30 = vsel %vm222_vm1, %v1087_v27, %v1089_v28  ;;  %v1401_v27 = vld [vmem:[%s6820_s5] sm:$0xff]  ;;  %v1402_v28 = vld [vmem:[%s6820_s5 + $0x8] sm:$0xff] }
0x1008   :  { %v1094_v31 = vadd.f32 %v1093_v30, %v1092_v29  ;;  %v1522_v29 = vld [vmem:[%s6772_s8] sm:$0xff]  ;;  %v4897_v30 = vpack.c.bf16 %v1402_v28, %v1401_v27 }
0x100a   :  { %v4284_v32 = vmul.f32 -1.442695, %v1094_v31  ;;  %v1523_v31 = vld [vmem:[%s6772_s8 + $0x8] sm:$0xff]  ;;  %4898 = vmatprep.subr.bf16.mxu0 %v4897_v30 }
0x100c   :  { %5204 = vpow2.f32 %v4284_v32  ;;  %v1403_v32 = vld [vmem:[%s6820_s5 + $0x10] sm:$0xff] }
0x1016   :  { %v5205_v33 = vpop.eup %5204 }
0x1017   :  { %v1098_v34 = vadd.f32 1.0, %v5205_v33  ;;  %v1404_v33 = vld [vmem:[%s6820_s5 + $0x18] sm:$0xff] }
0x1019   :  { %5206 = vrcp.f32 %v1098_v34  ;;  %v4913_v34 = vpack.c.bf16 %v1523_v31, %v1522_v29 }
0x101b   :  { %4914 = vmatprep.subr.bf16.mxu1 %v4913_v34 }
0x1023   :  { %v5207_v36 = vpop.eup %5206 }
0x1024   :  { %v1101_v16 = vmul.f32 2.0, %v5207_v36  ;;  %v1103_v21 = vmul.f32 %v5207_v36, %v1004_v18 }
0x1026   :  { %v4285_v37 = vadd.f32 -1.0, %v1101_v16  ;;  %v1524_v16 = vld [vmem:[%s6772_s8 + $0x10] sm:$0xff] }
0x1028   :  { %1105 = vrot.lane.b32.xlu0 %v4285_v37, %s5713_s7  ;;  %v1525_v37 = vld [vmem:[%s6772_s8 + $0x18] sm:$0xff] }
0x109a   :  { %v1106_v20 = vpop.permute.xlu0 %1105 }
0x109b   :  { %v1108_v38 = vmul.f32 %v5207_v36, %v1106_v20  ;;  %v1405_v20 = vld [vmem:[%s6820_s5 + $0x20] sm:$0xff] }
0x109d   :  { %1110 = vrot.lane.b32.xlu1 %v1108_v38, %s5714_s26  ;;  %v4917_v38 = vpack.c.bf16 %v1525_v37, %v1524_v16 }
0x110f   :  { %v1111_v39 = vpop.permute.xlu1 %1110 }
0x1110   :  { %v1113_v40 = vadd.f32 %v1111_v39, %v1103_v21  ;;  %v1406_v21 = vld [vmem:[%s6820_s5 + $0x28] sm:$0xff]  ;;  %v1526_v39 = vld [vmem:[%s6772_s8 + $0x20] sm:$0xff] }
0x1112   :  { %5208 = vtanh.f32 %v1113_v40 }
0x111c   :  { %v5209_v41 = vpop.eup %5208 }
0x111d   :  { %1116 = vrot.lane.b32.xlu0 %v5209_v41, %s5713_s7  ;;  %v1356_v41 = vld [vmem:[#allocation4 + $0xc] sm:$0xf] }
0x118f   :  { %v1117_v42 = vpop.permute.xlu0 %1116 }
0x1190   :  { %v1119_v43 = vmul.f32 %v5207_v36, %v1117_v42  ;;  %v4901_v36 = vpack.c.bf16 %v1404_v33, %v1403_v32  ;;  %v4905_v42 = vpack.c.bf16 %v1406_v21, %v1405_v20  ;;  %v4297_v21 = vld [vmem:[#allocation16] ss:$0 sm:$0xff] }
0x1192   :  { %1121 = vrot.lane.b32.xlu1 %v1119_v43, %s5714_s26 }
0x1204   :  { %v1122_v44 = vpop.permute.xlu1 %1121 }
0x1205   :  { %1125 = vst.msk [vmem:[#allocation3 + $0x14] sm:$0xf] %vm578_vm2, %v1122_v44  ;;  %4286 = vmatmul.mubr.msk.f32.vlgmr.msra.gmra.mrb[10].mxu0 %vm471_vm4, %v1122_v44 }
0x1206   :  { %1127 = vst.msk [vmem:[#allocation4 + $0x4] sm:$0xf0] %vm581_vm3, %v1122_v44  ;;  %4900 = vmatpush3.bf16.msra.mxu0 %v4897_v30  ;;  %v1358_v44 = vld [vmem:[#allocation4 + $0x14] sm:$0xf] }
0x1207   :  { %4902 = vmatprep.subr.bf16.mxu0 %v4901_v36 }
0x120a   :  { %4904 = vmatpush3.bf16.msra.mxu0 %v4901_v36 }
0x120b   :  { %4906 = vmatprep.subr.bf16.mxu0 %v4905_v42 }
0x120d   :  { %v1355_v19 = vld [vmem:[#allocation4 + $0x8] sm:$0xf] }
0x120e   :  { %4908 = vmatpush3.bf16.msra.mxu0 %v4905_v42 }
0x12d8   :  { %v1196_v45 = vpop.f32.mrb[10].mxu0 }
0x12d9   :  { %v1198_v46 = vpop.f32.mrb[11].mxu0 }
0x12da   :  { %v1202_v48 = vsel %vm222_vm1, %v1196_v45, %v1198_v46  ;;  %v1360_v45 = vld [vmem:[#allocation4 + $0x1c] sm:$0xf]  ;;  %v1407_v46 = vld [vmem:[%s6820_s5 + $0x30] sm:$0xff] }
0x12db   :  { %v1203_v49 = vadd.f32 %v1202_v48, %v1201_v47  ;;  %v1408_v47 = vld [vmem:[%s6820_s5 + $0x38] sm:$0xff]  ;;  %v1528_v48 = vld [vmem:[%s6772_s8 + $0x30] sm:$0xff]  ;;  %s5718_s5 = smov 48  }
0x12dd   :  { %v4287_v50 = vmul.f32 -1.442695, %v1203_v49  ;;  %v4909_v49 = vpack.c.bf16 %v1408_v47, %v1407_v46 }
0x12df   :  { %5210 = vpow2.f32 %v4287_v50  ;;  %v1529_v50 = vld [vmem:[%s6772_s8 + $0x38] sm:$0xff]  ;;  %4910 = vmatprep.subr.bf16.mxu0 %v4909_v49 }
0x12e0   :  { %4912 = vmatpush3.bf16.msra.mxu0 %v4909_v49 }
0x12e9   :  { %v5211_v51 = vpop.eup %5210 }
0x12ea   :  { %v1207_v52 = vadd.f32 1.0, %v5211_v51  ;;  %v4925_v51 = vpack.c.bf16 %v1529_v50, %v1528_v48 }
0x12ec   :  { %5212 = vrcp.f32 %v1207_v52 }
0x12f6   :  { %v5213_v53 = vpop.eup %5212 }
0x12f7   :  { %v1210_v54 = vmul.f32 2.0, %v5213_v53  ;;  %v1212_v58 = vmul.f32 %v5213_v53, %v1113_v40  ;;  %v1527_v40 = vld [vmem:[%s6772_s8 + $0x28] sm:$0xff]  ;;  %s5715_s8 = smov 96  }
0x12f8   :  { %v4921_v43 = vpack.c.bf16 %v1527_v40, %v1526_v39 }
0x12f9   :  { %v4288_v55 = vadd.f32 -1.0, %v1210_v54  ;;  %v1641_v54 = vld [vmem:[#allocation18 + $0x18] sm:$0xff] }
0x12fb   :  { %1214 = vrot.lane.b32.xlu0 %v4288_v55, %s5713_s7 }
0x136d   :  { %v1215_v56 = vpop.permute.xlu0 %1214 }
0x136e   :  { %v1217_v57 = vmul.f32 %v5213_v53, %v1215_v56 }
0x1370   :  { %1219 = vrot.lane.b32.xlu1 %v1217_v57, %s5714_s26  ;;  %v1357_v57 = vld [vmem:[#allocation4 + $0x10] sm:$0xf] }
0x13e2   :  { %v1220_v11 = vpop.permute.xlu1 %1219 }
0x13e3   :  { %v1222_v59 = vadd.f32 %v1220_v11, %v1212_v58  ;;  %v1359_v58 = vld [vmem:[#allocation4 + $0x18] sm:$0xf] }
0x13e5   :  { %5214 = vtanh.f32 %v1222_v59 }
0x13ef   :  { %v5215_v60 = vpop.eup %5214 }
0x13f0   :  { %1225 = vrot.lane.b32.xlu0 %v5215_v60, %s5713_s7 }
0x1462   :  { %v1226_v61 = vpop.permute.xlu0 %1225 }
0x1463   :  { %v1228_v62 = vmul.f32 %v5213_v53, %v1226_v61  ;;  %v1639_v53 = vld [vmem:[#allocation18 + $0x8] sm:$0xff]  ;;  %v1345_v61 = vld [vmem:[#allocation3] sm:$0xf] }
0x1464   :  { %v6246_v55 = vpack.c.bf16 %v1641_v54, %v1639_v53 }
0x1465   :  { %1230 = vrot.lane.b32.xlu1 %v1228_v62, %s5714_s26  ;;  %v1348_v62 = vld [vmem:[#allocation3 + $0xc] sm:$0xf] }
0x1466   :  { %4930 = vmatprep.subr.bf16.mxu0 %v6246_v55 }
0x14d7   :  { %v1231_v63 = vpop.permute.xlu1 %1230 }
0x14d8   :  { %1234 = vst.msk [vmem:[#allocation3 + $0x18] sm:$0xf] %vm578_vm2, %v1231_v63  ;;  %4289 = vmatmul.mubr.msk.f32.vlgmr.msra.gmra.mrb[10].mxu1 %vm471_vm4, %v1231_v63 }
0x14d9   :  { %1236 = vst.msk [vmem:[#allocation4] sm:$0xf0] %vm581_vm3, %v1231_v63  ;;  %4916 = vmatpush3.bf16.msra.mxu1 %v4913_v34  ;;  %v1638_v63 = vld [vmem:[#allocation18] sm:$0xff] }
0x14da   :  { %4918 = vmatprep.subr.bf16.mxu1 %v4917_v38 }
0x14dd   :  { %4920 = vmatpush3.bf16.msra.mxu1 %v4917_v38  ;;  %v4292_v38 = vld [vmem:[#allocation15] ss:$0 sm:$0xff] }
0x14de   :  { %4922 = vmatprep.subr.bf16.mxu1 %v4921_v43 }
0x14df   :  { %v1351_v34 = vld [vmem:[#allocation3 + $0x18] sm:$0xf] }
0x14e0   :  { %v1354_v25 = vld [vmem:[#allocation4 + $0x4] sm:$0xf] }
0x14e1   :  { %4924 = vmatpush3.bf16.msra.mxu1 %v4921_v43 }
0x14e2   :  { %4926 = vmatprep.subr.bf16.mxu1 %v4925_v51 }
0x14e5   :  { %4928 = vmatpush3.bf16.msra.mxu1 %v4925_v51 }
0x14e6   :  { %4938 = vmatprep.subr.bf16.mxu1 %v6246_v55 }
0x15ab   :  { %v1305_v0 = vpop.f32.mrb[10].mxu1 }
0x15ac   :  { %v1307_v1 = vpop.f32.mrb[11].mxu1 }
0x15ad   :  { %v1311_v3 = vsel %vm222_vm1, %v1305_v0, %v1307_v1  ;;  %v1640_v0 = vld [vmem:[#allocation18 + $0x10] sm:$0xff]  ;;  %v1346_v1 = vld [vmem:[#allocation3 + $0x4] sm:$0xf] }
0x15ae   :  { %v1312_v4 = vadd.f32 %v1311_v3, %v1310_v2 }
0x15b0   :  { %v4290_v5 = vmul.f32 -1.442695, %v1312_v4 }
0x15b2   :  { %5216 = vpow2.f32 %v4290_v5  ;;  %v1643_v5 = vld [vmem:[#allocation18 + $0x28] sm:$0xff] }
0x15bc   :  { %v5217_v6 = vpop.eup %5216 }
0x15bd   :  { %v1316_v7 = vadd.f32 1.0, %v5217_v6  ;;  %v1645_v6 = vld [vmem:[#allocation18 + $0x38] sm:$0xff] }
0x15bf   :  { %5218 = vrcp.f32 %v1316_v7  ;;  %v1347_v7 = vld [vmem:[#allocation3 + $0x8] sm:$0xf] }
0x15c9   :  { %v5219_v8 = vpop.eup %5218 }
0x15ca   :  { %v1319_v9 = vmul.f32 2.0, %v5219_v8  ;;  %v1321_v14 = vmul.f32 %v5219_v8, %v1222_v59 }
0x15cc   :  { %v4291_v10 = vadd.f32 -1.0, %v1319_v9 }
0x15ce   :  { %1323 = vrot.lane.b32.xlu0 %v4291_v10, %s5713_s7 }
0x1640   :  { %v1324_v12 = vpop.permute.xlu0 %1323 }
0x1641   :  { %v1326_v13 = vmul.f32 %v5219_v8, %v1324_v12 }
0x1643   :  { %1328 = vrot.lane.b32.xlu1 %v1326_v13, %s5714_s26  ;;  %v6257_v13 = vpack.c.bf16 %v1640_v0, %v1638_v63 }
0x16b5   :  { %v1329_v15 = vpop.permute.xlu1 %1328 }
0x16b6   :  { %v6179_v17 = vadd.f32 %v1329_v15, %v1321_v14  ;;  %v6259_v15 = vpack.c.bf16 %v1645_v6, %v1643_v5 }
0x16b8   :  { %5220 = vtanh.f32 %v6179_v17 }
0x16c2   :  { %v5221_v18 = vpop.eup %5220 }
0x16c3   :  { %1334 = vrot.lane.b32.xlu0 %v5221_v18, %s5713_s7  ;;  %v1642_v18 = vld [vmem:[#allocation18 + $0x20] sm:$0xff] }
0x16c7   :  { %1373 = vrot.lane.b32.xlu0 %v1355_v19, %s5714_s26  ;;  %v1644_v19 = vld [vmem:[#allocation18 + $0x30] sm:$0xff] }
0x16c8   :  { %v6268_v32 = vpack.c.bf16 %v1644_v19, %v1642_v18 }
0x1735   :  { %v1335_v23 = vpop.permute.xlu0 %1334 }
0x1736   :  { %v6184_v24 = vmul.f32 %v5219_v8, %v1335_v23  ;;  %v1350_v23 = vld [vmem:[#allocation3 + $0x14] sm:$0xf] }
0x1738   :  { %1339 = vrot.lane.b32.xlu1 %v6184_v24, %s5714_s26 }
0x1739   :  { %v1374_v60 = vpop.permute.xlu0 %1373 }
0x173a   :  { %v1395_v10 = vsel %vm471_vm4, %v1347_v7, %v1374_v60 }
0x173c   :  { %1371 = vrot.lane.b32.xlu1 %v1354_v25, %s5714_s26  ;;  %v1349_v25 = vld [vmem:[#allocation3 + $0x10] sm:$0xf] }
0x1740   :  { %1375 = vrot.lane.b32.xlu1 %v1356_v41, %s5714_s26 }
0x1744   :  { %1379 = vrot.lane.b32.xlu1 %v1358_v44, %s5714_s26 }
0x1748   :  { %1383 = vrot.lane.b32.xlu1 %v1360_v45, %s5714_s26 }
0x17aa   :  { %v6240_v52 = vpop.permute.xlu1 %1339 }
0x17ab   :  { %1343 = vst.msk [vmem:[#allocation3 + $0x1c] sm:$0xf] %vm578_vm2, %v6240_v52 }
0x17ac   :  { %1344 = vst.msk [vmem:[#allocation4 - $0x4] sm:$0xf0] %vm581_vm3, %v6240_v52 }
0x17ae   :  { %v1372_v11 = vpop.permute.xlu1 %1371 }
0x17af   :  { %v1394_v8 = vsel %vm471_vm4, %v1346_v1, %v1372_v11 }
0x17b2   :  { %v1376_v59 = vpop.permute.xlu1 %1375  ;;  %v1352_v33 = vld [vmem:[#allocation3 + $0x1c] sm:$0xf] }
0x17b3   :  { %v1353_v56 = vld [vmem:[#allocation4] sm:$0xf]  ;;  %v1396_v2 = vsel %vm471_vm4, %v1348_v62, %v1376_v59 }
0x17b4   :  { %1369 = vrot.lane.b32.xlu0 %v1353_v56, %s5714_s26  ;;  %v1425_v14 = vcombine.low %v1395_v10, %v1396_v2 }
0x17b6   :  { %v1380_v3 = vpop.permute.xlu1 %1379 }
0x17b7   :  { %v1398_v28 = vsel %vm471_vm4, %v1350_v23, %v1380_v3 }
0x17b8   :  { %1377 = vrot.lane.b32.xlu0 %v1357_v57, %s5714_s26 }
0x17ba   :  { %v1384_v30 = vpop.permute.xlu1 %1383 }
0x17bb   :  { %v1400_v16 = vsel %vm471_vm4, %v1352_v33, %v1384_v30 }
0x17bc   :  { %1381 = vrot.lane.b32.xlu0 %v1359_v58, %s5714_s26 }
0x1826   :  { %v1370_v4 = vpop.permute.xlu0 %1369 }
0x1827   :  { %v1393_v9 = vsel %vm471_vm4, %v1345_v61, %v1370_v4 }
0x1828   :  { %v1424_v12 = vcombine.low %v1393_v9, %v1394_v8 }
0x182a   :  { %v1378_v27 = vpop.permute.xlu0 %1377  ;;  %4558 = vmatprep.mubr.msk.f32.mxu0 %vm1428_vm5, %v1424_v12  ;;  %4580 = vmatprep.mubr.msk.f32.mxu1 %vm1428_vm5, %v1424_v12 }
0x182b   :  { %v1397_v29 = vsel %vm471_vm4, %v1349_v25, %v1378_v27  ;;  %4559 = vmatmul.mubr.msk.f32.vlgmr.msra.gmra.mrb[12].mxu0 %vm1428_vm5, %v1425_v14  ;;  %4581 = vmatmul.mubr.msk.f32.vlgmr.msra.gmra.mrb[12].mxu1 %vm1428_vm5, %v1425_v14 }
0x182c   :  { %v1426_v31 = vcombine.low %v1397_v29, %v1398_v28  ;;  %4932 = vmatpush1.bf16.msra.mxu0 %v6257_v13  ;;  %4940 = vmatpush1.bf16.msra.mxu1 %v6257_v13 }
0x182d   :  { %4934 = vmatprep.subr.bf16.mxu0 %v6259_v15  ;;  %4942 = vmatprep.subr.bf16.mxu1 %v6259_v15 }
0x182e   :  { %v1382_v36 = vpop.permute.xlu0 %1381  ;;  %4561 = vmatprep.mubr.msk.f32.mxu0 %vm1428_vm5, %v1426_v31  ;;  %4583 = vmatprep.mubr.msk.f32.mxu1 %vm1428_vm5, %v1426_v31 }
0x182f   :  { %v1399_v37 = vsel %vm471_vm4, %v1351_v34, %v1382_v36 }
0x1830   :  { %v1427_v20 = vcombine.low %v1399_v37, %v1400_v16  ;;  %4936 = vmatpush1.bf16.msra.mxu0 %v6268_v32  ;;  %4944 = vmatpush1.bf16.msra.mxu1 %v6268_v32 }
0x1831   :  { %4946 = vmatprep.subr.bf16.mxu0 %v6246_v55  ;;  %4954 = vmatprep.subr.bf16.mxu1 %v6246_v55 }
0x1832   :  { %4562 = vmatmul.mubr.msk.f32.gmra.mrb[14].mxu0 %vm1428_vm5, %v1427_v20  ;;  %4584 = vmatmul.mubr.msk.f32.gmra.mrb[14].mxu1 %vm1428_vm5, %v1427_v20 }
0x1833   :  { %1710 = vmatprep.mubr.f32.mxu0 %v5712_v22  ;;  %1814 = vmatprep.mubr.f32.mxu1 %v5712_v22 }
0x1836   :  { %1711 = vmatmul.mubr.f32.vlgmr.msra.gmra.mrb[16].mxu0 %v5712_v22 }
0x1837   :  { %4948 = vmatpush1.bf16.msra.mxu0 %v6257_v13  ;;  %1918 = vmatprep.mubr.f32.mxu0 %v5712_v22 }
0x1838   :  { %4950 = vmatprep.subr.bf16.mxu0 %v6259_v15 }
0x183b   :  { %4952 = vmatpush1.bf16.msra.mxu0 %v6268_v32 }
0x183c   :  { %4962 = vmatprep.subr.bf16.mxu0 %v6246_v55 }
0x18fe   :  { %v4560_v39 = vpop.f32.mrb[12].mxu0  ;;  %v4582_v40 = vpop.f32.mrb[12].mxu1 }
0x18ff   :  { %v1509_v41 = vadd.f32 %v4560_v39, %v4292_v38  ;;  %v1609_v42 = vadd.f32 %v4582_v40, %v4297_v21  ;;  %v1503_v43 = vpop.f32.mrb[13].mxu0  ;;  %v1603_v44 = vpop.f32.mrb[13].mxu1 }
0x1900   :  { %v1504_v45 = vadd.f32 %v4292_v38, %v1503_v43  ;;  %v1604_v46 = vadd.f32 %v4297_v21, %v1603_v44 }
0x1901   :  { %1626 = vst [vmem:[#allocation2 + $0x10] ss:$8 sps:$4 sm:$0xff] %v1509_v41   ;;  %1631 = vst [vmem:[#allocation2 + $0x2c] ss:$-8 sps:$4 sm:$0xff] %v1609_v42  }
0x1902   :  { %1622 = vst [vmem:[#allocation2] ss:$8 sps:$4 sm:$0xff] %v1504_v45   ;;  %1635 = vst [vmem:[#allocation2 + $0x3c] ss:$-8 sps:$4 sm:$0xff] %v1604_v46  }
0x1905   :  { %v4563_v47 = vpop.f32.mrb[14].mxu0  ;;  %v4585_v48 = vpop.f32.mrb[14].mxu1 }
0x1906   :  { %v1519_v49 = vadd.f32 %v4563_v47, %v4292_v38  ;;  %v1619_v50 = vadd.f32 %v4585_v48, %v4297_v21  ;;  %v1513_v51 = vpop.f32.mrb[15].mxu0  ;;  %v1613_v53 = vpop.f32.mrb[15].mxu1 }
0x1907   :  { %v1514_v54 = vadd.f32 %v4292_v38, %v1513_v51  ;;  %v1614_v56 = vadd.f32 %v4297_v21, %v1613_v53 }
0x1908   :  { %1634 = vst [vmem:[#allocation2 + $0x30] ss:$8 sps:$4 sm:$0xff] %v1519_v49   ;;  %1623 = vst [vmem:[#allocation2 + $0xc] ss:$-8 sps:$4 sm:$0xff] %v1619_v50  }
0x1909   :  { %1630 = vst [vmem:[#allocation2 + $0x20] ss:$8 sps:$4 sm:$0xff] %v1514_v54   ;;  %1627 = vst [vmem:[#allocation2 + $0x1c] ss:$-8 sps:$4 sm:$0xff] %v1614_v56   ;;  %v1712_v57 = vpop.f32.mrb[16].mxu0 }
0x190a   :  { %v1714_v58 = vpop.f32.mrb[17].mxu0 }
0x190b   :  { %v1718_v11 = vsel %vm222_vm1, %v1712_v57, %v1714_v58 }
0x190f   :  { %v1717_v59 = vld [vmem:[#allocation2] sm:$0xff]  ;;  %v1821_v19 = vld [vmem:[#allocation2 + $0x8] sm:$0xff] }
0x1910   :  { %v1719_v60 = vadd.f32 %v1718_v11, %v1717_v59  ;;  %v1925_v43 = vld [vmem:[#allocation2 + $0x10] sm:$0xff] }
0x1912   :  { %v4302_v61 = vmul.f32 -1.442695, %v1719_v60 }
0x1914   :  { %5222 = vpow2.f32 %v4302_v61 }
0x191e   :  { %v5223_v62 = vpop.eup %5222 }
0x191f   :  { %v1723_v63 = vadd.f32 1.0, %v5223_v62 }
0x1921   :  { %5224 = vrcp.f32 %v1723_v63 }
0x192b   :  { %v5225_v0 = vpop.eup %5224 }
0x192c   :  { %v1726_v1 = vmul.f32 2.0, %v5225_v0  ;;  %v1728_v5 = vmul.f32 0.0, %v5225_v0 }
0x192e   :  { %v4303_v2 = vadd.f32 -1.0, %v1726_v1 }
0x1930   :  { %1730 = vrot.lane.b32.xlu0 %v4303_v2, %s5713_s7 }
0x19a2   :  { %v1731_v3 = vpop.permute.xlu0 %1730 }
0x19a3   :  { %v1733_v4 = vmul.f32 %v5225_v0, %v1731_v3 }
0x19a5   :  { %1735 = vrot.lane.b32.xlu1 %v1733_v4, %s5714_s26 }
0x1a17   :  { %v1736_v6 = vpop.permute.xlu1 %1735 }
0x1a18   :  { %v1738_v7 = vadd.f32 %v1736_v6, %v1728_v5 }
0x1a1a   :  { %5226 = vtanh.f32 %v1738_v7 }
0x1a24   :  { %v5227_v8 = vpop.eup %5226 }
0x1a25   :  { %1741 = vrot.lane.b32.xlu0 %v5227_v8, %s5713_s7 }
0x1a97   :  { %v1742_v9 = vpop.permute.xlu0 %1741 }
0x1a98   :  { %v1744_v10 = vmul.f32 %v5225_v0, %v1742_v9  ;;  %v2029_v0 = vld [vmem:[#allocation2 + $0x18] sm:$0xff] }
0x1a9a   :  { %1746 = vrot.lane.b32.xlu1 %v1744_v10, %s5714_s26 }
0x1b0c   :  { %v1747_v12 = vpop.permute.xlu1 %1746 }
0x1b0d   :  { %4304 = vmatmul.mubr.msk.f32.vlgmr.msra.gmra.mrb[16].mxu1 %vm471_vm4, %v1747_v12 }
0x1b0e   :  { %4956 = vmatpush1.bf16.msra.mxu1 %v6257_v13  ;;  %2022 = vmatprep.mubr.f32.mxu1 %v5712_v22 }
0x1b0f   :  { %4958 = vmatprep.subr.bf16.mxu1 %v6259_v15 }
0x1b12   :  { %4960 = vmatpush1.bf16.msra.mxu1 %v6268_v32 }
0x1b13   :  { %4970 = vmatprep.subr.bf16.mxu1 %v6246_v55 }
0x1be0   :  { %v1816_v14 = vpop.f32.mrb[16].mxu1 }
0x1be1   :  { %v1818_v18 = vpop.f32.mrb[17].mxu1 }
0x1be2   :  { %v1822_v23 = vsel %vm222_vm1, %v1816_v14, %v1818_v18 }
0x1be3   :  { %v1823_v25 = vadd.f32 %v1822_v23, %v1821_v19 }
0x1be5   :  { %v4305_v27 = vmul.f32 -1.442695, %v1823_v25 }
0x1be7   :  { %5228 = vpow2.f32 %v4305_v27 }
0x1bf1   :  { %v5229_v28 = vpop.eup %5228 }
0x1bf2   :  { %v1827_v29 = vadd.f32 1.0, %v5229_v28 }
0x1bf4   :  { %5230 = vrcp.f32 %v1827_v29  ;;  %v2133_v29 = vld [vmem:[#allocation2 + $0x20] sm:$0xff] }
0x1bfe   :  { %v5231_v30 = vpop.eup %5230 }
0x1bff   :  { %v1830_v31 = vmul.f32 2.0, %v5231_v30  ;;  %v1832_v16 = vmul.f32 %v5231_v30, %v1738_v7 }
0x1c01   :  { %v4306_v33 = vadd.f32 -1.0, %v1830_v31 }
0x1c03   :  { %1834 = vrot.lane.b32.xlu0 %v4306_v33, %s5713_s7 }
0x1c75   :  { %v1835_v34 = vpop.permute.xlu0 %1834 }
0x1c76   :  { %v1837_v36 = vmul.f32 %v5231_v30, %v1835_v34 }
0x1c78   :  { %1839 = vrot.lane.b32.xlu1 %v1837_v36, %s5714_s26 }
0x1cea   :  { %v1840_v37 = vpop.permute.xlu1 %1839 }
0x1ceb   :  { %v1842_v20 = vadd.f32 %v1840_v37, %v1832_v16 }
0x1ced   :  { %5232 = vtanh.f32 %v1842_v20 }
0x1cf7   :  { %v5233_v38 = vpop.eup %5232 }
0x1cf8   :  { %1845 = vrot.lane.b32.xlu0 %v5233_v38, %s5713_s7 }
0x1d6a   :  { %v1846_v21 = vpop.permute.xlu0 %1845 }
0x1d6b   :  { %v1848_v39 = vmul.f32 %v5231_v30, %v1846_v21 }
0x1d6d   :  { %1850 = vrot.lane.b32.xlu1 %v1848_v39, %s5714_s26 }
0x1ddf   :  { %v1851_v40 = vpop.permute.xlu1 %1850 }
0x1de0   :  { %4307 = vmatmul.mubr.msk.f32.vlgmr.msra.gmra.mrb[18].mxu0 %vm471_vm4, %v1851_v40 }
0x1de1   :  { %4964 = vmatpush1.bf16.msra.mxu0 %v6257_v13  ;;  %2126 = vmatprep.mubr.f32.mxu0 %v5712_v22 }
0x1de2   :  { %4966 = vmatprep.subr.bf16.mxu0 %v6259_v15 }
0x1de5   :  { %4968 = vmatpush1.bf16.msra.mxu0 %v6268_v32 }
0x1de6   :  { %4978 = vmatprep.subr.bf16.mxu0 %v6246_v55 }
0x1eb3   :  { %v1920_v41 = vpop.f32.mrb[18].mxu0 }
0x1eb4   :  { %v1922_v42 = vpop.f32.mrb[19].mxu0 }
0x1eb5   :  { %v1926_v44 = vsel %vm222_vm1, %v1920_v41, %v1922_v42 }
0x1eb6   :  { %v1927_v45 = vadd.f32 %v1926_v44, %v1925_v43 }
0x1eb8   :  { %v4308_v46 = vmul.f32 -1.442695, %v1927_v45 }
0x1eba   :  { %5234 = vpow2.f32 %v4308_v46 }
0x1ec4   :  { %v5235_v47 = vpop.eup %5234 }
0x1ec5   :  { %v1931_v48 = vadd.f32 1.0, %v5235_v47 }
0x1ec7   :  { %5236 = vrcp.f32 %v1931_v48  ;;  %v2237_v48 = vld [vmem:[#allocation2 + $0x28] sm:$0xff] }
0x1ed1   :  { %v5237_v49 = vpop.eup %5236 }
0x1ed2   :  { %v1934_v50 = vmul.f32 2.0, %v5237_v49  ;;  %v1936_v56 = vmul.f32 %v5237_v49, %v1842_v20 }
0x1ed4   :  { %v4309_v51 = vadd.f32 -1.0, %v1934_v50 }
0x1ed6   :  { %1938 = vrot.lane.b32.xlu0 %v4309_v51, %s5713_s7 }
0x1f48   :  { %v1939_v53 = vpop.permute.xlu0 %1938 }
0x1f49   :  { %v1941_v54 = vmul.f32 %v5237_v49, %v1939_v53 }
0x1f4b   :  { %1943 = vrot.lane.b32.xlu1 %v1941_v54, %s5714_s26 }
0x1fbd   :  { %v1944_v57 = vpop.permute.xlu1 %1943 }
0x1fbe   :  { %v1946_v58 = vadd.f32 %v1944_v57, %v1936_v56 }
0x1fc0   :  { %5238 = vtanh.f32 %v1946_v58 }
0x1fca   :  { %v5239_v11 = vpop.eup %5238 }
0x1fcb   :  { %1949 = vrot.lane.b32.xlu0 %v5239_v11, %s5713_s7 }
0x203d   :  { %v1950_v59 = vpop.permute.xlu0 %1949 }
0x203e   :  { %v1952_v60 = vmul.f32 %v5237_v49, %v1950_v59 }
0x2040   :  { %1954 = vrot.lane.b32.xlu1 %v1952_v60, %s5714_s26 }
0x20b2   :  { %v1955_v61 = vpop.permute.xlu1 %1954 }
0x20b3   :  { %4310 = vmatmul.mubr.msk.f32.vlgmr.msra.gmra.mrb[18].mxu1 %vm471_vm4, %v1955_v61 }
0x20b4   :  { %4972 = vmatpush1.bf16.msra.mxu1 %v6257_v13  ;;  %2230 = vmatprep.mubr.f32.mxu1 %v5712_v22 }
0x20b5   :  { %4974 = vmatprep.subr.bf16.mxu1 %v6259_v15 }
0x20b8   :  { %4976 = vmatpush1.bf16.msra.mxu1 %v6268_v32 }
0x20b9   :  { %4986 = vmatprep.subr.bf16.mxu1 %v6246_v55 }
0x2186   :  { %v2024_v62 = vpop.f32.mrb[18].mxu1 }
0x2187   :  { %v2026_v63 = vpop.f32.mrb[19].mxu1 }
0x2188   :  { %v2030_v1 = vsel %vm222_vm1, %v2024_v62, %v2026_v63 }
0x2189   :  { %v2031_v2 = vadd.f32 %v2030_v1, %v2029_v0 }
0x218b   :  { %v4311_v3 = vmul.f32 -1.442695, %v2031_v2  ;;  %v2341_v2 = vld [vmem:[#allocation2 + $0x30] sm:$0xff] }
0x218d   :  { %5240 = vpow2.f32 %v4311_v3 }
0x2197   :  { %v5241_v4 = vpop.eup %5240 }
0x2198   :  { %v2035_v5 = vadd.f32 1.0, %v5241_v4 }
0x219a   :  { %5242 = vrcp.f32 %v2035_v5 }
0x21a4   :  { %v5243_v6 = vpop.eup %5242 }
0x21a5   :  { %v2038_v7 = vmul.f32 2.0, %v5243_v6  ;;  %v2040_v55 = vmul.f32 %v5243_v6, %v1946_v58 }
0x21a7   :  { %v4312_v8 = vadd.f32 -1.0, %v2038_v7 }
0x21a9   :  { %2042 = vrot.lane.b32.xlu0 %v4312_v8, %s5713_s7 }
0x221b   :  { %v2043_v9 = vpop.permute.xlu0 %2042 }
0x221c   :  { %v2045_v10 = vmul.f32 %v5243_v6, %v2043_v9 }
0x221e   :  { %2047 = vrot.lane.b32.xlu1 %v2045_v10, %s5714_s26 }
0x2290   :  { %v2048_v12 = vpop.permute.xlu1 %2047 }
0x2291   :  { %v2050_v14 = vadd.f32 %v2048_v12, %v2040_v55 }
0x2293   :  { %5244 = vtanh.f32 %v2050_v14 }
0x229d   :  { %v5245_v18 = vpop.eup %5244 }
0x229e   :  { %2053 = vrot.lane.b32.xlu0 %v5245_v18, %s5713_s7 }
0x2310   :  { %v2054_v19 = vpop.permute.xlu0 %2053 }
0x2311   :  { %v2056_v23 = vmul.f32 %v5243_v6, %v2054_v19 }
0x2313   :  { %2058 = vrot.lane.b32.xlu1 %v2056_v23, %s5714_s26 }
0x2385   :  { %v2059_v25 = vpop.permute.xlu1 %2058 }
0x2386   :  { %4313 = vmatmul.mubr.msk.f32.vlgmr.msra.gmra.mrb[20].mxu0 %vm471_vm4, %v2059_v25 }
0x2387   :  { %4980 = vmatpush1.bf16.msra.mxu0 %v6257_v13  ;;  %2334 = vmatprep.mubr.f32.mxu0 %v5712_v22 }
0x2388   :  { %4982 = vmatprep.subr.bf16.mxu0 %v6259_v15 }
0x238b   :  { %4984 = vmatpush1.bf16.msra.mxu0 %v6268_v32 }
0x2459   :  { %v2128_v27 = vpop.f32.mrb[20].mxu0 }
0x245a   :  { %v2130_v28 = vpop.f32.mrb[21].mxu0 }
0x245b   :  { %v2134_v30 = vsel %vm222_vm1, %v2128_v27, %v2130_v28 }
0x245c   :  { %v2135_v31 = vadd.f32 %v2134_v30, %v2133_v29 }
0x245e   :  { %v4314_v33 = vmul.f32 -1.442695, %v2135_v31  ;;  %v2445_v31 = vld [vmem:[#allocation2 + $0x38] sm:$0xff] }
0x2460   :  { %5246 = vpow2.f32 %v4314_v33 }
0x246a   :  { %v5247_v34 = vpop.eup %5246 }
0x246b   :  { %v2139_v36 = vadd.f32 1.0, %v5247_v34 }
0x246d   :  { %5248 = vrcp.f32 %v2139_v36 }
0x2477   :  { %v5249_v16 = vpop.eup %5248 }
0x2478   :  { %v2142_v37 = vmul.f32 2.0, %v5249_v16  ;;  %v2144_v39 = vmul.f32 %v5249_v16, %v2050_v14 }
0x247a   :  { %v4315_v20 = vadd.f32 -1.0, %v2142_v37 }
0x247c   :  { %2146 = vrot.lane.b32.xlu0 %v4315_v20, %s5713_s7 }
0x24ee   :  { %v2147_v38 = vpop.permute.xlu0 %2146 }
0x24ef   :  { %v2149_v21 = vmul.f32 %v5249_v16, %v2147_v38 }
0x24f1   :  { %2151 = vrot.lane.b32.xlu1 %v2149_v21, %s5714_s26 }
0x2563   :  { %v2152_v40 = vpop.permute.xlu1 %2151 }
0x2564   :  { %v2154_v41 = vadd.f32 %v2152_v40, %v2144_v39 }
0x2566   :  { %5250 = vtanh.f32 %v2154_v41 }
0x2570   :  { %v5251_v42 = vpop.eup %5250 }
0x2571   :  { %2157 = vrot.lane.b32.xlu0 %v5251_v42, %s5713_s7 }
0x25e3   :  { %v2158_v43 = vpop.permute.xlu0 %2157 }
0x25e4   :  { %v2160_v44 = vmul.f32 %v5249_v16, %v2158_v43 }
0x25e6   :  { %2162 = vrot.lane.b32.xlu1 %v2160_v44, %s5714_s26  ;;  %v2473_v44 = vrot.slane %v6184_v24, 4 }
0x2658   :  { %v2163_v45 = vpop.permute.xlu1 %2162 }
0x2659   :  { %4316 = vmatmul.mubr.msk.f32.vlgmr.msra.gmra.mrb[20].mxu1 %vm471_vm4, %v2163_v45 }
0x265a   :  { %4988 = vmatpush1.bf16.msra.mxu1 %v6257_v13  ;;  %2438 = vmatprep.mubr.f32.mxu1 %v5712_v22 }
0x265b   :  { %4990 = vmatprep.subr.bf16.mxu1 %v6259_v15 }
0x265e   :  { %4992 = vmatpush1.bf16.msra.mxu1 %v6268_v32 }
0x272c   :  { %v2232_v46 = vpop.f32.mrb[20].mxu1 }
0x272d   :  { %v2234_v47 = vpop.f32.mrb[21].mxu1 }
0x272e   :  { %v2238_v49 = vsel %vm222_vm1, %v2232_v46, %v2234_v47  ;;  %v2509_v47 = vld [vmem:[%s6776_s12] sm:$0xff] }
0x272f   :  { %v2239_v50 = vadd.f32 %v2238_v49, %v2237_v48  ;;  %v2510_v48 = vld [vmem:[%s6776_s12 + $0x8] sm:$0xff]  ;;  %v2511_v49 = vld [vmem:[%s6776_s12 + $0x10] sm:$0xff] }
0x2730   :  { %v4994_v24 = vpack.c.bf16 %v2510_v48, %v2509_v47 }
0x2731   :  { %v4317_v51 = vmul.f32 -1.442695, %v2239_v50  ;;  %v5716_v50 = vmov 0.0|0.0  }
0x2732   :  { %4993 = vmatprep.subr.bf16.mxu0 %v5716_v50  ;;  %5017 = vmatprep.subr.bf16.mxu1 %v5716_v50 }
0x2733   :  { %5252 = vpow2.f32 %v4317_v51  ;;  %v2512_v51 = vld [vmem:[%s6776_s12 + $0x18] sm:$0xff] }
0x273d   :  { %v5253_v53 = vpop.eup %5252 }
0x273e   :  { %v2243_v54 = vadd.f32 1.0, %v5253_v53  ;;  %v4997_v53 = vpack.c.bf16 %v2512_v51, %v2511_v49 }
0x2740   :  { %5254 = vrcp.f32 %v2243_v54  ;;  %v2513_v54 = vld [vmem:[%s6776_s12 + $0x20] sm:$0xff] }
0x274a   :  { %v5255_v56 = vpop.eup %5254 }
0x274b   :  { %v2246_v13 = vmul.f32 2.0, %v5255_v56  ;;  %v2248_v32 = vmul.f32 %v5255_v56, %v2154_v41 }
0x274d   :  { %v4318_v57 = vadd.f32 -1.0, %v2246_v13 }
0x274f   :  { %2250 = vrot.lane.b32.xlu0 %v4318_v57, %s5713_s7 }
0x27c1   :  { %v2251_v15 = vpop.permute.xlu0 %2250 }
0x27c2   :  { %v2253_v58 = vmul.f32 %v5255_v56, %v2251_v15  ;;  %v2515_v15 = vld [vmem:[%s6776_s12 + $0x30] sm:$0xff] }
0x27c4   :  { %2255 = vrot.lane.b32.xlu1 %v2253_v58, %s5714_s26  ;;  %v2516_v58 = vld [vmem:[%s6776_s12 + $0x38] sm:$0xff] }
0x2836   :  { %v2256_v11 = vpop.permute.xlu1 %2255 }
0x2837   :  { %v2258_v59 = vadd.f32 %v2256_v11, %v2248_v32  ;;  %v5003_v32 = vpack.c.bf16 %v2516_v58, %v2515_v15  ;;  %v2517_v11 = vld [vmem:[%s6776_s12 + $0x40] sm:$0xff] }
0x2839   :  { %5256 = vtanh.f32 %v2258_v59 }
0x2843   :  { %v5257_v60 = vpop.eup %5256 }
0x2844   :  { %2261 = vrot.lane.b32.xlu0 %v5257_v60, %s5713_s7 }
0x28b6   :  { %v2262_v61 = vpop.permute.xlu0 %2261 }
0x28b7   :  { %v2264_v62 = vmul.f32 %v5255_v56, %v2262_v61  ;;  %v2514_v56 = vld [vmem:[%s6776_s12 + $0x28] sm:$0xff]  ;;  %v2519_v61 = vld [vmem:[%s6776_s12 + $0x50] sm:$0xff] }
0x28b8   :  { %v5000_v57 = vpack.c.bf16 %v2514_v56, %v2513_v54 }
0x28b9   :  { %2266 = vrot.lane.b32.xlu1 %v2264_v62, %s5714_s26  ;;  %v2520_v62 = vld [vmem:[%s6776_s12 + $0x58] sm:$0xff] }
0x292b   :  { %v2267_v63 = vpop.permute.xlu1 %2266 }
0x292c   :  { %4319 = vmatmul.mubr.msk.f32.vlgmr.msra.gmra.mrb[22].mxu0 %vm471_vm4, %v2267_v63  ;;  %v5009_v63 = vpack.c.bf16 %v2520_v62, %v2519_v61 }
0x292d   :  { %4995 = vmatpush3.bf16.msra.mxu0 %v4994_v24  ;;  %4618 = vmatprep.mubr.msk.f32.mxu0 %vm5717_vm6, %v5712_v22  ;;  %v2718_v24 = vand.u32 127, %v220_v26 }
0x292e   :  { %4996 = vmatprep.subr.bf16.mxu0 %v5716_v50 }
0x292f   :  { %v2723_v51 = vadd.s32 4294967288, %v2718_v24  ;;  %v2737_v15 = vadd.s32 4294967272, %v2718_v24  ;;  %vm2758_vm11 = vcmp.lt.s32.totalorder %v2718_v24, 16  ;;  %vm2761_vm14 = vcmp.ge.s32.totalorder %v2718_v24, 16 }
0x2930   :  { %vm2759_vm15 = vmand %vm222_vm1, %vm2758_vm11 }
0x2931   :  { %4998 = vmatpush3.bf16.msra.mxu0 %v4997_v53  ;;  %v2730_v53 = vadd.s32 4294967280, %v2718_v24  ;;  %v2726_v54 = vsub.s32 %v2723_v51, %v6086_v35 }
0x2932   :  { %4999 = vmatprep.subr.bf16.mxu0 %v5716_v50 }
0x2933   :  { %v2733_v58 = vsub.s32 %v2730_v53, %v6086_v35  ;;  %v2858_v53 = vld [vmem:[%s6781_s17 + $0x18] sm:$0xff] }
0x2935   :  { %5001 = vmatpush3.bf16.msra.mxu0 %v5000_v57 }
0x2936   :  { %5002 = vmatprep.subr.bf16.mxu0 %v5716_v50 }
0x2939   :  { %5004 = vmatpush3.bf16.msra.mxu0 %v5003_v32 }
0x293a   :  { %5005 = vmatprep.subr.bf16.mxu0 %v5716_v50 }
0x29ff   :  { %v2336_v0 = vpop.f32.mrb[22].mxu0 }
0x2a00   :  { %v2338_v1 = vpop.f32.mrb[23].mxu0 }
0x2a01   :  { %v2342_v3 = vsel %vm222_vm1, %v2336_v0, %v2338_v1  ;;  %v2521_v0 = vld [vmem:[%s6776_s12 + $0x60] sm:$0xff]  ;;  %v2522_v1 = vld [vmem:[%s6776_s12 + $0x68] sm:$0xff] }
0x2a02   :  { %v2343_v4 = vadd.f32 %v2342_v3, %v2341_v2  ;;  %v5012_v2 = vpack.c.bf16 %v2522_v1, %v2521_v0  ;;  %v2523_v3 = vld [vmem:[%s6776_s12 + $0x70] sm:$0xff] }
0x2a04   :  { %v4320_v5 = vmul.f32 -1.442695, %v2343_v4  ;;  %v2524_v4 = vld [vmem:[%s6776_s12 + $0x78] sm:$0xff] }
0x2a06   :  { %5258 = vpow2.f32 %v4320_v5  ;;  %v5015_v5 = vpack.c.bf16 %v2524_v4, %v2523_v3 }
0x2a10   :  { %v5259_v6 = vpop.eup %5258 }
0x2a11   :  { %v2347_v7 = vadd.f32 1.0, %v5259_v6  ;;  %v2602_v6 = vld [vmem:[#allocation19] sm:$0xff] }
0x2a13   :  { %5260 = vrcp.f32 %v2347_v7  ;;  %v2603_v7 = vld [vmem:[#allocation19 + $0x8] sm:$0xff] }
0x2a1d   :  { %v5261_v8 = vpop.eup %5260 }
0x2a1e   :  { %v2350_v9 = vmul.f32 2.0, %v5261_v8  ;;  %v2352_v14 = vmul.f32 %v5261_v8, %v2258_v59  ;;  %v2518_v59 = vld [vmem:[%s6776_s12 + $0x48] sm:$0xff]  ;;  %s4357_s12 = sld [smem:[#allocation5 + $0x4]] }
0x2a1f   :  { %v5006_v60 = vpack.c.bf16 %v2518_v59, %v2517_v11 }
0x2a20   :  { %v4321_v10 = vadd.f32 -1.0, %v2350_v9  ;;  %v2604_v9 = vld [vmem:[#allocation19 + $0x10] sm:$0xff] }
0x2a21   :  { %5007 = vmatpush3.bf16.msra.mxu0 %v5006_v60  ;;  %v2740_v60 = vsub.s32 %v2737_v15, %v6086_v35 }
0x2a22   :  { %2354 = vrot.lane.b32.xlu0 %v4321_v10, %s5713_s7  ;;  %5008 = vmatprep.subr.bf16.mxu0 %v5716_v50  ;;  %v2605_v10 = vld [vmem:[#allocation19 + $0x18] sm:$0xff] }
0x2a24   :  { %p3622_p12 = scmp.gt.s32.totalorder %s4357_s12, 0 }
0x2a25   :  { %5010 = vmatpush3.bf16.msra.mxu0 %v5009_v63 }
0x2a26   :  { %5011 = vmatprep.subr.bf16.mxu0 %v5716_v50 }
0x2a29   :  { %5013 = vmatpush3.bf16.msra.mxu0 %v5012_v2 }
0x2a2a   :  { %5014 = vmatprep.subr.bf16.mxu0 %v5716_v50 }
0x2a2d   :  { %5016 = vmatpush3.bf16.msra.mxu0 %v5015_v5 }
0x2a2e   :  { %5040 = vmatprep.subr.bf16.mxu0 %v5716_v50 }
0x2a94   :  { %v2355_v55 = vpop.permute.xlu0 %2354 }
0x2a95   :  { %v2357_v12 = vmul.f32 %v5261_v8, %v2355_v55 }
0x2a97   :  { %2359 = vrot.lane.b32.xlu1 %v2357_v12, %s5714_s26  ;;  %v5022_v12 = vpack.c.bf16 %v2605_v10, %v2604_v9 }
0x2b09   :  { %v2360_v18 = vpop.permute.xlu1 %2359 }
0x2b0a   :  { %v2362_v19 = vadd.f32 %v2360_v18, %v2352_v14  ;;  %v2611_v18 = vmul.f32 %v2603_v7, %v2603_v7 }
0x2b0c   :  { %5262 = vtanh.f32 %v2362_v19 }
0x2b16   :  { %v5263_v23 = vpop.eup %5262 }
0x2b17   :  { %2365 = vrot.lane.b32.xlu0 %v5263_v23, %s5713_s7 }
0x2b89   :  { %v2366_v25 = vpop.permute.xlu0 %2365 }
0x2b8a   :  { %v2368_v27 = vmul.f32 %v5261_v8, %v2366_v25  ;;  %v5018_v8 = vpack.c.bf16 %v2603_v7, %v2602_v6  ;;  %v2491_v25 = vrot.slane %v6179_v17, 4 }
0x2b8c   :  { %2370 = vrot.lane.b32.xlu1 %v2368_v27, %s5714_s26 }
0x2bfe   :  { %v2371_v28 = vpop.permute.xlu1 %2370 }
0x2bff   :  { %4322 = vmatmul.mubr.msk.f32.vlgmr.msra.gmra.mrb[22].mxu1 %vm471_vm4, %v2371_v28 }
0x2c00   :  { %4629 = vmatprep.mubr.msk.f32.mxu1 %vm5717_vm6, %v5712_v22  ;;  %5020 = vmatpush3.bf16.xpose.msk.msra.mxu1 %vm5019_vm7, %v5018_v8 }
0x2c01   :  { %5021 = vmatprep.subr.bf16.mxu1 %v5716_v50 }
0x2c08   :  { %5024 = vmatpush3.bf16.xpose.msk.msra.mxu1 %vm5019_vm7, %v5022_v12  ;;  %vm2762_vm7 = vmand %vm2760_vm13, %vm2761_vm14 }
0x2c09   :  { %5025 = vmatprep.subr.bf16.mxu1 %v5716_v50 }
0x2cd2   :  { %v2440_v29 = vpop.f32.mrb[22].mxu1 }
0x2cd3   :  { %v2442_v30 = vpop.f32.mrb[23].mxu1 }
0x2cd4   :  { %v2446_v33 = vsel %vm222_vm1, %v2440_v29, %v2442_v30  ;;  %vm2861_vm1 = vcmask 125952  }
0x2cd5   :  { %v2447_v34 = vadd.f32 %v2446_v33, %v2445_v31 }
0x2cd7   :  { %v4323_v36 = vmul.f32 -1.442695, %v2447_v34 }
0x2cd9   :  { %5264 = vpow2.f32 %v4323_v36 }
0x2ce3   :  { %v5265_v16 = vpop.eup %5264 }
0x2ce4   :  { %v2451_v37 = vadd.f32 1.0, %v5265_v16 }
0x2ce6   :  { %5266 = vrcp.f32 %v2451_v37 }
0x2cf0   :  { %v6365_v20 = vpop.eup %5266 }
0x2cf1   :  { %v2454_v38 = vmul.f32 2.0, %v6365_v20  ;;  %v2456_v41 = vmul.f32 %v6365_v20, %v2362_v19  ;;  %v2617_v19 = vsel %vm471_vm4, %v2611_v18, 0.0 }
0x2cf3   :  { %v4324_v21 = vadd.f32 -1.0, %v2454_v38 }
0x2cf5   :  { %2458 = vrot.lane.b32.xlu0 %v4324_v21, %s5713_s7 }
0x2d67   :  { %v2459_v39 = vpop.permute.xlu0 %2458 }
0x2d68   :  { %v2461_v40 = vmul.f32 %v6365_v20, %v2459_v39  ;;  %v2612_v39 = vmul.f32 %v2604_v9, %v2604_v9 }
0x2d6a   :  { %2463 = vrot.lane.b32.xlu1 %v2461_v40, %s5714_s26  ;;  %v2620_v40 = vsel %vm471_vm4, %v2612_v39, 0.0 }
0x2d6e   :  { %2488 = vrot.lane.b32.xlu1 %v6179_v17, %s5715_s8 }
0x2ddc   :  { %v2464_v42 = vpop.permute.xlu1 %2463 }
0x2ddd   :  { %v2466_v43 = vadd.f32 %v2464_v42, %v2456_v41  ;;  %v2610_v41 = vmul.f32 %v2602_v6, %v2602_v6  ;;  %v2613_v42 = vmul.f32 %v2605_v10, %v2605_v10 }
0x2ddf   :  { %5268 = vtanh.f32 %v2466_v43  ;;  %v2497_v45 = vrot.slane %v2466_v43, 4 }
0x2de0   :  { %v2489_v23 = vpop.permute.xlu1 %2488 }
0x2de1   :  { %v5165_v46 = vpack.i.bf16 %v2497_v45, %v2473_v44  ;;  %v2501_v29 = vsel %vm471_vm4, %v2489_v23, %v2491_v25  ;;  %v4325_v44 = vld [vmem:[%s6777_s13] ss:$0 sm:$0xff] }
0x2de2   :  { %v2860_v23 = vld [vmem:[%s6818_s0] sm:$0xf] }
0x2de3   :  { %5166 = vrot.lane.b32.xlu1 %v5165_v46, %s5713_s7  ;;  %2862 = vst.msk [vmem:[#allocation25] sm:$0xf] %vm2861_vm1, %v2860_v23 }
0x2de9   :  { %v5269_v13 = vpop.eup %5268 }
0x2dea   :  { %2469 = vrot.lane.b32.xlu0 %v5269_v13, %s5713_s7  ;;  %v2721_v13 = vsub.s32 %v2718_v24, %v6086_v35  ;;  %v2848_v35 = vld [vmem:[#allocation21] sm:$0xff] }
0x2dee   :  { %2494 = vrot.lane.b32.xlu0 %v2466_v43, %s5714_s26  ;;  %v2614_v43 = vsel %vm471_vm4, %v2610_v41, 0.0 }
0x2e07   :  { %2615 = vadd.xlane.f32.xlu1 %v2614_v43 }
0x2e55   :  { %v5167_v28 = vpop.permute.xlu1 %5166 }
0x2e56   :  { %v5169_v31 = vunpack.i.h.bf16 %v5167_v28  ;;  %v5168_v33 = vunpack.i.l.bf16 %v5167_v28  ;;  %v2853_v28 = vld [vmem:[#allocation21 + $0x28] sm:$0xff] }
0x2e58   :  { %v2483_v37 = vsel %vm471_vm4, %v6240_v52, %v5168_v33  ;;  %v2623_v52 = vsel %vm471_vm4, %v2613_v42, 0.0 }
0x2e59   :  { %2624 = vadd.xlane.f32.xlu1 %v2623_v52 }
0x2e5c   :  { %v2470_v55 = vpop.permute.xlu0 %2469 }
0x2e5d   :  { %v2472_v14 = vmul.f32 %v6365_v20, %v2470_v55 }
0x2e5f   :  { %2478 = vrot.lane.b32.xlu0 %v2472_v14, %s5715_s8  ;;  %v2481_v36 = vrot.slane %v2472_v14, 4  ;;  %v2850_v14 = vld [vmem:[#allocation21 + $0x10] sm:$0xff]  ;;  %s3625_s8 = scalar_select %p3622_p12, 1, 0 }
0x2e60   :  { %v2495_v27 = vpop.permute.xlu0 %2494 }
0x2e61   :  { %v2502_v30 = vsel %vm1428_vm5, %v2501_v29, %v2495_v27  ;;  %v2852_v27 = vld [vmem:[#allocation21 + $0x20] sm:$0xff] }
0x2e62   :  { %v2503_v34 = vsel %vm2485_vm8, %v2502_v30, %v5169_v31  ;;  %v6493_v29 = vpack.c.bf16 %v2853_v28, %v2852_v27  ;;  %v3252_v28 = vstv %s3251_s1 }
0x2e63   :  { %v2505_v20 = vrot.slane %v2503_v34, 4 }
0x2e7e   :  { %2618 = vadd.xlane.f32.xlu0 %v2617_v19  ;;  %v2851_v19 = vld [vmem:[#allocation21 + $0x18] sm:$0xff] }
0x2e7f   :  { %v6488_v25 = vpack.c.bf16 %v2851_v19, %v2850_v14 }
0x2e82   :  { %2621 = vadd.xlane.f32.xlu0 %v2620_v40 }
0x2e94   :  { %v2616_v57 = vpop.xlane.xlu1 %2615 }
0x2e95   :  { %v2722_v11 = vrot.slane %v2616_v57, %v2721_v13 }
0x2ed1   :  { %v2479_v16 = vpop.permute.xlu0 %2478 }
0x2ed2   :  { %v2484_v38 = vsel %vm1428_vm5, %v2483_v37, %v2479_v16  ;;  %vm2742_vm5 = vcmask 261312  }
0x2ed3   :  { %v2486_v17 = vsel %vm2485_vm8, %v2484_v38, %v2481_v36  ;;  %vm2763_vm8 = vmor %vm2759_vm15, %vm2762_vm7  ;;  %v6511_v36 = vld [vmem:[#allocation22] ss:$0 sm:$0xff] }
0x2ed4   :  { %v2508_v21 = vsel %vm2507_vm9, %v2486_v17, %v2505_v20 }
0x2ed5   :  { %4619 = vmatmul.mubr.f32.vlgmr.msra.gmra.mrb[24].mxu0 %v2508_v21 }
0x2ed6   :  { %4666 = vmatprep.mubr.msk.f32.mxu0 %vm5717_vm6, %v5712_v22 }
0x2ee6   :  { %v2625_v62 = vpop.xlane.xlu1 %2624 }
0x2ee7   :  { %v2741_v63 = vrot.slane %v2625_v62, %v2740_v60 }
0x2f0b   :  { %v2619_v56 = vpop.xlane.xlu0 %2618 }
0x2f0c   :  { %v2727_v32 = vrot.slane %v2619_v56, %v2726_v54 }
0x2f0e   :  { %v2729_v26 = vsel %vm2728_vm10, %v2727_v32, %v2722_v11  ;;  %vm2874_vm10 = vcmask 392192   ;;  %v6547_v32 = vld [vmem:[#allocation24] ss:$0 sm:$0xff] }
0x2f0f   :  { %v2622_v59 = vpop.xlane.xlu0 %2621 }
0x2f10   :  { %v2734_v61 = vrot.slane %v2622_v59, %v2733_v58  ;;  %v4340_v59 = vld [vmem:[%s6818_s0 + $0x4] sm:$0xf] }
0x2f12   :  { %v2736_v3 = vsel %vm2735_vm12, %v2734_v61, %v2729_v26 }
0x2f13   :  { %v2743_v6 = vsel %vm2742_vm5, %v2741_v63, %v2736_v3 }
0x2fa8   :  { %v2598_v45 = vpop.f32.mrb[24].mxu0 }
0x2fa9   :  { %v2599_v46 = vadd.f32 %v4325_v44, %v2598_v45  ;;  %v4620_v47 = vpop.f32.mrb[25].mxu0 }
0x2fab   :  { %2844 = vst.msk [vmem:[#allocation26] sm:$0xf] %vm578_vm2, %v2599_v46  ;;  %4630 = vmatmul.mubr.msk.f32.vlgmr.msra.gmra.mrb[24].mxu1 %vm471_vm4, %v2599_v46  ;;  %v2606_v48 = vmul.f32 %v2599_v46, %v2599_v46 }
0x2fac   :  { %2845 = vst.msk [vmem:[#allocation28 - $0x4] sm:$0xf0] %vm581_vm3, %v2599_v46  ;;  %5027 = vmatpush3.bf16.msra.mxu1 %v5018_v8  ;;  %4640 = vmatprep.mubr.msk.f32.mxu1 %vm5717_vm6, %v5712_v22 }
0x2fad   :  { %v2607_v49 = vsel %vm471_vm4, %v2606_v48, 0.0  ;;  %5028 = vmatprep.subr.bf16.mxu1 %v5716_v50  ;;  %v2855_v48 = vld [vmem:[%s6781_s17] sm:$0xff] }
0x2fae   :  { %2608 = vadd.xlane.f32.xlu0 %v2607_v49  ;;  %v2856_v49 = vld [vmem:[%s6781_s17 + $0x8] sm:$0xff] }
0x2faf   :  { %v6526_v51 = vpack.c.bf16 %v2856_v49, %v2855_v48 }
0x2fb0   :  { %5030 = vmatpush3.bf16.msra.mxu1 %v5022_v12  ;;  %v2849_v12 = vld [vmem:[#allocation21 + $0x8] sm:$0xff] }
0x2fb1   :  { %5031 = vmatprep.subr.bf16.mxu1 %v5716_v50  ;;  %v6482_v18 = vpack.c.bf16 %v2849_v12, %v2848_v35  ;;  %5042 = vmatpush3.bf16.msra.mxu0 %v6526_v51 }
0x2fb2   :  { %5043 = vmatprep.subr.bf16.mxu0 %v5716_v50 }
0x303b   :  { %v2609_v4 = vpop.xlane.xlu0 %2608 }
0x307e   :  { %v2707_v0 = vpop.f32.mrb[24].mxu1 }
0x307f   :  { %v2711_v1 = vmul.f32 2.0, %v2707_v0  ;;  %v4631_v2 = vpop.f32.mrb[25].mxu1 }
0x3081   :  { %v2712_v5 = vsub.f32 %v2609_v4, %v2711_v1 }
0x3083   :  { %v2757_v7 = vadd.f32 %v2743_v6, %v2712_v5 }
0x3085   :  { %v2764_v8 = vsel %vm2763_vm8, %v2757_v7, 1e+30 }
0x3086   :  { %v2765_v9 = vsel %vm471_vm4, %v2764_v8, inf }
0x3087   :  { %2766 = vmin.index.xlane.f32.xlu1 %v2765_v9 }
0x3114   :  { %v2767_v10 = vpop.xlane.xlu1 %2766 }
0x3115   :  { %vm2768_vm9 = vcmp.eq.s32.totalorder %v2767_v10, %v2718_v24  ;;  %v2857_v24 = vld [vmem:[%s6781_s17 + $0x10] sm:$0xff]  ;;  %s4339_s17 = sld [smem:[#allocation5 + $0x1]] }
0x3116   :  { %v4331_v55 = vsel %vm2768_vm9, 1.0, %v5712_v22  ;;  %v6532_v54 = vpack.c.bf16 %v2858_v53, %v2857_v24 }
0x3117   :  { %4641 = vmatmul.mubr.msk.f32.vlgmr.msra.gmra.mrb[26].mxu1 %vm471_vm4, %v4331_v55 }
0x3118   :  { %4655 = vmatprep.mubr.msk.f32.mxu1 %vm5717_vm6, %v5712_v22  ;;  %5033 = vmatpush3.bf16.msra.mxu1 %v6482_v18 }
0x3119   :  { %5034 = vmatprep.subr.bf16.mxu1 %v5716_v50  ;;  %5045 = vmatpush3.bf16.msra.mxu0 %v6532_v54 }
0x311a   :  { %5055 = vmatprep.subr.bf16.mxu0 %v5716_v50 }
0x311b   :  { %p3061_p9 = scmp.gt.s32.totalorder %s4339_s17, 0  ;;  %s5720_s17 = smov [#allocation29]  }
0x311c   :  { %5036 = vmatpush3.bf16.msra.mxu1 %v6488_v25 }
0x311d   :  { %5037 = vmatprep.subr.bf16.mxu1 %v5716_v50  ;;  %s3064_s16 = scalar_select %p3061_p9, 1, 0 }
0x311f   :  { %v3065_v58 = vstv %s3064_s16  ;;  %s4220_s16 = sshll.u32 %s5720_s17, 4  ;;  %s4221_s16 = int_to_ptr.vmem [resolvable:$true] %s4220_s16 }
0x3120   :  { %5039 = vmatpush3.bf16.msra.mxu1 %v6493_v29 }
0x3121   :  { %5046 = vmatprep.subr.bf16.mxu1 %v5716_v50 }
0x31ea   :  { %v2840_v30 = vpop.f32.mrb[26].mxu1 }
0x31eb   :  { %2846 = vst.msk [vmem:[#allocation29] sm:$0xf] %vm578_vm2, %v2840_v30  ;;  %2864 = vrot.lane.b32.xlu0 %v2840_v30, %s5709_s14  ;;  %v4642_v31 = vpop.f32.mrb[27].mxu1  ;;  %v2956_v42 = vrot.slane %v2840_v30, 4  ;;  %vm3066_vm2 = vcmp.eq.s32.totalorder %v3065_v58, 1  ;;  %s4363_s14 = sld [smem:[#allocation5 + $0x5]] }
0x31ec   :  { %2847 = vst.msk [vmem:[#allocation31 - $0x4] sm:$0xf0] %vm581_vm3, %v2840_v30  ;;  %v4346_v31 = vld [vmem:[%s6818_s0 + $0x8] sm:$0xf]  ;;  %vm3253_vm3 = vcmp.eq.s32.totalorder %v3252_v28, 1 }
0x31f1   :  { %p3809_p13 = scmp.gt.s32.totalorder %s4363_s14, 0 }
0x31f3   :  { %s3812_s2 = scalar_select %p3809_p13, 1, 0 }
0x325d   :  { %v2865_v33 = vpop.permute.xlu0 %2864 }
0x325e   :  { %v2867_v34 = vsel %vm252_vm0, %v2860_v23, %v2865_v33 }
0x325f   :  { %4656 = vmatmul.mubr.msk.f32.vlgmr.msra.gmra.mrb[28].mxu1 %vm2874_vm10, %v2867_v34 }
0x3260   :  { %5048 = vmatpush3.bf16.msra.mxu1 %v6482_v18  ;;  %4681 = vmatprep.mubr.msk.f32.mxu1 %vm5717_vm6, %v5712_v22 }
0x3261   :  { %5049 = vmatprep.subr.bf16.mxu1 %v5716_v50 }
0x3264   :  { %5051 = vmatpush3.bf16.msra.mxu1 %v6488_v25 }
0x3265   :  { %5052 = vmatprep.subr.bf16.mxu1 %v5716_v50 }
0x3268   :  { %5054 = vmatpush3.bf16.msra.mxu1 %v6493_v29 }
0x3269   :  { %5070 = vmatprep.subr.bf16.mxu1 %v5716_v50 }
0x3332   :  { %v2944_v16 = vpop.f32.mrb[28].mxu1 }
0x3333   :  { %v2945_v37 = vadd.f32 %v6511_v36, %v2944_v16  ;;  %v4657_v20 = vpop.f32.mrb[29].mxu1 }
0x3335   :  { %v4335_v38 = vmul.f32 -1.442695, %v2945_v37 }
0x3337   :  { %5270 = vpow2.f32 %v4335_v38 }
0x3341   :  { %v5271_v17 = vpop.eup %5270 }
0x3342   :  { %v2951_v21 = vadd.f32 1.0, %v5271_v17 }
0x3344   :  { %5272 = vrcp.f32 %v2951_v21 }
0x334e   :  { %v5273_v39 = vpop.eup %5272 }
0x334f   :  { %v2954_v40 = vmul.f32 2.0, %v5273_v39 }
0x3351   :  { %v4336_v41 = vadd.f32 -1.0, %v2954_v40 }
0x3353   :  { %2962 = vrot.lane.b32.xlu1 %v4336_v41, %s5713_s7 }
0x3357   :  { %2957 = vrot.lane.b32.xlu1 %v2956_v42, %s5714_s26 }
0x33c5   :  { %v2963_v43 = vpop.permute.xlu1 %2962 }
0x33c6   :  { %v2965_v52 = vmul.f32 %v5273_v39, %v2963_v43 }
0x33c8   :  { %2967 = vrot.lane.b32.xlu0 %v2965_v52, %s5714_s26 }
0x33c9   :  { %v2958_v44 = vpop.permute.xlu1 %2957 }
0x33ca   :  { %v2960_v45 = vmul.f32 %v5273_v39, %v2958_v44 }
0x343a   :  { %v2968_v46 = vpop.permute.xlu0 %2967 }
0x343b   :  { %v2970_v47 = vadd.f32 %v2968_v46, %v2960_v45 }
0x343d   :  { %5274 = vtanh.f32 %v2970_v47 }
0x3447   :  { %v5275_v56 = vpop.eup %5274 }
0x3448   :  { %2973 = vrot.lane.b32.xlu1 %v5275_v56, %s5713_s7 }
0x34ba   :  { %v2974_v13 = vpop.permute.xlu1 %2973 }
0x34bb   :  { %v2976_v57 = vmul.f32 %v5273_v39, %v2974_v13  ;;  %v3439_v13 = vstv %s3438_s11 }
0x34bc   :  { %vm3440_vm11 = vcmp.eq.s32.totalorder %v3439_v13, 1 }
0x34bd   :  { %3068 = vrot.lane.b32.xlu1 %v2976_v57, %s5718_s5  ;;  %2984 = vrot.lane.b32.xlu0 %v2976_v57, %s5714_s26 }
0x352f   :  { %v2985_v15 = vpop.permute.xlu0 %2984  ;;  %v3069_v62 = vpop.permute.xlu1 %3068 }
0x3530   :  { %4667 = vmatmul.mubr.msk.f32.vlgmr.msra.gmra.mrb[26].mxu0 %vm471_vm4, %v2985_v15  ;;  %v4352_v15 = vld [vmem:[%s6818_s0 + $0xc] sm:$0xf] }
0x3531   :  { %5057 = vmatpush3.bf16.msra.mxu0 %v6526_v51  ;;  %4692 = vmatprep.mubr.msk.f32.mxu0 %vm5717_vm6, %v5712_v22 }
0x3532   :  { %5058 = vmatprep.subr.bf16.mxu0 %v5716_v50 }
0x3535   :  { %5060 = vmatpush3.bf16.msra.mxu0 %v6532_v54 }
0x3536   :  { %5061 = vmatprep.subr.bf16.mxu0 %v5716_v50 }
0x3603   :  { %v3054_v11 = vpop.f32.mrb[26].mxu0 }
0x3604   :  { %v3055_v60 = vadd.f32 %v6547_v32, %v3054_v11  ;;  %v4668_v61 = vpop.f32.mrb[27].mxu0 }
0x3606   :  { %3059 = vst.msk [vmem:[#allocation25 + $0x4] sm:$0xf] %vm2861_vm1, %v3055_v60  ;;  %v3067_v26 = vsel %vm3066_vm2, %v4340_v59, %v3055_v60 }
0x3607   :  { %v3071_v63 = vsel %vm252_vm0, %v3067_v26, %v3069_v62 }
0x3608   :  { %4682 = vmatmul.mubr.msk.f32.vlgmr.msra.gmra.mrb[30].mxu1 %vm2874_vm10, %v3071_v63 }
0x3609   :  { %5072 = vmatpush3.bf16.msra.mxu1 %v6526_v51  ;;  %4718 = vmatprep.mubr.msk.f32.mxu1 %vm5717_vm6, %v5712_v22 }
0x360a   :  { %5073 = vmatprep.subr.bf16.mxu1 %v5716_v50 }
0x360d   :  { %5075 = vmatpush3.bf16.msra.mxu1 %v6532_v54 }
0x360e   :  { %5076 = vmatprep.subr.bf16.mxu1 %v5716_v50 }
0x36db   :  { %v3141_v0 = vpop.f32.mrb[30].mxu1 }
0x36dc   :  { %v3142_v1 = vadd.f32 %v6511_v36, %v3141_v0  ;;  %v4683_v2 = vpop.f32.mrb[31].mxu1 }
0x36de   :  { %v4342_v3 = vmul.f32 -1.442695, %v3142_v1 }
0x36e0   :  { %5276 = vpow2.f32 %v4342_v3 }
0x36ea   :  { %v5277_v4 = vpop.eup %5276 }
0x36eb   :  { %v3148_v5 = vadd.f32 1.0, %v5277_v4 }
0x36ed   :  { %5278 = vrcp.f32 %v3148_v5 }
0x36f7   :  { %v5279_v6 = vpop.eup %5278 }
0x36f8   :  { %v3151_v7 = vmul.f32 2.0, %v5279_v6  ;;  %v3153_v55 = vmul.f32 %v5279_v6, %v2970_v47 }
0x36fa   :  { %v4343_v8 = vadd.f32 -1.0, %v3151_v7 }
0x36fc   :  { %3155 = vrot.lane.b32.xlu0 %v4343_v8, %s5713_s7 }
0x376e   :  { %v3156_v9 = vpop.permute.xlu0 %3155 }
0x376f   :  { %v3158_v10 = vmul.f32 %v5279_v6, %v3156_v9 }
0x3771   :  { %3160 = vrot.lane.b32.xlu1 %v3158_v10, %s5714_s26 }
0x37e3   :  { %v3161_v35 = vpop.permute.xlu1 %3160 }
0x37e4   :  { %v3163_v12 = vadd.f32 %v3161_v35, %v3153_v55 }
0x37e6   :  { %5280 = vtanh.f32 %v3163_v12 }
0x37f0   :  { %v5281_v14 = vpop.eup %5280 }
0x37f1   :  { %3166 = vrot.lane.b32.xlu0 %v5281_v14, %s5713_s7 }
0x3863   :  { %v3167_v19 = vpop.permute.xlu0 %3166 }
0x3864   :  { %v3169_v23 = vmul.f32 %v5279_v6, %v3167_v19  ;;  %v3626_v19 = vstv %s3625_s8 }
0x3865   :  { %vm3627_vm12 = vcmp.eq.s32.totalorder %v3626_v19, 1 }
0x3866   :  { %3255 = vrot.lane.b32.xlu0 %v3169_v23, %s5718_s5  ;;  %3171 = vrot.lane.b32.xlu1 %v3169_v23, %s5714_s26 }
0x38d8   :  { %v3172_v27 = vpop.permute.xlu1 %3171  ;;  %v3256_v16 = vpop.permute.xlu0 %3255 }
0x38d9   :  { %4693 = vmatmul.mubr.msk.f32.vlgmr.msra.gmra.mrb[28].mxu0 %vm471_vm4, %v3172_v27  ;;  %v4358_v27 = vld [vmem:[%s6818_s0 + $0x10] sm:$0xf] }
0x38da   :  { %5063 = vmatpush3.bf16.msra.mxu0 %v6482_v18  ;;  %4707 = vmatprep.mubr.msk.f32.mxu0 %vm5717_vm6, %v5712_v22 }
0x38db   :  { %5064 = vmatprep.subr.bf16.mxu0 %v5716_v50 }
0x38de   :  { %5066 = vmatpush3.bf16.msra.mxu0 %v6488_v25 }
0x38df   :  { %5067 = vmatprep.subr.bf16.mxu0 %v5716_v50 }
0x38e2   :  { %5069 = vmatpush3.bf16.msra.mxu0 %v6493_v29 }
0x38e3   :  { %5085 = vmatprep.subr.bf16.mxu0 %v5716_v50 }
0x39ac   :  { %v3241_v30 = vpop.f32.mrb[28].mxu0 }
0x39ad   :  { %v3242_v33 = vadd.f32 %v6547_v32, %v3241_v30  ;;  %v4694_v34 = vpop.f32.mrb[29].mxu0 }
0x39af   :  { %3246 = vst.msk [vmem:[#allocation25 + $0x8] sm:$0xf] %vm2861_vm1, %v3242_v33  ;;  %v3254_v37 = vsel %vm3253_vm3, %v4346_v31, %v3242_v33 }
0x39b0   :  { %v3258_v20 = vsel %vm252_vm0, %v3254_v37, %v3256_v16 }
0x39b1   :  { %4708 = vmatmul.mubr.msk.f32.vlgmr.msra.gmra.mrb[30].mxu0 %vm2874_vm10, %v3258_v20 }
0x39b2   :  { %5087 = vmatpush3.bf16.msra.mxu0 %v6526_v51  ;;  %4744 = vmatprep.mubr.msk.f32.mxu0 %vm5717_vm6, %v5712_v22 }
0x39b3   :  { %5088 = vmatprep.subr.bf16.mxu0 %v5716_v50 }
0x39b6   :  { %5090 = vmatpush3.bf16.msra.mxu0 %v6532_v54 }
0x39b7   :  { %5091 = vmatprep.subr.bf16.mxu0 %v5716_v50 }
0x3a84   :  { %v3328_v38 = vpop.f32.mrb[30].mxu0 }
0x3a85   :  { %v3329_v17 = vadd.f32 %v6511_v36, %v3328_v38  ;;  %v4709_v21 = vpop.f32.mrb[31].mxu0 }
0x3a87   :  { %v4348_v39 = vmul.f32 -1.442695, %v3329_v17 }
0x3a89   :  { %5282 = vpow2.f32 %v4348_v39 }
0x3a93   :  { %v5283_v40 = vpop.eup %5282 }
0x3a94   :  { %v3335_v41 = vadd.f32 1.0, %v5283_v40 }
0x3a96   :  { %5284 = vrcp.f32 %v3335_v41 }
0x3aa0   :  { %v5285_v42 = vpop.eup %5284 }
0x3aa1   :  { %v3338_v43 = vmul.f32 2.0, %v5285_v42  ;;  %v3340_v46 = vmul.f32 %v5285_v42, %v3163_v12 }
0x3aa3   :  { %v4349_v52 = vadd.f32 -1.0, %v3338_v43 }
0x3aa5   :  { %3342 = vrot.lane.b32.xlu1 %v4349_v52, %s5713_s7 }
0x3b17   :  { %v3343_v44 = vpop.permute.xlu1 %3342 }
0x3b18   :  { %v3345_v45 = vmul.f32 %v5285_v42, %v3343_v44 }
0x3b1a   :  { %3347 = vrot.lane.b32.xlu0 %v3345_v45, %s5714_s26 }
0x3b8c   :  { %v3348_v47 = vpop.permute.xlu0 %3347 }
0x3b8d   :  { %v3350_v48 = vadd.f32 %v3348_v47, %v3340_v46 }
0x3b8f   :  { %5286 = vtanh.f32 %v3350_v48 }
0x3b99   :  { %v5287_v49 = vpop.eup %5286 }
0x3b9a   :  { %3353 = vrot.lane.b32.xlu1 %v5287_v49, %s5713_s7 }
0x3c0c   :  { %v3354_v24 = vpop.permute.xlu1 %3353 }
0x3c0d   :  { %v3356_v53 = vmul.f32 %v5285_v42, %v3354_v24  ;;  %v3813_v24 = vstv %s3812_s2 }
0x3c0e   :  { %vm3814_vm13 = vcmp.eq.s32.totalorder %v3813_v24, 1 }
0x3c0f   :  { %3442 = vrot.lane.b32.xlu1 %v3356_v53, %s5718_s5  ;;  %3358 = vrot.lane.b32.xlu0 %v3356_v53, %s5714_s26 }
0x3c81   :  { %v3359_v56 = vpop.permute.xlu0 %3358  ;;  %v3443_v59 = vpop.permute.xlu1 %3442 }
0x3c82   :  { %4719 = vmatmul.mubr.msk.f32.vlgmr.msra.gmra.mrb[32].mxu1 %vm471_vm4, %v3359_v56  ;;  %v4364_v56 = vld [vmem:[%s6818_s0 + $0x14] sm:$0xf] }
0x3c83   :  { %5078 = vmatpush3.bf16.msra.mxu1 %v6482_v18  ;;  %4733 = vmatprep.mubr.msk.f32.mxu1 %vm5717_vm6, %v5712_v22 }
0x3c84   :  { %5079 = vmatprep.subr.bf16.mxu1 %v5716_v50 }
0x3c87   :  { %5081 = vmatpush3.bf16.msra.mxu1 %v6488_v25 }
0x3c88   :  { %5082 = vmatprep.subr.bf16.mxu1 %v5716_v50 }
0x3c8b   :  { %5084 = vmatpush3.bf16.msra.mxu1 %v6493_v29 }
0x3c8c   :  { %5100 = vmatprep.subr.bf16.mxu1 %v5716_v50 }
0x3d55   :  { %v3428_v57 = vpop.f32.mrb[32].mxu1 }
0x3d56   :  { %v3429_v58 = vadd.f32 %v6547_v32, %v3428_v57  ;;  %v4720_v11 = vpop.f32.mrb[33].mxu1 }
0x3d58   :  { %3433 = vst.msk [vmem:[#allocation25 + $0xc] sm:$0xf] %vm2861_vm1, %v3429_v58  ;;  %v3441_v60 = vsel %vm3440_vm11, %v4352_v15, %v3429_v58 }
0x3d59   :  { %v3445_v61 = vsel %vm252_vm0, %v3441_v60, %v3443_v59 }
0x3d5a   :  { %4734 = vmatmul.mubr.msk.f32.vlgmr.msra.gmra.mrb[34].mxu1 %vm2874_vm10, %v3445_v61 }
0x3d5b   :  { %5102 = vmatpush3.bf16.msra.mxu1 %v6526_v51  ;;  %4770 = vmatprep.mubr.msk.f32.mxu1 %vm5717_vm6, %v5712_v22 }
0x3d5c   :  { %5103 = vmatprep.subr.bf16.mxu1 %v5716_v50 }
0x3d5f   :  { %5105 = vmatpush3.bf16.msra.mxu1 %v6532_v54 }
0x3d60   :  { %5106 = vmatprep.subr.bf16.mxu1 %v5716_v50 }
0x3e2d   :  { %v3515_v62 = vpop.f32.mrb[34].mxu1 }
0x3e2e   :  { %v3516_v26 = vadd.f32 %v6511_v36, %v3515_v62  ;;  %v4735_v63 = vpop.f32.mrb[35].mxu1 }
0x3e30   :  { %v4354_v0 = vmul.f32 -1.442695, %v3516_v26 }
0x3e32   :  { %5288 = vpow2.f32 %v4354_v0 }
0x3e3c   :  { %v5289_v1 = vpop.eup %5288 }
0x3e3d   :  { %v3522_v2 = vadd.f32 1.0, %v5289_v1 }
0x3e3f   :  { %5290 = vrcp.f32 %v3522_v2 }
0x3e49   :  { %v5291_v3 = vpop.eup %5290 }
0x3e4a   :  { %v3525_v4 = vmul.f32 2.0, %v5291_v3  ;;  %v3527_v8 = vmul.f32 %v5291_v3, %v3350_v48 }
0x3e4c   :  { %v4355_v5 = vadd.f32 -1.0, %v3525_v4 }
0x3e4e   :  { %3529 = vrot.lane.b32.xlu0 %v4355_v5, %s5713_s7 }
0x3ec0   :  { %v3530_v6 = vpop.permute.xlu0 %3529 }
0x3ec1   :  { %v3532_v7 = vmul.f32 %v5291_v3, %v3530_v6 }
0x3ec3   :  { %3534 = vrot.lane.b32.xlu1 %v3532_v7, %s5714_s26 }
0x3f35   :  { %v3535_v9 = vpop.permute.xlu1 %3534 }
0x3f36   :  { %v3537_v10 = vadd.f32 %v3535_v9, %v3527_v8 }
0x3f38   :  { %5292 = vtanh.f32 %v3537_v10 }
0x3f42   :  { %v5293_v55 = vpop.eup %5292 }
0x3f43   :  { %3540 = vrot.lane.b32.xlu0 %v5293_v55, %s5713_s7 }
0x3fb5   :  { %v3541_v35 = vpop.permute.xlu0 %3540 }
0x3fb6   :  { %v3543_v12 = vmul.f32 %v5291_v3, %v3541_v35 }
0x3fb8   :  { %3629 = vrot.lane.b32.xlu0 %v3543_v12, %s5718_s5  ;;  %3545 = vrot.lane.b32.xlu1 %v3543_v12, %s5714_s26 }
0x402a   :  { %v3546_v14 = vpop.permute.xlu1 %3545  ;;  %v3630_v31 = vpop.permute.xlu0 %3629 }
0x402b   :  { %4745 = vmatmul.mubr.msk.f32.vlgmr.msra.gmra.mrb[32].mxu0 %vm471_vm4, %v3546_v14 }
0x402c   :  { %5093 = vmatpush3.bf16.msra.mxu0 %v6482_v18  ;;  %4759 = vmatprep.mubr.msk.f32.mxu0 %vm5717_vm6, %v5712_v22 }
0x402d   :  { %5094 = vmatprep.subr.bf16.mxu0 %v5716_v50 }
0x4030   :  { %5096 = vmatpush3.bf16.msra.mxu0 %v6488_v25 }
0x4031   :  { %5097 = vmatprep.subr.bf16.mxu0 %v5716_v50 }
0x4034   :  { %5099 = vmatpush3.bf16.msra.mxu0 %v6493_v29 }
0x4035   :  { %5115 = vmatprep.subr.bf16.mxu0 %v5716_v50 }
0x40fe   :  { %v3615_v23 = vpop.f32.mrb[32].mxu0 }
0x40ff   :  { %v3616_v28 = vadd.f32 %v6547_v32, %v3615_v23  ;;  %v4746_v30 = vpop.f32.mrb[33].mxu0 }
0x4101   :  { %3620 = vst.msk [vmem:[#allocation25 + $0x10] sm:$0xf] %vm2861_vm1, %v3616_v28  ;;  %v3628_v33 = vsel %vm3627_vm12, %v4358_v27, %v3616_v28 }
0x4102   :  { %v3632_v34 = vsel %vm252_vm0, %v3628_v33, %v3630_v31 }
0x4103   :  { %4760 = vmatmul.mubr.msk.f32.vlgmr.msra.gmra.mrb[34].mxu0 %vm2874_vm10, %v3632_v34 }
0x4104   :  { %5117 = vmatpush3.bf16.msra.mxu0 %v6526_v51  ;;  %4796 = vmatprep.mubr.msk.f32.mxu0 %vm5717_vm6, %v5712_v22 }
0x4105   :  { %5118 = vmatprep.subr.bf16.mxu0 %v5716_v50 }
0x4108   :  { %5120 = vmatpush3.bf16.msra.mxu0 %v6532_v54 }
0x4109   :  { %5121 = vmatprep.subr.bf16.mxu0 %v5716_v50 }
0x41d6   :  { %v3702_v16 = vpop.f32.mrb[34].mxu0 }
0x41d7   :  { %v3703_v37 = vadd.f32 %v6511_v36, %v3702_v16  ;;  %v4761_v20 = vpop.f32.mrb[35].mxu0 }
0x41d9   :  { %v4360_v38 = vmul.f32 -1.442695, %v3703_v37 }
0x41db   :  { %5294 = vpow2.f32 %v4360_v38 }
0x41e5   :  { %v5295_v17 = vpop.eup %5294 }
0x41e6   :  { %v3709_v21 = vadd.f32 1.0, %v5295_v17 }
0x41e8   :  { %5296 = vrcp.f32 %v3709_v21 }
0x41f2   :  { %v5297_v39 = vpop.eup %5296 }
0x41f3   :  { %v3712_v40 = vmul.f32 2.0, %v5297_v39  ;;  %v3714_v52 = vmul.f32 %v5297_v39, %v3537_v10  ;;  %v4000_v10 = vstv %s3999_s3 }
0x41f4   :  { %vm4001_vm14 = vcmp.eq.s32.totalorder %v4000_v10, 1 }
0x41f5   :  { %v4361_v41 = vadd.f32 -1.0, %v3712_v40 }
0x41f7   :  { %3716 = vrot.lane.b32.xlu1 %v4361_v41, %s5713_s7 }
0x4269   :  { %v3717_v42 = vpop.permute.xlu1 %3716 }
0x426a   :  { %v3719_v43 = vmul.f32 %v5297_v39, %v3717_v42 }
0x426c   :  { %3721 = vrot.lane.b32.xlu0 %v3719_v43, %s5714_s26 }
0x42de   :  { %v3722_v44 = vpop.permute.xlu0 %3721 }
0x42df   :  { %v3724_v45 = vadd.f32 %v3722_v44, %v3714_v52 }
0x42e1   :  { %5298 = vtanh.f32 %v3724_v45 }
0x42eb   :  { %v5299_v46 = vpop.eup %5298 }
0x42ec   :  { %3727 = vrot.lane.b32.xlu1 %v5299_v46, %s5713_s7 }
0x435e   :  { %v3728_v47 = vpop.permute.xlu1 %3727 }
0x435f   :  { %v3730_v48 = vmul.f32 %v5297_v39, %v3728_v47 }
0x4361   :  { %3816 = vrot.lane.b32.xlu1 %v3730_v48, %s5718_s5  ;;  %3732 = vrot.lane.b32.xlu0 %v3730_v48, %s5714_s26 }
0x43d3   :  { %v3733_v49 = vpop.permute.xlu0 %3732  ;;  %v3817_v15 = vpop.permute.xlu1 %3816 }
0x43d4   :  { %4771 = vmatmul.mubr.msk.f32.vlgmr.msra.gmra.mrb[36].mxu1 %vm471_vm4, %v3733_v49 }
0x43d5   :  { %5108 = vmatpush3.bf16.msra.mxu1 %v6482_v18  ;;  %4785 = vmatprep.mubr.msk.f32.mxu1 %vm5717_vm6, %v5712_v22 }
0x43d6   :  { %5109 = vmatprep.subr.bf16.mxu1 %v5716_v50 }
0x43d9   :  { %5111 = vmatpush3.bf16.msra.mxu1 %v6488_v25 }
0x43da   :  { %5112 = vmatprep.subr.bf16.mxu1 %v5716_v50 }
0x43dd   :  { %5114 = vmatpush3.bf16.msra.mxu1 %v6493_v29 }
0x43de   :  { %5130 = vmatprep.subr.bf16.mxu1 %v5716_v50 }
0x44a7   :  { %v3802_v53 = vpop.f32.mrb[36].mxu1 }
0x44a8   :  { %v3803_v13 = vadd.f32 %v6547_v32, %v3802_v53  ;;  %v4772_v57 = vpop.f32.mrb[37].mxu1 }
0x44aa   :  { %3807 = vst.msk [vmem:[#allocation25 + $0x14] sm:$0xf] %vm2861_vm1, %v3803_v13  ;;  %v3815_v58 = vsel %vm3814_vm13, %v4364_v56, %v3803_v13 }
0x44ab   :  { %v3819_v11 = vsel %vm252_vm0, %v3815_v58, %v3817_v15 }
0x44ac   :  { %4786 = vmatmul.mubr.msk.f32.vlgmr.msra.gmra.mrb[38].mxu1 %vm2874_vm10, %v3819_v11 }
0x44ad   :  { %5132 = vmatpush3.bf16.msra.mxu1 %v6526_v51  ;;  %4822 = vmatprep.mubr.msk.f32.mxu1 %vm5717_vm6, %v5712_v22 }
0x44ae   :  { %5133 = vmatprep.subr.bf16.mxu1 %v5716_v50 }
0x44b1   :  { %5135 = vmatpush3.bf16.msra.mxu1 %v6532_v54 }
0x457f   :  { %v3889_v59 = vpop.f32.mrb[38].mxu1 }
0x4580   :  { %v3890_v60 = vadd.f32 %v6511_v36, %v3889_v59  ;;  %v4787_v61 = vpop.f32.mrb[39].mxu1 }
0x4582   :  { %v4366_v62 = vmul.f32 -1.442695, %v3890_v60 }
0x4584   :  { %5300 = vpow2.f32 %v4366_v62 }
0x458e   :  { %v5301_v26 = vpop.eup %5300 }
0x458f   :  { %v3896_v63 = vadd.f32 1.0, %v5301_v26 }
0x4591   :  { %5302 = vrcp.f32 %v3896_v63 }
0x459b   :  { %v5303_v0 = vpop.eup %5302 }
0x459c   :  { %v3899_v1 = vmul.f32 2.0, %v5303_v0  ;;  %v3901_v4 = vmul.f32 %v5303_v0, %v3724_v45 }
0x459e   :  { %v4367_v2 = vadd.f32 -1.0, %v3899_v1 }
0x45a0   :  { %3903 = vrot.lane.b32.xlu0 %v4367_v2, %s5713_s7 }
0x4612   :  { %v3904_v51 = vpop.permute.xlu0 %3903 }
0x4613   :  { %v3906_v3 = vmul.f32 %v5303_v0, %v3904_v51 }
0x4615   :  { %3908 = vrot.lane.b32.xlu1 %v3906_v3, %s5714_s26 }
0x4687   :  { %v3909_v54 = vpop.permute.xlu1 %3908 }
0x4688   :  { %v3911_v5 = vadd.f32 %v3909_v54, %v3901_v4 }
0x468a   :  { %5304 = vtanh.f32 %v3911_v5 }
0x4694   :  { %v5305_v6 = vpop.eup %5304 }
0x4695   :  { %3914 = vrot.lane.b32.xlu0 %v5305_v6, %s5713_s7 }
0x4707   :  { %v3915_v7 = vpop.permute.xlu0 %3914 }
0x4708   :  { %v3917_v8 = vmul.f32 %v5303_v0, %v3915_v7 }
0x470a   :  { %4003 = vrot.lane.b32.xlu0 %v3917_v8, %s5718_s5  ;;  %3919 = vrot.lane.b32.xlu1 %v3917_v8, %s5714_s26 }
0x477c   :  { %v3920_v9 = vpop.permute.xlu1 %3919  ;;  %v4004_v12 = vpop.permute.xlu0 %4003 }
0x477d   :  { %4797 = vmatmul.mubr.msk.f32.vlgmr.msra.gmra.mrb[36].mxu0 %vm471_vm4, %v3920_v9 }
0x477e   :  { %5123 = vmatpush3.bf16.msra.mxu0 %v6482_v18  ;;  %4811 = vmatprep.mubr.msk.f32.mxu0 %vm5717_vm6, %v5712_v22  ;;  %v4370_v18 = vld [vmem:[%s6818_s0 + $0x18] sm:$0xf]  ;;  %s5719_s0 = smov [#allocation26]  }
0x477f   :  { %5124 = vmatprep.subr.bf16.mxu0 %v5716_v50  ;;  %s4200_s5 = sshll.u32 %s5719_s0, 4  ;;  %s4201_s5 = int_to_ptr.vmem [resolvable:$true] %s4200_s5 }
0x4780   :  { %s5566_s15 = scalar_lea.vmem %s4201_s5, 64  ;;  %p5571_p2 = scmp.lt.s32.totalorder %s4201_s5, %s4201_s5 }
0x4781   :  { %p5567_p1 = scmp.ne.s32.totalorder %s4201_s5, %s5566_s15  ;;  %p5572_p3 = scmp.lt.s32.totalorder %s5566_s15, %s5566_s15 }
0x4782   :  { %5126 = vmatpush3.bf16.msra.mxu0 %v6488_v25 }
0x4783   :  { %5127 = vmatprep.subr.bf16.mxu0 %v5716_v50  ;;  %p5573_p4 = por %p5572_p3, %p5571_p2 }
0x4785   :  { %p5574_p5 = pnand %p5573_p4, %p5567_p1 }
0x4786   :  { %5129 = vmatpush3.bf16.msra.mxu0 %v6493_v29 }
0x4850   :  { %v3989_v55 = vpop.f32.mrb[36].mxu0 }
0x4851   :  { %v3990_v22 = vadd.f32 %v6547_v32, %v3989_v55  ;;  %v4798_v35 = vpop.f32.mrb[37].mxu0 }
0x4853   :  { %3994 = vst.msk [vmem:[#allocation25 + $0x18] sm:$0xf] %vm2861_vm1, %v3990_v22  ;;  %v4002_v25 = vsel %vm4001_vm14, %v4370_v18, %v3990_v22 }
0x4854   :  { %v4006_v50 = vsel %vm252_vm0, %v4002_v25, %v4004_v12 }
0x4855   :  { %4812 = vmatmul.mubr.msk.f32.vlgmr.msra.gmra.mrb[38].mxu0 %vm2874_vm10, %v4006_v50 }
0x4928   :  { %v4076_v29 = vpop.f32.mrb[38].mxu0 }
0x4929   :  { %v4077_v14 = vadd.f32 %v6511_v36, %v4076_v29  ;;  %v4813_v19 = vpop.f32.mrb[39].mxu0 }
0x492b   :  { %v4372_v23 = vmul.f32 -1.442695, %v4077_v14 }
0x492d   :  { %5306 = vpow2.f32 %v4372_v23 }
0x4937   :  { %v5307_v27 = vpop.eup %5306 }
0x4938   :  { %v4083_v28 = vadd.f32 1.0, %v5307_v27 }
0x493a   :  { %5308 = vrcp.f32 %v4083_v28 }
0x4944   :  { %v5309_v30 = vpop.eup %5308 }
0x4945   :  { %v4086_v31 = vmul.f32 2.0, %v5309_v30  ;;  %v4088_v37 = vmul.f32 %v5309_v30, %v3911_v5 }
0x4947   :  { %v4373_v33 = vadd.f32 -1.0, %v4086_v31 }
0x4949   :  { %4090 = vrot.lane.b32.xlu1 %v4373_v33, %s5713_s7 }
0x49bb   :  { %v4091_v34 = vpop.permute.xlu1 %4090 }
0x49bc   :  { %v4093_v16 = vmul.f32 %v5309_v30, %v4091_v34 }
0x49be   :  { %4095 = vrot.lane.b32.xlu0 %v4093_v16, %s5714_s26 }
0x4a30   :  { %v4096_v20 = vpop.permute.xlu0 %4095 }
0x4a31   :  { %v4098_v38 = vadd.f32 %v4096_v20, %v4088_v37 }
0x4a33   :  { %5310 = vtanh.f32 %v4098_v38 }
0x4a3d   :  { %v5311_v36 = vpop.eup %5310 }
0x4a3e   :  { %4101 = vrot.lane.b32.xlu1 %v5311_v36, %s5713_s7 }
0x4ab0   :  { %v4102_v17 = vpop.permute.xlu1 %4101 }
0x4ab1   :  { %v4104_v21 = vmul.f32 %v5309_v30, %v4102_v17 }
0x4ab3   :  { %4106 = vrot.lane.b32.xlu0 %v4104_v21, %s5714_s26 }
0x4b25   :  { %v4107_v39 = vpop.permute.xlu0 %4106 }
0x4b26   :  { %4823 = vmatmul.mubr.msk.f32.vlgmr.msra.gmra.mrb[40].mxu1 %vm471_vm4, %v4107_v39 }
0x4b27   :  { %5577 = shalt.err (!%p5574_p5)
}
0x4b28   :  { %s5578_s26 = scalar_lea.hbm %s6784_s20, 64 }
0x4b29   :  { %p5579_p6 = scmp.ne.s32.totalorder %s6784_s20, %s5578_s26  ;;  %p5582_p7 = scmp.lt.u32.totalorder %s5578_s26, %s6784_s20 }
0x4b2b   :  { %p5584_p8 = pnand %p5582_p7, %p5579_p6 }
0x4b2d   :  { %5587 = shalt.err (!%p5584_p8)
}
0x4b2e   :  { %4203 = dma.vmem_to_hbm [thread:$0]  %s4201_s5, 64, %s6784_s20, [#allocation27]  }
0x4b2f   :  { %s5588_s30 = scalar_lea.vmem %s4221_s16, 64  ;;  %p5593_p10 = scmp.lt.s32.totalorder %s4221_s16, %s4221_s16 }
0x4b30   :  { %p5589_p9 = scmp.ne.s32.totalorder %s4221_s16, %s5588_s30  ;;  %p5594_p11 = scmp.lt.s32.totalorder %s5588_s30, %s5588_s30 }
0x4b32   :  { %p5595_p12 = por %p5594_p11, %p5593_p10 }
0x4b34   :  { %p5596_p13 = pnand %p5595_p12, %p5589_p9 }
0x4b36   :  { %5599 = shalt.err (!%p5596_p13)
}
0x4b37   :  { %s5600_s13 = scalar_lea.hbm %s6786_s22, 64 }
0x4b38   :  { %p5601_p0 = scmp.ne.s32.totalorder %s6786_s22, %s5600_s13  ;;  %p5604_p1 = scmp.lt.u32.totalorder %s5600_s13, %s6786_s22 }
0x4b3a   :  { %p5606_p2 = pnand %p5604_p1, %p5601_p0 }
0x4b3c   :  { %5609 = shalt.err (!%p5606_p2)
}
0x4b3d   :  { %4223 = dma.vmem_to_hbm [thread:$0]  %s4221_s16, 64, %s6786_s22, [#allocation30]  }
0x4b3e   :  { %s5721_s24 = smov [#allocation28]  }
0x4b3f   :  { %s4210_s3 = sshll.u32 %s5721_s24, 4  ;;  %s4211_s3 = int_to_ptr.vmem [resolvable:$true] %s4210_s3 }
0x4b40   :  { %s5610_s6 = scalar_lea.vmem %s4211_s3, 64  ;;  %p5615_p4 = scmp.lt.s32.totalorder %s4211_s3, %s4211_s3 }
0x4b41   :  { %p5611_p3 = scmp.ne.s32.totalorder %s4211_s3, %s5610_s6  ;;  %p5616_p5 = scmp.lt.s32.totalorder %s5610_s6, %s5610_s6 }
0x4b43   :  { %p5617_p6 = por %p5616_p5, %p5615_p4 }
0x4b45   :  { %p5618_p7 = pnand %p5617_p6, %p5611_p3 }
0x4b47   :  { %5621 = shalt.err (!%p5618_p7)
}
0x4b48   :  { %s5622_s5 = scalar_lea.hbm %s6785_s21, 64 }
0x4b49   :  { %p5623_p8 = scmp.ne.s32.totalorder %s6785_s21, %s5622_s5  ;;  %p5626_p9 = scmp.lt.u32.totalorder %s5622_s5, %s6785_s21 }
0x4b4b   :  { %p5628_p10 = pnand %p5626_p9, %p5623_p8 }
0x4b4d   :  { %5631 = shalt.err (!%p5628_p10)
}
0x4b4e   :  { %4213 = dma.vmem_to_hbm [thread:$0]  %s4211_s3, 64, %s6785_s21, [#allocation27]  }
0x4b4f   :  { %s5722_s26 = smov [#allocation31]  }
0x4b50   :  { %s4230_s1 = sshll.u32 %s5722_s26, 4  ;;  %s4231_s1 = int_to_ptr.vmem [resolvable:$true] %s4230_s1 }
0x4b51   :  { %s5632_s19 = scalar_lea.vmem %s4231_s1, 64  ;;  %p5637_p12 = scmp.lt.s32.totalorder %s4231_s1, %s4231_s1 }
0x4b52   :  { %p5633_p11 = scmp.ne.s32.totalorder %s4231_s1, %s5632_s19  ;;  %p5638_p13 = scmp.lt.s32.totalorder %s5632_s19, %s5632_s19 }
0x4b54   :  { %p5639_p0 = por %p5638_p13, %p5637_p12 }
0x4b56   :  { %p5640_p1 = pnand %p5639_p0, %p5633_p11 }
0x4b58   :  { %5643 = shalt.err (!%p5640_p1)
}
0x4b59   :  { %s6821_s11 = sld [smem:[#allocation51_spill]] }
0x4b5f   :  { %s5644_s27 = scalar_lea.hbm %s6821_s11, 64 }
0x4b60   :  { %p5645_p2 = scmp.ne.s32.totalorder %s6821_s11, %s5644_s27  ;;  %p5648_p3 = scmp.lt.u32.totalorder %s5644_s27, %s6821_s11 }
0x4b62   :  { %p5650_p4 = pnand %p5648_p3, %p5645_p2 }
0x4b64   :  { %5653 = shalt.err (!%p5650_p4)
}
0x4b65   :  { %4233 = dma.vmem_to_hbm [thread:$0]  %s4231_s1, 64, %s6821_s11, [#allocation30]  }
0x4b66   :  { %s5723_s14 = smov [#allocation25]  }
0x4b67   :  { %s4187_s2 = sshll.u32 %s5723_s14, 4  ;;  %s4188_s2 = int_to_ptr.vmem [resolvable:$true] %s4187_s2 }
0x4b68   :  { %s5654_s9 = scalar_lea.vmem %s4188_s2, 512  ;;  %p5659_p6 = scmp.lt.s32.totalorder %s4188_s2, %s4188_s2 }
0x4b69   :  { %p5655_p5 = scmp.ne.s32.totalorder %s4188_s2, %s5654_s9  ;;  %p5660_p7 = scmp.lt.s32.totalorder %s5654_s9, %s5654_s9 }
0x4b6b   :  { %p5661_p8 = por %p5660_p7, %p5659_p6 }
0x4b6d   :  { %p5662_p9 = pnand %p5661_p8, %p5655_p5 }
0x4bf9   :  { %v4176_v40 = vpop.f32.mrb[40].mxu1 }
0x4bfa   :  { %v4177_v41 = vadd.f32 %v6547_v32, %v4176_v40  ;;  %v4824_v42 = vpop.f32.mrb[41].mxu1 }
0x4bfc   :  { %4181 = vst.msk [vmem:[#allocation25 + $0x1c] sm:$0xf] %vm2861_vm1, %v4177_v41 }
0x4bfd   :  { %5665 = shalt.err (!%p5662_p9)
}
0x4bfe   :  { %s6822_s24 = sld [smem:[#allocation50_spill]] }
0x4c04   :  { %s5666_s3 = scalar_lea.hbm %s6822_s24, 512 }
0x4c05   :  { %p5667_p10 = scmp.ne.s32.totalorder %s6822_s24, %s5666_s3  ;;  %p5670_p11 = scmp.lt.u32.totalorder %s5666_s3, %s6822_s24 }
0x4c07   :  { %p5672_p12 = pnand %p5670_p11, %p5667_p10 }
0x4c09   :  { %5675 = shalt.err (!%p5672_p12)
}
0x4c0a   :  { %s5724_s17 = smov 4  }
0x4c0b   :  { %4193 = dma.vmem_to_hbm [thread:$0]  %s4188_s2, 512, %s6822_s24, [#allocation7], %s5713_s7, %s5713_s7, %s5724_s17  }
0x4c0c   :  { %5690 = dma.done.wait [#allocation7], 512  }
0x4c0d   :  { %5691 = vsyncadd [#allocation7], 4294966784 }
0x4c0e   :  { %5692 = dma.done.wait [#allocation27], 128  }
0x4c0f   :  { %5693 = vsyncadd [#allocation27], 4294967168 }
0x4c10   :  { %5694 = dma.done.wait [#allocation30], 128  }
0x4c11   :  { %5695 = vsyncadd [#allocation30], 4294967168 }
0x4c12   :  { %4249 = vsyncpa [#allocation6], 1 }
0x4c13   :  { %4250 = vsyncpa [#allocation11], 1 }
0x4c14   :  { %4251 = vsyncpa [#allocation14], 1 }
0x4c15   :  { %4252 = vsyncpa [#allocation17], 1 }
0x4c16   :  { %4253 = vsyncpa [#allocation20], 1 }
0x4c17   :  { %4254 = vsyncpa [#allocation23], 1 }
0x4c18   :  { %4255 = vsyncpa [#allocation7], 1 }
0x4c19   :  { %4256 = vsyncpa [#allocation27], 1 }
0x4c1a   :  { %4257 = vsyncpa [#allocation30], 1 }
0x4c1b   :  { %4258 = vsyncpa [#allocation8], 1 }

</bundles_post_ra>
